<compile_context>
chip_gen: v5e
topology: v5e:2x2
jax: 0.10.0
libtpu: 0.0.40
codegen_flags: <defaults>
</compile_context>

<pallas_src>
import numpy as np
import jax
import jax.numpy as jnp
from jax.experimental import pallas as pl
from jax.experimental.pallas import tpu as pltpu

N = 16            # nodes per graph
IN_DIM = 32
OUT_DIM = 32      # residual requires in_dim == out_dim
NUM_HEADS = 4
HEAD_DIM = OUT_DIM // NUM_HEADS
BN_EPS = 1e-5
INV_SCALE = 1.0 / float(np.sqrt(HEAD_DIM))

GPB = 8                                   # graphs per grid step -> matmul M = GPB*N = 128
_W_ROWS = IN_DIM + 2 * OUT_DIM            # 96 rows in the weight slab
_W_COLS = 6 * OUT_DIM                     # 192 cols in the weight slab
_V_COLS = 8 * OUT_DIM                     # 256 cols in the bias slab


def gt_layer_kernel(h_ref, adjt_ref, w_ref, v_ref, out_ref):
    # ---- static slices into the packed parameter slabs (free) ----
    w_qkv  = w_ref[0:IN_DIM, 0:3 * OUT_DIM]                      # (32, 96), Q cols pre-scaled
    wo     = w_ref[0:IN_DIM, 3 * OUT_DIM:4 * OUT_DIM]            # (32, 32)
    w1     = w_ref[0:IN_DIM, 4 * OUT_DIM:6 * OUT_DIM]            # (32, 64)
    w2     = w_ref[IN_DIM:_W_ROWS, 0:OUT_DIM]                    # (64, 32)
    hmask2 = w_ref[IN_DIM:_W_ROWS, OUT_DIM:3 * OUT_DIM]          # (64, 64) head selector (K|V halves)
    hsel   = hmask2[:, 0:OUT_DIM]                                # (64, 32) single-half selector

    bo   = v_ref[:, 0 * OUT_DIM:1 * OUT_DIM]
    b2   = v_ref[:, 1 * OUT_DIM:2 * OUT_DIM]
    bn1g = v_ref[:, 2 * OUT_DIM:3 * OUT_DIM]
    bn1b = v_ref[:, 3 * OUT_DIM:4 * OUT_DIM]
    bn2g = v_ref[:, 4 * OUT_DIM:5 * OUT_DIM]
    bn2b = v_ref[:, 5 * OUT_DIM:6 * OUT_DIM]
    b1   = v_ref[:, 6 * OUT_DIM:8 * OUT_DIM]

    h3  = h_ref[...]                                             # (G, N, 32)
    h2d = h3.reshape(GPB * N, IN_DIM)                            # (128, 32)

    # ---- fused Q/K/V projection: one MXU matmul, M = 128 rows ----
    qkv = jnp.dot(h2d, w_qkv, preferred_element_type=jnp.float32)        # (128, 96)
    q   = qkv[:, 0:OUT_DIM].reshape(GPB, N, OUT_DIM)                     # (G, 16, 32)
    kv  = qkv[:, OUT_DIM:3 * OUT_DIM].reshape(GPB, N, 2 * OUT_DIM)       # (G, 16, 64)

    # ---- lane-packed heads: ONE replication + ONE mask for K and V together ----
    kv_rep  = jnp.concatenate([kv] * NUM_HEADS, axis=1)                  # (G, 64, 64), rows = (head, src)
    kv_pack = kv_rep * hmask2[None]                                      # head block-diag selector
    k_pack  = kv_pack[:, :, 0:OUT_DIM]                                   # (G, 64, 32)

    # ---- all-head scores, batched over the graphs of this grid step ----
    s = jnp.einsum('gnd,gmd->gnm', q, k_pack,
                   preferred_element_type=jnp.float32)                   # (G, 16, 64): [dst, head*src]
    s = jnp.exp(jnp.clip(s, -5.0, 5.0))                                  # scaled_exp (scale folded in Wq)
    adj_t = adjt_ref[...]                                                # (G, 16, 16): [dst, src]
    s = s * jnp.concatenate([adj_t] * NUM_HEADS, axis=2)                 # edge mask, adj in {0,1}

    # ---- weighted values + per-head normalizer z in ONE merged matmul ----
    rhs = jnp.concatenate(
        [kv_pack[:, :, OUT_DIM:2 * OUT_DIM],                             # head-masked V
         jnp.broadcast_to(hsel[None], (GPB, NUM_HEADS * N, OUT_DIM))],   # selector -> per-head sums
        axis=-1)                                                         # (G, 64, 64)
    wvz = jnp.einsum('gnm,gmc->gnc', s, rhs,
                     preferred_element_type=jnp.float32)                 # (G, 16, 64)
    wvz = wvz.reshape(GPB * N, 2 * OUT_DIM)
    wv = wvz[:, 0:OUT_DIM]                                               # (128, 32)
    z  = wvz[:, OUT_DIM:2 * OUT_DIM]                                     # per-head z broadcast over lanes
    z  = jnp.where(z > 0.0, z, 1.0)           # guard dst nodes with no incoming edge
    rz = pl.reciprocal(z, approx=True)        # EUP slot
    rz = rz * (2.0 - z * rz)                  # one Newton step -> f32-accurate
    attn = wv * rz                                                       # (128, 32)

    # ---- O projection + residual + per-graph BatchNorm1d (training-mode stats) ----
    h1 = jnp.dot(attn, wo, preferred_element_type=jnp.float32) + bo
    h1 = h2d + h1
    h1_3 = h1.reshape(GPB, N, OUT_DIM)
    m1 = jnp.mean(h1_3, axis=1, keepdims=True)
    var1 = jnp.mean((h1_3 - m1) * (h1_3 - m1), axis=1, keepdims=True)
    h1n = (h1_3 - m1) * jax.lax.rsqrt(var1 + BN_EPS) * bn1g + bn1b
    h1n2d = h1n.reshape(GPB * N, OUT_DIM)

    # ---- FFN + residual + per-graph BatchNorm1d ----
    f  = jnp.maximum(jnp.dot(h1n2d, w1, preferred_element_type=jnp.float32) + b1, 0.0)
    h2 = jnp.dot(f, w2, preferred_element_type=jnp.float32) + b2
    h2 = h1n2d + h2
    h2_3 = h2.reshape(GPB, N, OUT_DIM)
    m2 = jnp.mean(h2_3, axis=1, keepdims=True)
    var2 = jnp.mean((h2_3 - m2) * (h2_3 - m2), axis=1, keepdims=True)
    out_ref[...] = (h2_3 - m2) * jax.lax.rsqrt(var2 + BN_EPS) * bn2g + bn2b


def pack_params(params):
    """Pack the 13 small parameter tensors (+ static head selector) into two slabs.
    Called ONCE when weights are created -> the constant concatenates and the
    1/sqrt(d) scale are hoisted out of the per-call path entirely."""
    wq, wk, wv_, wo, bo, w1, b1, w2, b2, bn1g, bn1b, bn2g, bn2b = params
    # hmask2[h*N + m, c] = 1 iff (c % OUT_DIM) // HEAD_DIM == h  (K and V halves)
    rows = np.arange(NUM_HEADS * N)[:, None] // N
    cols = (np.arange(2 * OUT_DIM)[None, :] % OUT_DIM) // HEAD_DIM
    hmask2 = jnp.asarray((rows == cols).astype(np.float32))              # (64, 64)

    top = jnp.concatenate([wq * INV_SCALE, wk, wv_, wo, w1], axis=1)     # (32, 192)
    bot = jnp.concatenate(
        [w2, hmask2,
         jnp.zeros((2 * OUT_DIM, _W_COLS - 3 * OUT_DIM), jnp.float32)], axis=1)  # (64, 192)
    w_slab = jnp.concatenate([top, bot], axis=0)                         # (96, 192)
    v_slab = jnp.concatenate([bo, b2, bn1g, bn1b, bn2g, bn2b, b1], axis=1)  # (1, 256)
    return w_slab, v_slab


@jax.jit
def graph_transformer_layer(h, adj, w_slab, v_slab):
    """h: (B, N, IN_DIM) node features for B independent graphs.
       adj: (B, N, N) dense adjacency, adj[b, src, dst] in {0, 1}."""
    B = h.shape[0]
    assert B % GPB == 0, "batch must be a multiple of GPB"
    adj_t = jnp.swapaxes(adj, 1, 2)                 # (B, dst, src)

    return pl.pallas_call(
        gt_layer_kernel,
        out_shape=jax.ShapeDtypeStruct((B, N, OUT_DIM), jnp.float32),
        grid_spec=pltpu.PrefetchScalarGridSpec(
            num_scalar_prefetch=0,
            grid=(B // GPB,),
            in_specs=[
                pl.BlockSpec((GPB, N, IN_DIM), lambda i: (i, 0, 0)),
                pl.BlockSpec((GPB, N, N), lambda i: (i, 0, 0)),
                pl.BlockSpec((_W_ROWS, _W_COLS), lambda i: (0, 0)),   # resident across the grid
                pl.BlockSpec((1, _V_COLS), lambda i: (0, 0)),         # resident across the grid
            ],
            out_specs=pl.BlockSpec((GPB, N, OUT_DIM), lambda i: (i, 0, 0)),
        ),
        compiler_params=pltpu.CompilerParams(
            dimension_semantics=("parallel",)),     # shards over both TCs on v7x
    )(h, adj_t, w_slab, v_slab)


def reference_single(h, adj, params):
    """Pure-JAX reproduction of the PyTorch/DGL forward for ONE graph (validation)."""
    wq, wk, wv_, wo, bo, w1, b1, w2, b2, bn1g, bn1b, bn2g, bn2b = params
    Q = (h @ wq).reshape(N, NUM_HEADS, HEAD_DIM)
    K = (h @ wk).reshape(N, NUM_HEADS, HEAD_DIM)
    V = (h @ wv_).reshape(N, NUM_HEADS, HEAD_DIM)
    s = jnp.einsum('shd,thd->hst', K, Q) / np.sqrt(HEAD_DIM)
    s = jnp.exp(jnp.clip(s, -5.0, 5.0)) * adj[None]
    wV = jnp.einsum('hst,shd->thd', s, V)                      # (dst, heads, d)
    z = jnp.transpose(jnp.sum(s, axis=1))[:, :, None]          # (dst, heads, 1)
    attn = (wV / z).reshape(N, OUT_DIM)

    def bn(x, g_, b_):
        m = jnp.mean(x, axis=0, keepdims=True)
        v = jnp.mean((x - m) ** 2, axis=0, keepdims=True)
        return (x - m) / jnp.sqrt(v + BN_EPS) * g_ + b_

    h1 = attn @ wo + bo
    h1 = h + h1
    h1 = bn(h1, bn1g, bn1b)
    f = jnp.maximum(h1 @ w1 + b1, 0.0)
    h2 = f @ w2 + b2
    h2 = h1 + h2
    return bn(h2, bn2g, bn2b)


def _linear_params(key, fan_in, fan_out, bias):
    kw, kb = jax.random.split(key)
    bound = 1.0 / np.sqrt(fan_in)
    # stored pre-transposed: (in, out) so y = x @ W (+ b)
    w = jax.random.uniform(kw, (fan_in, fan_out), jnp.float32, -bound, bound)
    if bias:
        b = jax.random.uniform(kb, (1, fan_out), jnp.float32, -bound, bound)
        return w, b
    return (w,)


if __name__ == "__main__":
    key = jax.random.PRNGKey(0)
    keys = jax.random.split(key, 10)

    B = 32                                                     # batch of independent graphs
    # node features
    h = jax.random.normal(keys[0], (B, N, IN_DIM), jnp.float32)
    # random directed graphs + self loops (guarantees every dst has an incoming edge)
    adj = (jax.random.uniform(keys[1], (B, N, N)) < 0.4).astype(jnp.float32)
    adj = jnp.maximum(adj, jnp.eye(N, dtype=jnp.float32)[None])

    (wq,) = _linear_params(keys[2], IN_DIM, OUT_DIM, bias=False)   # use_bias=False
    (wk,) = _linear_params(keys[3], IN_DIM, OUT_DIM, bias=False)
    (wv_,) = _linear_params(keys[4], IN_DIM, OUT_DIM, bias=False)
    wo, bo = _linear_params(keys[5], OUT_DIM, OUT_DIM, bias=True)
    w1, b1 = _linear_params(keys[6], OUT_DIM, OUT_DIM * 2, bias=True)
    w2, b2 = _linear_params(keys[7], OUT_DIM * 2, OUT_DIM, bias=True)
    bn1g = jnp.ones((1, OUT_DIM), jnp.float32)
    bn1b = jnp.zeros((1, OUT_DIM), jnp.float32)
    bn2g = jnp.ones((1, OUT_DIM), jnp.float32)
    bn2b = jnp.zeros((1, OUT_DIM), jnp.float32)
    params = (wq, wk, wv_, wo, bo, w1, b1, w2, b2, bn1g, bn1b, bn2g, bn2b)

    # Constant packing hoisted out of the per-call path (done once per weight set).
    w_slab, v_slab = jax.block_until_ready(pack_params(params))

    out = graph_transformer_layer(h, adj, w_slab, v_slab)
    out = jax.block_until_ready(out)

    ref = jax.block_until_ready(
        jax.vmap(lambda hh, aa: reference_single(hh, aa, params))(h, adj))
    assert out.shape == (B, N, OUT_DIM)
    np.testing.assert_allclose(np.asarray(out), np.asarray(ref), rtol=1e-3, atol=1e-3)

    print("KERNEL_OK")
</pallas_src>

<mosaic_0001>
module attributes {stable_mosaic.version = 11 : i64} {
  func.func @gt_layer_kernel(%arg0: i32, %arg1: memref<8x16x32xf32, #tpu.memory_space<vmem>>, %arg2: memref<8x16x16xf32, #tpu.memory_space<vmem>>, %arg3: memref<96x192xf32, #tpu.memory_space<vmem>>, %arg4: memref<1x256xf32, #tpu.memory_space<vmem>>, %arg5: memref<8x16x32xf32, #tpu.memory_space<vmem>>) attributes {dimension_semantics = [#tpu.dimension_semantics<parallel>], iteration_bounds = array<i64: 4>, scalar_prefetch = 0 : i64, scratch_operands = 0 : i64, tpu.core_type = #tpu.core_type<tc>, window_params = [{transform_indices = @transform_0, window_bounds = array<i64: 8, 16, 32>}, {transform_indices = @transform_1, window_bounds = array<i64: 8, 16, 16>}, {pipeline_mode = #tpu.pipeline_mode<synchronous>, transform_indices = @transform_2, window_bounds = array<i64: 96, 192>}, {pipeline_mode = #tpu.pipeline_mode<synchronous>, transform_indices = @transform_3, window_bounds = array<i64: 1, 256>}, {transform_indices = @transform_4, window_bounds = array<i64: 8, 16, 32>}]} {
    %c0 = arith.constant 0 : index
    %c0_0 = arith.constant 0 : index
    %0 = vector.load %arg3[%c0, %c0_0] : memref<96x192xf32, #tpu.memory_space<vmem>>, vector<32x96xf32>
    %c0_1 = arith.constant 0 : index
    %c96 = arith.constant 96 : index
    %1 = vector.load %arg3[%c0_1, %c96] : memref<96x192xf32, #tpu.memory_space<vmem>>, vector<32x32xf32>
    %c0_2 = arith.constant 0 : index
    %c128 = arith.constant 128 : index
    %2 = vector.load %arg3[%c0_2, %c128] : memref<96x192xf32, #tpu.memory_space<vmem>>, vector<32x64xf32>
    %c32 = arith.constant 32 : index
    %c0_3 = arith.constant 0 : index
    %3 = vector.load %arg3[%c32, %c0_3] : memref<96x192xf32, #tpu.memory_space<vmem>>, vector<64x32xf32>
    %c32_4 = arith.constant 32 : index
    %c32_5 = arith.constant 32 : index
    %4 = vector.load %arg3[%c32_4, %c32_5] : memref<96x192xf32, #tpu.memory_space<vmem>>, vector<64x64xf32>
    %5 = vector.extract_strided_slice %4 {offsets = [0, 0], sizes = [64, 32], strides = [1, 1]} : vector<64x64xf32> to vector<64x32xf32>
    %c0_6 = arith.constant 0 : index
    %c0_7 = arith.constant 0 : index
    %6 = vector.load %arg4[%c0_6, %c0_7] : memref<1x256xf32, #tpu.memory_space<vmem>>, vector<1x32xf32>
    %c0_8 = arith.constant 0 : index
    %c32_9 = arith.constant 32 : index
    %7 = vector.load %arg4[%c0_8, %c32_9] : memref<1x256xf32, #tpu.memory_space<vmem>>, vector<1x32xf32>
    %c0_10 = arith.constant 0 : index
    %c64 = arith.constant 64 : index
    %8 = vector.load %arg4[%c0_10, %c64] : memref<1x256xf32, #tpu.memory_space<vmem>>, vector<1x32xf32>
    %c0_11 = arith.constant 0 : index
    %c96_12 = arith.constant 96 : index
    %9 = vector.load %arg4[%c0_11, %c96_12] : memref<1x256xf32, #tpu.memory_space<vmem>>, vector<1x32xf32>
    %c0_13 = arith.constant 0 : index
    %c128_14 = arith.constant 128 : index
    %10 = vector.load %arg4[%c0_13, %c128_14] : memref<1x256xf32, #tpu.memory_space<vmem>>, vector<1x32xf32>
    %c0_15 = arith.constant 0 : index
    %c160 = arith.constant 160 : index
    %11 = vector.load %arg4[%c0_15, %c160] : memref<1x256xf32, #tpu.memory_space<vmem>>, vector<1x32xf32>
    %c0_16 = arith.constant 0 : index
    %c192 = arith.constant 192 : index
    %12 = vector.load %arg4[%c0_16, %c192] : memref<1x256xf32, #tpu.memory_space<vmem>>, vector<1x64xf32>
    %c0_17 = arith.constant 0 : index
    %c0_18 = arith.constant 0 : index
    %c0_19 = arith.constant 0 : index
    %13 = vector.load %arg1[%c0_17, %c0_18, %c0_19] : memref<8x16x32xf32, #tpu.memory_space<vmem>>, vector<8x16x32xf32>
    %14 = vector.shape_cast %13 : vector<8x16x32xf32> to vector<128x32xf32>
    %cst = arith.constant dense<0.000000e+00> : vector<128x96xf32>
    %15 = tpu.matmul %14, %0, %cst {dimension_numbers = #tpu.dot_dimension_numbers<[1], [0], [0], [1], [0, 0, 1, 1], [], []>} : vector<128x32xf32>, vector<32x96xf32>, vector<128x96xf32> -> vector<128x96xf32>
    %16 = vector.extract_strided_slice %15 {offsets = [0, 0], sizes = [128, 32], strides = [1, 1]} : vector<128x96xf32> to vector<128x32xf32>
    %17 = vector.shape_cast %16 : vector<128x32xf32> to vector<8x16x32xf32>
    %18 = vector.extract_strided_slice %15 {offsets = [0, 32], sizes = [128, 64], strides = [1, 1]} : vector<128x96xf32> to vector<128x64xf32>
    %19 = vector.shape_cast %18 : vector<128x64xf32> to vector<8x16x64xf32>
    %20 = tpu.concatenate %19, %19, %19, %19 in 1 : vector<8x16x64xf32>, vector<8x16x64xf32>, vector<8x16x64xf32>, vector<8x16x64xf32> -> vector<8x64x64xf32>
    %21 = vector.shape_cast %4 : vector<64x64xf32> to vector<1x64x64xf32>
    %22 = vector.broadcast %21 : vector<1x64x64xf32> to vector<8x64x64xf32>
    %23 = arith.mulf %20, %22 : vector<8x64x64xf32>
    %24 = vector.extract_strided_slice %23 {offsets = [0, 0, 0], sizes = [8, 64, 32], strides = [1, 1, 1]} : vector<8x64x64xf32> to vector<8x64x32xf32>
    "tpu.trace_start"() <{level = 10 : i32, message = "gnd,gmd->gnm"}> : () -> ()
    %cst_20 = arith.constant dense<0.000000e+00> : vector<8x16x64xf32>
    %25 = tpu.matmul %17, %24, %cst_20 {dimension_numbers = #tpu.dot_dimension_numbers<[2], [2], [1], [1], [0, 0, 0, 1, 1, 1], [0], [0]>} : vector<8x16x32xf32>, vector<8x64x32xf32>, vector<8x16x64xf32> -> vector<8x16x64xf32>
    %cst_21 = arith.constant -5.000000e+00 : f32
    %cst_22 = arith.constant 5.000000e+00 : f32
    "tpu.trace_stop"() : () -> ()
    %26 = vector.broadcast %cst_21 : f32 to vector<8x16x64xf32>
    %27 = arith.maximumf %26, %25 : vector<8x16x64xf32>
    %28 = vector.broadcast %cst_22 : f32 to vector<8x16x64xf32>
    %29 = arith.minimumf %28, %27 : vector<8x16x64xf32>
    %30 = math.exp %29 : vector<8x16x64xf32>
    %c0_23 = arith.constant 0 : index
    %c0_24 = arith.constant 0 : index
    %c0_25 = arith.constant 0 : index
    %31 = vector.load %arg2[%c0_23, %c0_24, %c0_25] : memref<8x16x16xf32, #tpu.memory_space<vmem>>, vector<8x16x16xf32>
    %32 = tpu.concatenate %31, %31, %31, %31 in 2 : vector<8x16x16xf32>, vector<8x16x16xf32>, vector<8x16x16xf32>, vector<8x16x16xf32> -> vector<8x16x64xf32>
    %33 = arith.mulf %30, %32 : vector<8x16x64xf32>
    %34 = vector.extract_strided_slice %23 {offsets = [0, 0, 32], sizes = [8, 64, 32], strides = [1, 1, 1]} : vector<8x64x64xf32> to vector<8x64x32xf32>
    %35 = vector.shape_cast %5 : vector<64x32xf32> to vector<1x64x32xf32>
    %36 = vector.shape_cast %35 : vector<1x64x32xf32> to vector<1x64x32xf32>
    %37 = vector.broadcast %36 : vector<1x64x32xf32> to vector<8x64x32xf32>
    %38 = tpu.concatenate %34, %37 in 2 : vector<8x64x32xf32>, vector<8x64x32xf32> -> vector<8x64x64xf32>
    "tpu.trace_start"() <{level = 10 : i32, message = "gnm,gmc->gnc"}> : () -> ()
    %cst_26 = arith.constant dense<0.000000e+00> : vector<8x16x64xf32>
    %39 = tpu.matmul %33, %38, %cst_26 {dimension_numbers = #tpu.dot_dimension_numbers<[2], [1], [1], [2], [0, 0, 0, 1, 1, 2], [0], [0]>} : vector<8x16x64xf32>, vector<8x64x64xf32>, vector<8x16x64xf32> -> vector<8x16x64xf32>
    "tpu.trace_stop"() : () -> ()
    %40 = vector.shape_cast %39 : vector<8x16x64xf32> to vector<128x64xf32>
    %41 = vector.extract_strided_slice %40 {offsets = [0, 0], sizes = [128, 32], strides = [1, 1]} : vector<128x64xf32> to vector<128x32xf32>
    %42 = vector.extract_strided_slice %40 {offsets = [0, 32], sizes = [128, 32], strides = [1, 1]} : vector<128x64xf32> to vector<128x32xf32>
    %cst_27 = arith.constant 0.000000e+00 : f32
    %43 = vector.broadcast %cst_27 : f32 to vector<128x32xf32>
    %44 = arith.cmpf ogt, %42, %43 : vector<128x32xf32>
    %cst_28 = arith.constant 1.000000e+00 : f32
    %45 = vector.broadcast %cst_28 : f32 to vector<128x32xf32>
    %46 = arith.select %44, %42, %45 : vector<128x32xi1>, vector<128x32xf32>
    %47 = tpu.reciprocal %46 {approx = true} : vector<128x32xf32> -> vector<128x32xf32>
    %48 = arith.mulf %46, %47 : vector<128x32xf32>
    %cst_29 = arith.constant 2.000000e+00 : f32
    %49 = vector.broadcast %cst_29 : f32 to vector<128x32xf32>
    %50 = arith.subf %49, %48 : vector<128x32xf32>
    %51 = arith.mulf %47, %50 : vector<128x32xf32>
    %52 = arith.mulf %41, %51 : vector<128x32xf32>
    %cst_30 = arith.constant dense<0.000000e+00> : vector<128x32xf32>
    %53 = tpu.matmul %52, %1, %cst_30 {dimension_numbers = #tpu.dot_dimension_numbers<[1], [0], [0], [1], [0, 0, 1, 1], [], []>} : vector<128x32xf32>, vector<32x32xf32>, vector<128x32xf32> -> vector<128x32xf32>
    %54 = vector.broadcast %6 : vector<1x32xf32> to vector<128x32xf32>
    %55 = arith.addf %53, %54 : vector<128x32xf32>
    %56 = arith.addf %14, %55 : vector<128x32xf32>
    %57 = vector.shape_cast %56 : vector<128x32xf32> to vector<8x16x32xf32>
    %cst_31 = arith.constant dense<0.000000e+00> : vector<8x32xf32>
    %58 = vector.multi_reduction <add>, %57, %cst_31 [1] : vector<8x16x32xf32> to vector<8x32xf32>
    %59 = vector.shape_cast %58 : vector<8x32xf32> to vector<8x1x32xf32>
    %cst_32 = arith.constant 1.600000e+01 : f32
    %60 = vector.broadcast %cst_32 : f32 to vector<8x1x32xf32>
    %61 = arith.divf %59, %60 : vector<8x1x32xf32>
    %62 = vector.broadcast %61 : vector<8x1x32xf32> to vector<8x16x32xf32>
    %63 = arith.subf %57, %62 : vector<8x16x32xf32>
    %64 = vector.broadcast %61 : vector<8x1x32xf32> to vector<8x16x32xf32>
    %65 = arith.subf %57, %64 : vector<8x16x32xf32>
    %66 = arith.mulf %63, %65 : vector<8x16x32xf32>
    %cst_33 = arith.constant dense<0.000000e+00> : vector<8x32xf32>
    %67 = vector.multi_reduction <add>, %66, %cst_33 [1] : vector<8x16x32xf32> to vector<8x32xf32>
    %68 = vector.shape_cast %67 : vector<8x32xf32> to vector<8x1x32xf32>
    %cst_34 = arith.constant 1.600000e+01 : f32
    %69 = vector.broadcast %cst_34 : f32 to vector<8x1x32xf32>
    %70 = arith.divf %68, %69 : vector<8x1x32xf32>
    %71 = vector.broadcast %61 : vector<8x1x32xf32> to vector<8x16x32xf32>
    %72 = arith.subf %57, %71 : vector<8x16x32xf32>
    %cst_35 = arith.constant 9.99999974E-6 : f32
    %73 = vector.broadcast %cst_35 : f32 to vector<8x1x32xf32>
    %74 = arith.addf %70, %73 : vector<8x1x32xf32>
    %75 = math.rsqrt %74 : vector<8x1x32xf32>
    %76 = vector.broadcast %75 : vector<8x1x32xf32> to vector<8x16x32xf32>
    %77 = arith.mulf %72, %76 : vector<8x16x32xf32>
    %78 = vector.shape_cast %8 : vector<1x32xf32> to vector<1x1x32xf32>
    %79 = vector.broadcast %78 : vector<1x1x32xf32> to vector<8x16x32xf32>
    %80 = arith.mulf %77, %79 : vector<8x16x32xf32>
    %81 = vector.shape_cast %9 : vector<1x32xf32> to vector<1x1x32xf32>
    %82 = vector.broadcast %81 : vector<1x1x32xf32> to vector<8x16x32xf32>
    %83 = arith.addf %80, %82 : vector<8x16x32xf32>
    %84 = vector.shape_cast %83 : vector<8x16x32xf32> to vector<128x32xf32>
    %cst_36 = arith.constant dense<0.000000e+00> : vector<128x64xf32>
    %85 = tpu.matmul %84, %2, %cst_36 {dimension_numbers = #tpu.dot_dimension_numbers<[1], [0], [0], [1], [0, 0, 1, 1], [], []>} : vector<128x32xf32>, vector<32x64xf32>, vector<128x64xf32> -> vector<128x64xf32>
    %86 = vector.broadcast %12 : vector<1x64xf32> to vector<128x64xf32>
    %87 = arith.addf %85, %86 : vector<128x64xf32>
    %cst_37 = arith.constant 0.000000e+00 : f32
    %88 = vector.broadcast %cst_37 : f32 to vector<128x64xf32>
    %89 = arith.maximumf %87, %88 : vector<128x64xf32>
    %cst_38 = arith.constant dense<0.000000e+00> : vector<128x32xf32>
    %90 = tpu.matmul %89, %3, %cst_38 {dimension_numbers = #tpu.dot_dimension_numbers<[1], [0], [0], [1], [0, 0, 1, 1], [], []>} : vector<128x64xf32>, vector<64x32xf32>, vector<128x32xf32> -> vector<128x32xf32>
    %91 = vector.broadcast %7 : vector<1x32xf32> to vector<128x32xf32>
    %92 = arith.addf %90, %91 : vector<128x32xf32>
    %93 = arith.addf %84, %92 : vector<128x32xf32>
    %94 = vector.shape_cast %93 : vector<128x32xf32> to vector<8x16x32xf32>
    %cst_39 = arith.constant dense<0.000000e+00> : vector<8x32xf32>
    %95 = vector.multi_reduction <add>, %94, %cst_39 [1] : vector<8x16x32xf32> to vector<8x32xf32>
    %96 = vector.shape_cast %95 : vector<8x32xf32> to vector<8x1x32xf32>
    %cst_40 = arith.constant 1.600000e+01 : f32
    %97 = vector.broadcast %cst_40 : f32 to vector<8x1x32xf32>
    %98 = arith.divf %96, %97 : vector<8x1x32xf32>
    %99 = vector.broadcast %98 : vector<8x1x32xf32> to vector<8x16x32xf32>
    %100 = arith.subf %94, %99 : vector<8x16x32xf32>
    %101 = vector.broadcast %98 : vector<8x1x32xf32> to vector<8x16x32xf32>
    %102 = arith.subf %94, %101 : vector<8x16x32xf32>
    %103 = arith.mulf %100, %102 : vector<8x16x32xf32>
    %cst_41 = arith.constant dense<0.000000e+00> : vector<8x32xf32>
    %104 = vector.multi_reduction <add>, %103, %cst_41 [1] : vector<8x16x32xf32> to vector<8x32xf32>
    %105 = vector.shape_cast %104 : vector<8x32xf32> to vector<8x1x32xf32>
    %cst_42 = arith.constant 1.600000e+01 : f32
    %106 = vector.broadcast %cst_42 : f32 to vector<8x1x32xf32>
    %107 = arith.divf %105, %106 : vector<8x1x32xf32>
    %108 = vector.broadcast %98 : vector<8x1x32xf32> to vector<8x16x32xf32>
    %109 = arith.subf %94, %108 : vector<8x16x32xf32>
    %cst_43 = arith.constant 9.99999974E-6 : f32
    %110 = vector.broadcast %cst_43 : f32 to vector<8x1x32xf32>
    %111 = arith.addf %107, %110 : vector<8x1x32xf32>
    %112 = math.rsqrt %111 : vector<8x1x32xf32>
    %113 = vector.broadcast %112 : vector<8x1x32xf32> to vector<8x16x32xf32>
    %114 = arith.mulf %109, %113 : vector<8x16x32xf32>
    %115 = vector.shape_cast %10 : vector<1x32xf32> to vector<1x1x32xf32>
    %116 = vector.broadcast %115 : vector<1x1x32xf32> to vector<8x16x32xf32>
    %117 = arith.mulf %114, %116 : vector<8x16x32xf32>
    %118 = vector.shape_cast %11 : vector<1x32xf32> to vector<1x1x32xf32>
    %119 = vector.broadcast %118 : vector<1x1x32xf32> to vector<8x16x32xf32>
    %120 = arith.addf %117, %119 : vector<8x16x32xf32>
    %c0_44 = arith.constant 0 : index
    %c0_45 = arith.constant 0 : index
    %c0_46 = arith.constant 0 : index
    %121 = vector.load %arg5[%c0_44, %c0_45, %c0_46] : memref<8x16x32xf32, #tpu.memory_space<vmem>>, vector<8x16x32xf32>
    tpu.vector_store %arg5[%c0_44, %c0_45, %c0_46], %120 {strides = array<i32>} : memref<8x16x32xf32, #tpu.memory_space<vmem>>, vector<8x16x32xf32>,
    return
  }
  func.func @transform_0(%arg0: i32) -> (i32, i32, i32) {
    %c0_i32 = arith.constant 0 : i32
    %c0_i32_0 = arith.constant 0 : i32
    %c0_i32_1 = arith.constant 0 : i32
    return %arg0, %c0_i32, %c0_i32_0 : i32, i32, i32
  }
  func.func @transform_1(%arg0: i32) -> (i32, i32, i32) {
    %c0_i32 = arith.constant 0 : i32
    %c0_i32_0 = arith.constant 0 : i32
    %c0_i32_1 = arith.constant 0 : i32
    return %arg0, %c0_i32, %c0_i32_0 : i32, i32, i32
  }
  func.func @transform_2(%arg0: i32) -> (i32, i32) {
    %c0_i32 = arith.constant 0 : i32
    %c0_i32_0 = arith.constant 0 : i32
    %c0_i32_1 = arith.constant 0 : i32
    return %c0_i32, %c0_i32_0 : i32, i32
  }
  func.func @transform_3(%arg0: i32) -> (i32, i32) {
    %c0_i32 = arith.constant 0 : i32
    %c0_i32_0 = arith.constant 0 : i32
    %c0_i32_1 = arith.constant 0 : i32
    return %c0_i32, %c0_i32_0 : i32, i32
  }
  func.func @transform_4(%arg0: i32) -> (i32, i32, i32) {
    %c0_i32 = arith.constant 0 : i32
    %c0_i32_0 = arith.constant 0 : i32
    %c0_i32_1 = arith.constant 0 : i32
    return %arg0, %c0_i32, %c0_i32_0 : i32, i32, i32
  }
}

</mosaic_0001>

<bundles_post_ra>
// kernel: graph_transformer_layer.1
= control target key start
LH: loop header
LB: loop body
LE: loop exit
PB: predicated region body
PF: predicated region fallthrough
CT: control target
= control target key end

     0   :  { %9 = vsyncpa [#allocation3], 0  ;;  %s5991_s0 = inlined_call_operand.vmem [shape: f32[32,16,32], index: 0, kind: input, shape index: {}]   ;;  %s5992_s1 = inlined_call_operand.vmem [shape: f32[32,16,16], index: 1, kind: input, shape index: {}]   ;;  %s5993_s2 = inlined_call_operand.vmem [shape: f32[96,192], index: 2, kind: input, shape index: {}]   ;;  %s5994_s3 = inlined_call_operand.vmem [shape: f32[1,256], index: 3, kind: input, shape index: {}]   ;;  %s5995_s4 = inlined_call_operand.hbm [shape: f32[32,16,32], index: 4, kind: output, shape index: {}]  }
   0x1   :  { %11 = vsyncpa [#allocation3 + $0x1], 0  ;;  %s3816_s15 = smov 0   ;;  %s3818_s16 = smov 0  }
   0x2   :  { %s3820_s17 = smov 0   ;;  %s3822_s18 = smov 0  }
   0x3 LB: > { %s3837_s19 = sadd.s32 4294967295, %s3781_s18   ;;  %s3156_s20 = sadd.s32 4294967294, %s3781_s18   ;;  %s3781_s18 = sphi %s3822_s18, %s6160_s18   ;;  %s3777_s17 = sphi %s3820_s17, %s6159_s17   ;;  %s3773_s16 = sphi %s3818_s16, %s6158_s16   ;;  %s3769_s15 = sphi %s3816_s15, %s6157_s15  }
   0x4   : > { %s3841_s21 = sadd.s32 1, %s3781_s18   ;;  %s118_s22 = sadd.s32 1, %s3777_s17 }
   0x5   : > { %s115_s23 = ssub.s32 %s3781_s18, %s3841_s21  ;;  %p128_p0 = scmp.ne.s32.totalorder %s3777_s17, %s3773_s16 }
   0x6   : > { %p116_p1 = scmp.eq.s32.totalorder %s115_s23, 0  ;;  %p129_p2 = scmp.eq.s32.totalorder %s3837_s19, 3 }
   0x7   : > { %p134_p3 = scmp.ne.s32.totalorder %s3773_s16, %s3769_s15  ;;  %p135_p4 = scmp.eq.s32.totalorder %s3156_s20, 3 }
   0x8   : > { %s3852_s24 = scalar_select %p116_p1, %s3777_s17, %s118_s22  }
   0x9   : > { %p3854_p5 = por %p129_p2, %p128_p0  ;;  %p3858_p6 = por %p135_p4, %p134_p3 }
   0xa   : > { %p3159_p7 = scmp.ge.s32.totalorder %s3781_s18, 1  ;;  %p179_p8 = scmp.lt.s32.totalorder %s3781_s18, 5 }
   0xc   : > { %p180_p9 = pnand %p3159_p7, %p179_p8 }
   0xe   : > { %183 = sbr.rel (%p180_p9) target bundleno = 1453 (0x5ad), region = 36 }
  0x13   : > { %v230_v0 = vld [vmem:[%s5993_s2 + $0x30] sm:$0xff]  ;;  %v229_v1 = vld [vmem:[%s5993_s2 + $0x20] sm:$0xff]  ;;  %s3161_s5 = sshll.u32 %s3837_s19, 3  ;;  %vm261_vm0 = vcmask 261120   ;;  %s3783_s23 = smov 16   ;;  %vm1231_vm1 = vcmask 130048  }
  0x14   : > { %322 = vmatpush.msra.mxu0 %v230_v0  ;;  %3353 = vmatpush.msra.mxu3 %v230_v0  ;;  %p213_p10 = scmp.lt.s32.totalorder %s3161_s5, 31  ;;  %v228_v2 = vld [vmem:[%s5993_s2 + $0x10] sm:$0xff]  ;;  %v227_v3 = vld [vmem:[%s5993_s2] sm:$0xff]  ;;  %s3784_s27 = smov 32   ;;  %vm1264_vm2 = vcmask 392192   ;;  %vm1553_vm3 = vcmask 523264  }
  0x15   : > { %v3932_v21 = vld [vmem:[%s5993_s2 + $0xa0] sm:$0xff]  ;;  %s3785_s6 = smov 96   ;;  %v3968_v29 = vld [vmem:[%s5993_s2 + $0x50] sm:$0xff]  ;;  %s3786_s7 = smov 64  }
  0x16   : > { %323 = vmatpush.msra.mxu0 %v229_v1  ;;  %3354 = vmatpush.msra.mxu3 %v229_v1  ;;  %s6162_s5 = smov (!%p213_p10, %s3161_s5), 31  ;;  %6043 = vst [vmem:[#allocation6_spill] sm:$0xff] %v3932_v21  ;;  %v3937_v22 = vld [vmem:[%s5993_s2 + $0x80] sm:$0xff]  ;;  %v4010_v40 = vld [vmem:[%s5993_s2 + $0x70] sm:$0xff]  ;;  %s3787_s8 = smov 48  }
  0x17   : > { %s3349_s10 = sshll.u32 %s6162_s5, 4  ;;  %6044 = vst [vmem:[#allocation7_spill] sm:$0xff] %v3937_v22  ;;  %v3958_v27 = vld [vmem:[%s5993_s2 + $0x60] sm:$0xff]  ;;  %v4015_v41 = vld [vmem:[%s5993_s2 + $0x90] sm:$0xff]  ;;  %s3739_s5 = scalar_lea.hbm %s5995_s4, 512 }
  0x18   : > { %324 = vmatpush.msra.mxu0 %v228_v2  ;;  %3355 = vmatpush.msra.mxu3 %v228_v2  ;;  %s3883_s13 = scalar_lea.vmem %s5991_s0, %s3349_s10  ;;  %s3911_s22 = scalar_lea.vmem %s5992_s1, %s3349_s10  ;;  %6046 = vst [vmem:[#allocation9_spill] sm:$0xff] %v3958_v27  ;;  %v3963_v28 = vld [vmem:[%s5993_s2 + $0x40] sm:$0xff]  ;;  %v4046_v49 = vld [vmem:[%s5993_s2 + $0xb0] sm:$0xff] }
  0x19   : > { %v245_v4 = vld [vmem:[%s3883_s13] sm:$0xff]  ;;  %v246_v6 = vld [vmem:[%s3883_s13 + $0x8] sm:$0xff]  ;;  %v247_v8 = vld [vmem:[%s3883_s13 + $0x10] sm:$0xff]  ;;  %6047 = vst [vmem:[#allocation10_spill] sm:$0xff] %v3963_v28 }
  0x1a   : > { %325 = vmatpush.msra.mxu0 %v227_v3  ;;  %3356 = vmatpush.msra.mxu3 %v227_v3  ;;  %v257_v5 = vld [vmem:[%s3883_s13 + $0x60] sm:$0xff]  ;;  %v258_v7 = vld [vmem:[%s3883_s13 + $0x68] sm:$0xff]  ;;  %v259_v9 = vld [vmem:[%s3883_s13 + $0x70] sm:$0xff]  ;;  %6053 = vst [vmem:[#allocation16_spill] sm:$0xff] %v4010_v40 }
  0x1b   : > { %3167 = vmatmul.msk.f32.vlgmr.msra.gmra.mxu0 %vm261_vm0, %v245_v4  ;;  %3179 = vmatmul.msk.f32.vlgmr.msra.gmra.mxu3 %vm261_vm0, %v257_v5  ;;  %v248_v10 = vld [vmem:[%s3883_s13 + $0x18] sm:$0xff]  ;;  %v249_v12 = vld [vmem:[%s3883_s13 + $0x20] sm:$0xff]  ;;  %v250_v13 = vld [vmem:[%s3883_s13 + $0x28] sm:$0xff]  ;;  %6054 = vst [vmem:[#allocation17_spill] sm:$0xff] %v4015_v41 }
  0x1c   : > { %v260_v11 = vld [vmem:[%s3883_s13 + $0x78] sm:$0xff]  ;;  %v251_v14 = vld [vmem:[%s3883_s13 + $0x30] sm:$0xff]  ;;  %v3915_v16 = vld [vmem:[%s3911_s22] sm:$0xff]  ;;  %6058 = vst [vmem:[#allocation21_spill] sm:$0xff] %v4046_v49 }
  0x1d   : > { %v252_v15 = vld [vmem:[%s3883_s13 + $0x38] sm:$0xff]  ;;  %6042 = vst [vmem:[#allocation5_spill] sm:$0xff] %v3915_v16  ;;  %1087 = vrot.lane.b32.xlu1 %v3915_v16, %s3783_s23  ;;  %1135 = vrot.lane.b32.xlu2 %v3915_v16, %s3784_s27  ;;  %v253_v17 = vld [vmem:[%s3883_s13 + $0x40] sm:$0xff] }
  0x1e   : > { %v254_v18 = vld [vmem:[%s3883_s13 + $0x48] sm:$0xff]  ;;  %v255_v19 = vld [vmem:[%s3883_s13 + $0x50] sm:$0xff]  ;;  %v256_v20 = vld [vmem:[%s3883_s13 + $0x58] sm:$0xff] }
  0x23   : > { %3168 = vmatmul.msk.f32.gmra.mxu0 %vm261_vm0, %v246_v6  ;;  %3180 = vmatmul.msk.f32.gmra.mxu3 %vm261_vm0, %v258_v7 }
  0x2b   : > { %3169 = vmatmul.msk.f32.gmra.mxu0 %vm261_vm0, %v247_v8  ;;  %3181 = vmatmul.msk.f32.gmra.mxu3 %vm261_vm0, %v259_v9 }
  0x33   : > { %3170 = vmatmul.msk.f32.gmra.mxu0 %vm261_vm0, %v248_v10  ;;  %3182 = vmatmul.msk.f32.gmra.mxu3 %vm261_vm0, %v260_v11 }
  0x3b   : > { %3171 = vmatmul.msk.f32.gmra.mxu0 %vm261_vm0, %v249_v12 }
  0x43   : > { %3172 = vmatmul.msk.f32.gmra.mxu0 %vm261_vm0, %v250_v13 }
  0x4b   : > { %3173 = vmatmul.msk.f32.gmra.mxu0 %vm261_vm0, %v251_v14 }
  0x53   : > { %3174 = vmatmul.msk.f32.gmra.mxu0 %vm261_vm0, %v252_v15 }
  0x5b   : > { %3175 = vmatmul.msk.f32.gmra.mxu0 %vm261_vm0, %v253_v17 }
  0x63   : > { %3176 = vmatmul.msk.f32.gmra.mxu0 %vm261_vm0, %v254_v18 }
  0x6b   : > { %3177 = vmatmul.msk.f32.gmra.mxu0 %vm261_vm0, %v255_v19 }
  0x73   : > { %3178 = vmatmul.msk.f32.gmra.mxu0 %vm261_vm0, %v256_v20 }
  0x98   : > { %v3939_v23 = vpop.f32.mrf.mxu0 }
  0x99   : > { %v3943_v24 = vmul.f32 %v3939_v23, %v3932_v21  ;;  %v3947_v25 = vmul.f32 %v3939_v23, %v3937_v22  ;;  %v377_v32 = vmul.f32 %v3939_v23, %v3958_v27  ;;  %v3982_v33 = vmul.f32 %v3939_v23, %v3963_v28 }
  0x9b   : > { %459 = vrot.lane.b32.xlu0 %v3943_v24, %s3785_s6  ;;  %455 = vrot.lane.b32.xlu1 %v3947_v25, %s3785_s6 }
  0x9e   : > { %v3953_v26 = vpop.f32.mrf.mxu3 }
  0x9f   : > { %6045 = vst [vmem:[#allocation8_spill] sm:$0xff] %v3953_v26  ;;  %v3972_v30 = vmul.f32 %v3953_v26, %v3932_v21  ;;  %v3995_v36 = vmul.f32 %v3953_v26, %v3958_v27  ;;  %v3999_v37 = vmul.f32 %v3953_v26, %v3963_v28  ;;  %v4003_v38 = vmul.f32 %v3953_v26, %v3937_v22 }
  0xa0   : > { %v3974_v31 = vpop.f32.mrf.mxu0 }
  0xa1   : > { %6048 = vst [vmem:[#allocation11_spill] sm:$0xff] %v3972_v30  ;;  %873 = vrot.lane.b32.xlu2 %v3972_v30, %s3785_s6  ;;  %v3986_v34 = vmul.f32 %v3974_v31, %v3968_v29  ;;  %v378_v50 = vmul.f32 %v3974_v31, %v4010_v40  ;;  %v382_v52 = vmul.f32 %v3974_v31, %v4046_v49 }
  0xa2   : > { %6049 = vst [vmem:[#allocation12_spill] sm:$0xff] %v3995_v36  ;;  %v380_v53 = vmul.f32 %v3974_v31, %v4015_v41 }
  0xa3   : > { %451 = vrot.lane.b32.xlu0 %v377_v32, %s3785_s6  ;;  %447 = vrot.lane.b32.xlu1 %v3982_v33, %s3785_s6  ;;  %6050 = vst [vmem:[#allocation13_spill] sm:$0xff] %v3999_v37  ;;  %v3412_v3 = vpack.i.bf16 %v3943_v24, %v382_v52  ;;  %v3422_v5 = vpack.i.bf16 %v377_v32, %v378_v50 }
  0xa4   : > { %6051 = vst [vmem:[#allocation14_spill] sm:$0xff] %v4003_v38  ;;  %v3417_v19 = vpack.i.bf16 %v3947_v25, %v380_v53 }
  0xa6   : > { %v4005_v39 = vpop.f32.mrf.mxu3 }
  0xa7   : > { %6052 = vst [vmem:[#allocation15_spill] sm:$0xff] %v4005_v39  ;;  %v4019_v42 = vmul.f32 %v4005_v39, %v4015_v41  ;;  %v4023_v43 = vmul.f32 %v4005_v39, %v3968_v29  ;;  %v4027_v44 = vmul.f32 %v4005_v39, %v4010_v40  ;;  %v4151_v20 = vmul.f32 %v4005_v39, %v4046_v49 }
  0xa8   : > { %v4029_v45 = vpop.f32.mrf.mxu0 }
  0xa9   : > { %6055 = vst [vmem:[#allocation18_spill] sm:$0xff] %v4019_v42  ;;  %865 = vrot.lane.b32.xlu2 %v3995_v36, %s3785_s6  ;;  %v4061_v55 = vmul.f32 %v4029_v45, %v3932_v21  ;;  %v4065_v56 = vmul.f32 %v4029_v45, %v3963_v28  ;;  %v4087_v61 = vmul.f32 %v4029_v45, %v3937_v22 }
  0xaa   : > { %6056 = vst [vmem:[#allocation19_spill] sm:$0xff] %v4023_v43  ;;  %v4091_v62 = vmul.f32 %v4029_v45, %v3958_v27 }
  0xab   : > { %6057 = vst [vmem:[#allocation20_spill] sm:$0xff] %v4027_v44  ;;  %861 = vrot.lane.b32.xlu0 %v3999_v37, %s3785_s6  ;;  %869 = vrot.lane.b32.xlu1 %v4003_v38, %s3785_s6 }
  0xac   : > { %6069 = vst [vmem:[#allocation32_spill] sm:$0xff] %v4151_v20 }
  0xae   : > { %v4056_v54 = vpop.f32.mrf.mxu3 }
  0xaf   : > { %6059 = vst [vmem:[#allocation22_spill] sm:$0xff] %v4056_v54  ;;  %v4108_v6 = vmul.f32 %v4056_v54, %v3958_v27  ;;  %v4112_v7 = vmul.f32 %v4056_v54, %v3937_v22  ;;  %v4116_v8 = vmul.f32 %v4056_v54, %v3963_v28  ;;  %v4138_v13 = vmul.f32 %v4056_v54, %v3932_v21 }
  0xb0   : > { %v4050_v51 = vpop.f32.mrf.mxu0 }
  0xb1   : > { %453 = vrot.lane.b32.xlu2 %v378_v50, %s3785_s6  ;;  %v4069_v57 = vmul.f32 %v4050_v51, %v4046_v49  ;;  %v4073_v58 = vmul.f32 %v4050_v51, %v3968_v29  ;;  %v4077_v59 = vmul.f32 %v4050_v51, %v4015_v41  ;;  %v4081_v60 = vmul.f32 %v4050_v51, %v4010_v40 }
  0xb2   : > { %6061 = vst [vmem:[#allocation24_spill] sm:$0xff] %v4108_v6 }
  0xb3   : > { %461 = vrot.lane.b32.xlu0 %v382_v52, %s3785_s6  ;;  %457 = vrot.lane.b32.xlu1 %v380_v53, %s3785_s6  ;;  %6062 = vst [vmem:[#allocation25_spill] sm:$0xff] %v4112_v7 }
  0xb4   : > { %6063 = vst [vmem:[#allocation26_spill] sm:$0xff] %v4116_v8 }
  0xb5   : > { %6068 = vst [vmem:[#allocation31_spill] sm:$0xff] %v4138_v13 }
  0xb6   : > { %v4102_v4 = vpop.f32.mrf.mxu3 }
  0xb7   : > { %6060 = vst [vmem:[#allocation23_spill] sm:$0xff] %v4102_v4  ;;  %v4120_v9 = vmul.f32 %v4102_v4, %v4046_v49  ;;  %v4124_v10 = vmul.f32 %v4102_v4, %v4015_v41  ;;  %v4128_v11 = vmul.f32 %v4102_v4, %v4010_v40  ;;  %v4132_v12 = vmul.f32 %v4102_v4, %v3968_v29  ;;  %v4336_v4 = vpop.permute.xlu1 %1087 }
  0xb8   : > { %v4160_v24 = vpop.f32.mrf.mxu0  ;;  %6077 = vst [vmem:[#allocation40_spill] sm:$0xff] %v4336_v4 }
  0xb9   : > { %449 = vrot.lane.b32.xlu2 %v3986_v34, %s3785_s6  ;;  %6064 = vst [vmem:[#allocation27_spill] sm:$0xff] %v4120_v9  ;;  %v4176_v32 = vmul.f32 %v4160_v24, %v3932_v21  ;;  %v4184_v52 = vmul.f32 %v4160_v24, %v3958_v27  ;;  %v4188_v53 = vmul.f32 %v4160_v24, %v3963_v28 }
  0xba   : > { %6065 = vst [vmem:[#allocation28_spill] sm:$0xff] %v4124_v10  ;;  %v4206_v18 = vmul.f32 %v4160_v24, %v3937_v22 }
  0xbb   : > { %6066 = vst [vmem:[#allocation29_spill] sm:$0xff] %v4128_v11  ;;  %3413 = vrot.lane.b32.xlu1 %v3412_v3, %s3786_s7  ;;  %3423 = vrot.lane.b32.xlu0 %v3422_v5, %s3786_s7 }
  0xbc   : > { %6067 = vst [vmem:[#allocation30_spill] sm:$0xff] %v4132_v12 }
  0xc0   : > { %v4172_v25 = vpop.f32.mrf.mxu0 }
  0xc1   : > { %3418 = vrot.lane.b32.xlu2 %v3417_v19, %s3786_s7  ;;  %v4180_v50 = vmul.f32 %v4172_v25, %v4015_v41  ;;  %v4192_v3 = vmul.f32 %v4172_v25, %v4046_v49  ;;  %v4196_v5 = vmul.f32 %v4172_v25, %v4010_v40  ;;  %v4200_v19 = vmul.f32 %v4172_v25, %v3968_v29 }
  0xc3   : > { %871 = vrot.lane.b32.xlu1 %v4019_v42, %s3785_s6  ;;  %875 = vrot.lane.b32.xlu0 %v4151_v20, %s3785_s6 }
  0xc8   : > { %v4220_v47 = vpop.f32.mrf.mxu0 }
  0xc9   : > { %524 = vrot.lane.b32.xlu2 %v4087_v61, %s3785_s6  ;;  %v4234_v48 = vmul.f32 %v4220_v47, %v3932_v21  ;;  %v4238_v14 = vmul.f32 %v4220_v47, %v3937_v22  ;;  %v4242_v15 = vmul.f32 %v4220_v47, %v3963_v28  ;;  %v4250_v2 = vmul.f32 %v4220_v47, %v3958_v27 }
  0xcb   : > { %863 = vrot.lane.b32.xlu1 %v4023_v43, %s3785_s6  ;;  %867 = vrot.lane.b32.xlu0 %v4027_v44, %s3785_s6  ;;  %v4278_v43 = vpop.permute.xlu2 %1135 }
  0xcc   : > { %6071 = vst [vmem:[#allocation34_spill] sm:$0xff] %v4278_v43 }
  0xd0   : > { %v4228_v46 = vpop.f32.mrf.mxu0 }
  0xd1   : > { %520 = vrot.lane.b32.xlu2 %v4091_v62, %s3785_s6  ;;  %6070 = vst [vmem:[#allocation33_spill] sm:$0xff] %v4228_v46  ;;  %v4246_v17 = vmul.f32 %v4228_v46, %v4046_v49  ;;  %v4254_v1 = vmul.f32 %v4228_v46, %v4010_v40  ;;  %v4258_v0 = vmul.f32 %v4228_v46, %v3968_v29 }
  0xd2   : > { %v4262_v63 = vmul.f32 %v4228_v46, %v4015_v41 }
  0xd3   : > { %528 = vrot.lane.b32.xlu1 %v4061_v55, %s3785_s6  ;;  %516 = vrot.lane.b32.xlu0 %v4065_v56, %s3785_s6 }
  0xd8   : > { %v4284_v35 = vpop.f32.mrf.mxu0 }
  0xd9   : > { %942 = vrot.lane.b32.xlu2 %v4138_v13, %s3785_s6  ;;  %6072 = vst [vmem:[#allocation35_spill] sm:$0xff] %v4284_v35 }
  0xdb   : > { %934 = vrot.lane.b32.xlu1 %v4108_v6, %s3785_s6  ;;  %938 = vrot.lane.b32.xlu0 %v4112_v7, %s3785_s6 }
  0xe0   : > { %v4294_v7 = vpop.f32.mrf.mxu0 }
  0xe1   : > { %530 = vrot.lane.b32.xlu2 %v4069_v57, %s3785_s6  ;;  %6074 = vst [vmem:[#allocation37_spill] sm:$0xff] %v4294_v7  ;;  %v4316_v37 = vmul.f32 %v4294_v7, %v4015_v41  ;;  %v4324_v13 = vmul.f32 %v4294_v7, %v4010_v40  ;;  %v4328_v44 = vmul.f32 %v4294_v7, %v3968_v29 }
  0xe3   : > { %930 = vrot.lane.b32.xlu0 %v4116_v8, %s3785_s6  ;;  %518 = vrot.lane.b32.xlu1 %v4073_v58, %s3785_s6  ;;  %v4300_v8 = vmul.f32 %v4284_v35, %v3937_v22 }
  0xe5   : > { %6075 = vst [vmem:[#allocation38_spill] sm:$0xff] %v4300_v8 }
  0xe8   : > { %v4358_v42 = vpop.f32.mrf.mxu0 }
  0xe9   : > { %944 = vrot.lane.b32.xlu2 %v4120_v9, %s3785_s6  ;;  %v4320_v9 = vmul.f32 %v4284_v35, %v3963_v28  ;;  %6078 = vst [vmem:[#allocation41_spill] sm:$0xff] %v4358_v42  ;;  %v4380_v46 = vmul.f32 %v4358_v42, %v3937_v22 }
  0xeb   : > { %526 = vrot.lane.b32.xlu0 %v4077_v59, %s3785_s6  ;;  %940 = vrot.lane.b32.xlu1 %v4124_v10, %s3785_s6  ;;  %v4312_v10 = vmul.f32 %v4294_v7, %v4046_v49 }
  0xf1   : > { %936 = vrot.lane.b32.xlu2 %v4128_v11, %s3785_s6  ;;  %v4308_v11 = vmul.f32 %v4284_v35, %v3932_v21 }
  0xf3   : > { %522 = vrot.lane.b32.xlu0 %v4081_v60, %s3785_s6  ;;  %593 = vrot.lane.b32.xlu1 %v4206_v18, %s3785_s6 }
  0xf9   : > { %932 = vrot.lane.b32.xlu2 %v4132_v12, %s3785_s6  ;;  %v4304_v12 = vmul.f32 %v4284_v35, %v3958_v27  ;;  %v4372_v35 = vpop.f32.mrf.mxu0 }
  0xfb   : > { %v4288_v6 = vpop.permute.xlu2 %873  ;;  %597 = vrot.lane.b32.xlu0 %v4176_v32, %s3785_s6  ;;  %585 = vrot.lane.b32.xlu1 %v4188_v53, %s3785_s6 }
  0xfc   : > { %6073 = vst [vmem:[#allocation36_spill] sm:$0xff] %v4288_v6 }
 0x101   : > { %595 = vrot.lane.b32.xlu2 %v4180_v50, %s3785_s6 }
 0x103   : > { %v4330_v36 = vpop.permute.xlu2 %865  ;;  %589 = vrot.lane.b32.xlu0 %v4184_v52, %s3785_s6  ;;  %599 = vrot.lane.b32.xlu1 %v4192_v3, %s3785_s6 }
 0x104   : > { %6076 = vst [vmem:[#allocation39_spill] sm:$0xff] %v4330_v36  ;;  %v4376_v36 = vmul.f32 %v4372_v35, %v4046_v49  ;;  %v4398_v49 = vmul.f32 %v4372_v35, %v4010_v40 }
 0x109   : > { %591 = vrot.lane.b32.xlu2 %v4196_v5, %s3785_s6 }
 0x10b   : > { %v454_v38 = vpop.permute.xlu2 %453  ;;  %666 = vrot.lane.b32.xlu0 %v4234_v48, %s3785_s6  ;;  %662 = vrot.lane.b32.xlu1 %v4238_v14, %s3785_s6 }
 0x10d   : > { %v460_v43 = vpop.permute.xlu0 %459  ;;  %v456_v4 = vpop.permute.xlu1 %455 }
 0x111   : > { %587 = vrot.lane.b32.xlu2 %v4200_v19, %s3785_s6 }
 0x113   : > { %v450_v30 = vpop.permute.xlu2 %449  ;;  %654 = vrot.lane.b32.xlu0 %v4242_v15, %s3785_s6  ;;  %668 = vrot.lane.b32.xlu1 %v4246_v17, %s3785_s6 }
 0x115   : > { %v452_v54 = vpop.permute.xlu0 %451  ;;  %v448_v20 = vpop.permute.xlu1 %447 }
 0x119   : > { %658 = vrot.lane.b32.xlu2 %v4250_v2, %s3785_s6 }
 0x11b   : > { %v4362_v39 = vpop.permute.xlu2 %3418  ;;  %660 = vrot.lane.b32.xlu0 %v4254_v1, %s3785_s6  ;;  %656 = vrot.lane.b32.xlu1 %v4258_v0, %s3785_s6 }
 0x11c   : > { %6079 = vst [vmem:[#allocation42_spill] sm:$0xff] %v4362_v39  ;;  %v4386_v39 = vmul.f32 %v4358_v42, %v3932_v21 }
 0x11d   : > { %v4368_v7 = vpop.permute.xlu0 %861  ;;  %v4370_v26 = vpop.permute.xlu1 %869 }
 0x11e   : > { %6080 = vst [vmem:[#allocation43_spill] sm:$0xff] %v4368_v7  ;;  %v4390_v7 = vmul.f32 %v4358_v42, %v3958_v27 }
 0x11f   : > { %6081 = vst [vmem:[#allocation44_spill] sm:$0xff] %v4370_v26  ;;  %v4394_v26 = vmul.f32 %v4372_v35, %v4015_v41 }
 0x121   : > { %664 = vrot.lane.b32.xlu2 %v4262_v63, %s3785_s6 }
 0x123   : > { %v4400_v22 = vpop.permute.xlu2 %524  ;;  %731 = vrot.lane.b32.xlu0 %v4300_v8, %s3785_s6  ;;  %727 = vrot.lane.b32.xlu1 %v4304_v12, %s3785_s6 }
 0x125   : > { %v462_v6 = vpop.permute.xlu0 %461  ;;  %v458_v40 = vpop.permute.xlu1 %457 }
 0x126   : > { %3183 = vmatpush.xpose.msk.msrb.mxu3 %vm261_vm0, %v462_v6  ;;  %v6083_v6 = vpack.i.bf16 %v3982_v33, %v3986_v34 }
 0x129   : > { %735 = vrot.lane.b32.xlu2 %v4308_v11, %s3785_s6 }
 0x12a   : > { %3184 = vmatpush.xpose.msk.msrb.mxu3 %vm261_vm0, %v460_v43 }
 0x12b   : > { %v4416_v8 = vpop.permute.xlu2 %520  ;;  %737 = vrot.lane.b32.xlu0 %v4312_v10, %s3785_s6  ;;  %733 = vrot.lane.b32.xlu1 %v4316_v37, %s3785_s6 }
 0x12d   : > { %v4422_v21 = vpop.permute.xlu1 %3413  ;;  %v4424_v41 = vpop.permute.xlu0 %3423 }
 0x12e   : > { %6082 = vst [vmem:[#allocation45_spill] sm:$0xff] %v4424_v41  ;;  %3185 = vmatpush.xpose.msk.msrb.mxu3 %vm261_vm0, %v458_v40 }
 0x131   : > { %723 = vrot.lane.b32.xlu2 %v4320_v9, %s3785_s6 }
 0x132   : > { %3186 = vmatpush.xpose.msk.msrb.mxu3 %vm261_vm0, %v456_v4 }
 0x133   : > { %v4430_v43 = vpop.permute.xlu2 %942  ;;  %3428 = vrot.lane.b32.xlu0 %v6083_v6, %s3786_s7  ;;  %1183 = vrot.lane.b32.xlu1 %v3915_v16, %s3787_s8 }
 0x135   : > { %v4438_v27 = vpop.permute.xlu1 %871  ;;  %v4440_v41 = vpop.permute.xlu0 %875 }
 0x136   : > { %3187 = vmatpush.xpose.msk.msrb.mxu3 %vm261_vm0, %v454_v38  ;;  %v4460_v38 = vmul.f32 %v4358_v42, %v3963_v28  ;;  %v4507_v28 = vmul.f32 %v4372_v35, %v3968_v29 }
 0x138   : > { %6084 = vst [vmem:[#allocation46_spill] sm:$0xff] %v4460_v38 }
 0x139   : > { %729 = vrot.lane.b32.xlu2 %v4324_v13, %s3785_s6 }
 0x13a   : > { %3188 = vmatpush.xpose.msk.msrb.mxu3 %vm261_vm0, %v452_v54 }
 0x13b   : > { %v531_v40 = vpop.permute.xlu2 %530  ;;  %725 = vrot.lane.b32.xlu0 %v4328_v44, %s3785_s6  ;;  %804 = vrot.lane.b32.xlu1 %v4386_v39, %s3785_s6 }
 0x13d   : > { %v4450_v33 = vpop.permute.xlu1 %863  ;;  %v4452_v34 = vpop.permute.xlu0 %867 }
 0x13e   : > { %3189 = vmatpush.xpose.msk.msrb.mxu3 %vm261_vm0, %v450_v30 }
 0x141   : > { %806 = vrot.lane.b32.xlu2 %v4376_v36, %s3785_s6 }
 0x142   : > { %3190 = vmatpush.xpose.msk.msrb.mxu3 %vm261_vm0, %v448_v20  ;;  %v6085_v20 = vpack.i.bf16 %v4061_v55, %v4069_v57 }
 0x143   : > { %v4463_v54 = vpop.permute.xlu2 %944  ;;  %800 = vrot.lane.b32.xlu1 %v4380_v46, %s3785_s6  ;;  %792 = vrot.lane.b32.xlu0 %v4460_v38, %s3785_s6  ;;  %v6088_v38 = vpack.i.bf16 %v4091_v62, %v4081_v60  ;;  %v6089_v60 = vpack.i.bf16 %v4065_v56, %v4073_v58 }
 0x145   : > { %3191 = vmatmul.msk.f32.vlgmr.msrb.gmra.mxu3 %vm261_vm0, %v3939_v23  ;;  %v529_v30 = vpop.permute.xlu1 %528  ;;  %v517_v4 = vpop.permute.xlu0 %516 }
 0x146   : > { %3193 = vmatpush.xpose.msk.msra.mxu3 %vm261_vm0, %v531_v40 }
 0x149   : > { %3433 = vrot.lane.b32.xlu2 %v6085_v20, %s3786_s7  ;;  %v6087_v20 = vpack.i.bf16 %v4087_v61, %v4077_v59  ;;  %v4519_v59 = vld [vmem:[%s3911_s22 + $0x10] sm:$0xff] }
 0x14a   : > { %3194 = vmatpush.xpose.msk.msra.mxu3 %vm261_vm0, %v529_v30  ;;  %v4489_v30 = vld [vmem:[%s3911_s22 + $0x8] sm:$0xff] }
 0x14b   : > { %v4476_v6 = vpop.permute.xlu2 %936  ;;  %796 = vrot.lane.b32.xlu1 %v4390_v7, %s3785_s6  ;;  %802 = vrot.lane.b32.xlu0 %v4394_v26, %s3785_s6 }
 0x14d   : > { %3192 = vmatmul.msk.f32.gmra.mxu3 %vm261_vm0, %v3974_v31  ;;  %v4484_v23 = vpop.permute.xlu1 %934  ;;  %v4486_v40 = vpop.permute.xlu0 %938 }
 0x151   : > { %798 = vrot.lane.b32.xlu2 %v4398_v49, %s3785_s6 }
 0x153   : > { %v4493_v55 = vpop.permute.xlu2 %932  ;;  %1137 = vrot.lane.b32.xlu1 %v4489_v30, %s3784_s27  ;;  %1089 = vrot.lane.b32.xlu0 %v4489_v30, %s3783_s23 }
 0x155   : > { %v4499_v57 = vpop.permute.xlu0 %930  ;;  %v519_v31 = vpop.permute.xlu1 %518 }
 0x156   : > { %6086 = vst [vmem:[#allocation47_spill] sm:$0xff] %v4499_v57 }
 0x159   : > { %3438 = vrot.lane.b32.xlu2 %v6087_v20, %s3786_s7 }
 0x15b   : > { %v596_v16 = vpop.permute.xlu2 %595  ;;  %3443 = vrot.lane.b32.xlu1 %v6088_v38, %s3786_s7  ;;  %794 = vrot.lane.b32.xlu0 %v4507_v28, %s3785_s6 }
 0x15d   : > { %v527_v57 = vpop.permute.xlu0 %526  ;;  %v4515_v42 = vpop.permute.xlu1 %940 }
 0x15e   : > { %3195 = vmatpush.xpose.msk.msra.mxu3 %vm261_vm0, %v527_v57  ;;  %v4533_v57 = vld [vmem:[%s3911_s22 + $0x18] sm:$0xff] }
 0x15f   : > { %6090 = vst [vmem:[#allocation48_spill] sm:$0xff] %v4533_v57 }
 0x161   : > { %1091 = vrot.lane.b32.xlu2 %v4519_v59, %s3783_s23 }
 0x162   : > { %3196 = vmatpush.xpose.msk.msra.mxu3 %vm261_vm0, %v4400_v22 }
 0x163   : > { %v592_v61 = vpop.permute.xlu2 %591  ;;  %3448 = vrot.lane.b32.xlu1 %v6089_v60, %s3786_s7  ;;  %1185 = vrot.lane.b32.xlu0 %v4489_v30, %s3787_s8 }
 0x165   : > { %v523_v62 = vpop.permute.xlu0 %522  ;;  %v594_v38 = vpop.permute.xlu1 %593 }
 0x166   : > { %3197 = vmatpush.xpose.msk.msra.mxu3 %vm261_vm0, %v523_v62 }
 0x169   : > { %1187 = vrot.lane.b32.xlu2 %v4519_v59, %s3787_s8 }
 0x16a   : > { %3198 = vmatpush.xpose.msk.msra.mxu3 %vm261_vm0, %v4416_v8  ;;  %v6091_v8 = vpack.i.bf16 %v4176_v32, %v4192_v3 }
 0x16b   : > { %v588_v22 = vpop.permute.xlu2 %587  ;;  %1093 = vrot.lane.b32.xlu1 %v4533_v57, %s3783_s23  ;;  %1139 = vrot.lane.b32.xlu0 %v4519_v59, %s3784_s27 }
 0x16d   : > { %v598_v56 = vpop.permute.xlu0 %597  ;;  %v586_v58 = vpop.permute.xlu1 %585 }
 0x16e   : > { %3199 = vmatpush.xpose.msk.msra.mxu3 %vm261_vm0, %v519_v31  ;;  %v4557_v31 = vld [vmem:[%s3911_s22 + $0x20] sm:$0xff] }
 0x171   : > { %1141 = vrot.lane.b32.xlu2 %v4533_v57, %s3784_s27 }
 0x172   : > { %3200 = vmatpush.xpose.msk.msra.mxu3 %vm261_vm0, %v517_v4  ;;  %v6092_v4 = vpack.i.bf16 %v4184_v52, %v4196_v5  ;;  %v6094_v52 = vpack.i.bf16 %v4188_v53, %v4200_v19 }
 0x173   : > { %v659_v20 = vpop.permute.xlu2 %658  ;;  %1189 = vrot.lane.b32.xlu1 %v4533_v57, %s3787_s8  ;;  %3453 = vrot.lane.b32.xlu0 %v6091_v8, %s3786_s7 }
 0x175   : > { %3201 = vmatmul.msk.f32.vlgmr.msra.gmra.mxu3 %vm261_vm0, %v4029_v45  ;;  %v590_v60 = vpop.permute.xlu0 %589  ;;  %v600_v62 = vpop.permute.xlu1 %599  ;;  %v6093_v45 = vpack.i.bf16 %v4206_v18, %v4180_v50  ;;  %v6095_v18 = vpack.i.bf16 %v4234_v48, %v4246_v17  ;;  %v6096_v17 = vpack.i.bf16 %v4238_v14, %v4262_v63 }
 0x176   : > { %3203 = vmatpush.xpose.msk.msrb.mxu3 %vm261_vm0, %v600_v62  ;;  %v4676_v62 = vld [vmem:[%s3911_s22 + $0x40] sm:$0xff] }
 0x179   : > { %3463 = vrot.lane.b32.xlu2 %v6092_v4, %s3786_s7 }
 0x17a   : > { %3204 = vmatpush.xpose.msk.msrb.mxu3 %vm261_vm0, %v598_v56 }
 0x17b   : > { %v665_v57 = vpop.permute.xlu2 %664  ;;  %1143 = vrot.lane.b32.xlu1 %v4557_v31, %s3784_s27  ;;  %3458 = vrot.lane.b32.xlu0 %v6093_v45, %s3786_s7 }
 0x17d   : > { %3202 = vmatmul.msk.f32.gmra.mxu3 %vm261_vm0, %v4050_v51  ;;  %v667_v32 = vpop.permute.xlu0 %666  ;;  %v663_v3 = vpop.permute.xlu1 %662 }
 0x17e   : > { %3205 = vmatpush.xpose.msk.msrb.mxu3 %vm261_vm0, %v596_v16  ;;  %v4587_v16 = vld [vmem:[%s3911_s22 + $0x28] sm:$0xff] }
 0x181   : > { %3468 = vrot.lane.b32.xlu2 %v6094_v52, %s3786_s7 }
 0x182   : > { %3206 = vmatpush.xpose.msk.msrb.mxu3 %vm261_vm0, %v594_v38 }
 0x183   : > { %v736_v5 = vpop.permute.xlu2 %735  ;;  %3473 = vrot.lane.b32.xlu1 %v6095_v18, %s3786_s7  ;;  %1095 = vrot.lane.b32.xlu0 %v4557_v31, %s3783_s23  ;;  %v6111_v18 = vpack.i.bf16 %v4380_v46, %v4394_v26  ;;  %v6113_v26 = vpack.i.bf16 %v4390_v7, %v4398_v49  ;;  %v6114_v46 = vld [vmem:[#allocation15_spill] sm:$0xff]  ;;  %v6115_v49 = vpack.i.bf16 %v4386_v39, %v4376_v36  ;;  %v6116_v39 = vld [vmem:[#allocation32_spill] sm:$0xff] }
 0x185   : > { %v655_v51 = vpop.permute.xlu0 %654  ;;  %v669_v50 = vpop.permute.xlu1 %668 }
 0x186   : > { %3207 = vmatpush.xpose.msk.msrb.mxu3 %vm261_vm0, %v592_v61  ;;  %3213 = vmatpush.xpose.msk.msra.mxu1 %vm261_vm0, %v669_v50  ;;  %v4604_v61 = vld [vmem:[%s3911_s22 + $0x30] sm:$0xff] }
 0x189   : > { %1097 = vrot.lane.b32.xlu2 %v4587_v16, %s3783_s23 }
 0x18a   : > { %3208 = vmatpush.xpose.msk.msrb.mxu3 %vm261_vm0, %v590_v60  ;;  %3214 = vmatpush.xpose.msk.msra.mxu1 %vm261_vm0, %v667_v32  ;;  %v6107_v32 = vld [vmem:[#allocation39_spill] sm:$0xff] }
 0x18b   : > { %v4593_v48 = vpop.permute.xlu2 %723  ;;  %3478 = vrot.lane.b32.xlu1 %v6096_v17, %s3786_s7  ;;  %1191 = vrot.lane.b32.xlu0 %v4557_v31, %s3787_s8 }
 0x18d   : > { %v661_v53 = vpop.permute.xlu0 %660  ;;  %v657_v19 = vpop.permute.xlu1 %656 }
 0x18e   : > { %3209 = vmatpush.xpose.msk.msrb.mxu3 %vm261_vm0, %v588_v22  ;;  %3215 = vmatpush.xpose.msk.msra.mxu1 %vm261_vm0, %v665_v57  ;;  %v6097_v22 = vpack.i.bf16 %v4250_v2, %v4254_v1  ;;  %v6099_v2 = vpack.i.bf16 %v4242_v15, %v4258_v0  ;;  %v6104_v15 = vld [vmem:[#allocation33_spill] sm:$0xff] }
 0x191   : > { %1193 = vrot.lane.b32.xlu2 %v4587_v16, %s3787_s8 }
 0x192   : > { %3210 = vmatpush.xpose.msk.msrb.mxu3 %vm261_vm0, %v586_v58  ;;  %3216 = vmatpush.xpose.msk.msra.mxu1 %vm261_vm0, %v663_v3  ;;  %v4632_v58 = vld [vmem:[%s3911_s22 + $0x38] sm:$0xff] }
 0x193   : > { %v730_v63 = vpop.permute.xlu2 %729  ;;  %1099 = vrot.lane.b32.xlu1 %v4604_v61, %s3783_s23  ;;  %1145 = vrot.lane.b32.xlu0 %v4587_v16, %s3784_s27 }
 0x195   : > { %3211 = vmatmul.msk.f32.vlgmr.msrb.gmra.mxu3 %vm261_vm0, %v4160_v24  ;;  %v732_v14 = vpop.permute.xlu0 %731  ;;  %v728_v38 = vpop.permute.xlu1 %727 }
 0x196   : > { %3217 = vmatpush.xpose.msk.msra.mxu1 %vm261_vm0, %v661_v53  ;;  %v3415_v53 = vunpack.i.l.bf16 %v4422_v21 }
 0x199   : > { %1147 = vrot.lane.b32.xlu2 %v4604_v61, %s3784_s27 }
 0x19a   : > { %3218 = vmatpush.xpose.msk.msra.mxu1 %vm261_vm0, %v659_v20  ;;  %v6098_v20 = vpack.i.bf16 %v4308_v11, %v4312_v10 }
 0x19b   : > { %1195 = vrot.lane.b32.xlu1 %v4604_v61, %s3787_s8  ;;  %v807_v57 = vpop.permute.xlu2 %806  ;;  %3483 = vrot.lane.b32.xlu0 %v6097_v22, %s3786_s7  ;;  %v6119_v22 = vld [vmem:[#allocation41_spill] sm:$0xff] }
 0x19c   : > { %3233 = vmatpush.xpose.msk.msra.mxu3 %vm261_vm0, %v807_v57 }
 0x19d   : > { %3212 = vmatmul.msk.f32.gmra.mxu3 %vm261_vm0, %v4172_v25  ;;  %v738_v24 = vpop.permute.xlu0 %737  ;;  %v734_v56 = vpop.permute.xlu1 %733  ;;  %v6101_v25 = vld [vmem:[#allocation38_spill] sm:$0xff] }
 0x19e   : > { %3219 = vmatpush.xpose.msk.msra.mxu1 %vm261_vm0, %v657_v19  ;;  %3223 = vmatpush.xpose.msk.msra.mxu2 %vm261_vm0, %v738_v24  ;;  %v6102_v8 = vpack.i.bf16 %v6101_v25, %v4316_v37  ;;  %v3527_v19 = vpack.i.bf16 %v4507_v28, %v6116_v39  ;;  %v6120_v24 = vld [vmem:[#allocation6_spill] sm:$0xff]  ;;  %v6122_v25 = vld [vmem:[#allocation47_spill] sm:$0xff]  ;;  %v6133_v39 = vld [vmem:[#allocation40_spill] sm:$0xff] }
 0x1a1   : > { %3493 = vrot.lane.b32.xlu2 %v6098_v20, %s3786_s7  ;;  %v6121_v20 = vld [vmem:[#allocation45_spill] sm:$0xff] }
 0x1a2   : > { %3220 = vmatpush.xpose.msk.msra.mxu1 %vm261_vm0, %v655_v51  ;;  %3224 = vmatpush.xpose.msk.msra.mxu2 %vm261_vm0, %v736_v5  ;;  %v6109_v5 = vld [vmem:[#allocation43_spill] sm:$0xff] }
 0x1a3   : > { %1149 = vrot.lane.b32.xlu1 %v4632_v58, %s3784_s27  ;;  %v4644_v1 = vpop.permute.xlu2 %3433  ;;  %3488 = vrot.lane.b32.xlu0 %v6099_v2, %s3786_s7  ;;  %v3425_v2 = vunpack.i.l.bf16 %v6121_v20 }
 0x1a5   : > { %3221 = vmatmul.msk.f32.vlgmr.msra.gmra.mxu1 %vm261_vm0, %v4220_v47  ;;  %v4652_v10 = vpop.permute.xlu0 %3428  ;;  %v4654_v11 = vpop.permute.xlu1 %1183  ;;  %v6103_v47 = vpack.i.bf16 %v4304_v12, %v4324_v13  ;;  %v6106_v12 = vpack.i.bf16 %v4320_v9, %v4328_v44  ;;  %v6108_v9 = vld [vmem:[#allocation35_spill] sm:$0xff] }
 0x1a6   : > { %3243 = vmatpush.xpose.msk.msrb.mxu1 %vm261_vm0, %v4440_v41  ;;  %3225 = vmatpush.xpose.msk.msra.mxu2 %vm261_vm0, %v734_v56  ;;  %v6100_v41 = vld [vmem:[#allocation36_spill] sm:$0xff] }
 0x1a9   : > { %3498 = vrot.lane.b32.xlu2 %v6102_v8, %s3786_s7  ;;  %v6123_v8 = vld [vmem:[#allocation17_spill] sm:$0xff] }
 0x1aa   : > { %3244 = vmatpush.xpose.msk.msrb.mxu1 %vm261_vm0, %v6100_v41  ;;  %3226 = vmatpush.xpose.msk.msra.mxu2 %vm261_vm0, %v732_v14 }
 0x1ab   : > { %3503 = vrot.lane.b32.xlu1 %v6103_v47, %s3786_s7  ;;  %v799_v0 = vpop.permute.xlu2 %798  ;;  %1101 = vrot.lane.b32.xlu0 %v4632_v58, %s3783_s23 }
 0x1ad   : > { %3222 = vmatmul.msk.f32.gmra.mxu1 %vm261_vm0, %v6104_v15  ;;  %v726_v60 = vpop.permute.xlu0 %725  ;;  %v805_v37 = vpop.permute.xlu1 %804  ;;  %v6124_v15 = vld [vmem:[#allocation14_spill] sm:$0xff] }
 0x1ae   : > { %3245 = vmatpush.xpose.msk.msrb.mxu1 %vm261_vm0, %v4438_v27  ;;  %3227 = vmatpush.xpose.msk.msra.mxu2 %vm261_vm0, %v730_v63  ;;  %v6105_v27 = vld [vmem:[#allocation44_spill] sm:$0xff]  ;;  %v6117_v63 = vld [vmem:[#allocation42_spill] sm:$0xff] }
 0x1af   : > { %3234 = vmatpush.xpose.msk.msra.mxu3 %vm261_vm0, %v805_v37  ;;  %v3420_v14 = vunpack.i.l.bf16 %v6117_v63  ;;  %v3421_v28 = vunpack.i.h.bf16 %v6117_v63 }
 0x1b1   : > { %1103 = vrot.lane.b32.xlu2 %v4676_v62, %s3783_s23  ;;  %v1494_v47 = vsel %vm261_vm0, %v3420_v14, %v6123_v8 }
 0x1b2   : > { %3246 = vmatpush.xpose.msk.msrb.mxu1 %vm261_vm0, %v6105_v27  ;;  %3228 = vmatpush.xpose.msk.msra.mxu2 %vm261_vm0, %v728_v38  ;;  %v4806_v27 = vld [vmem:[%s3911_s22 + $0x58] sm:$0xff] }
 0x1b3   : > { %3508 = vrot.lane.b32.xlu1 %v6106_v12, %s3786_s7  ;;  %v4690_v13 = vpop.permute.xlu2 %3438  ;;  %1197 = vrot.lane.b32.xlu0 %v4632_v58, %s3787_s8  ;;  %v3426_v12 = vunpack.i.h.bf16 %v6121_v20 }
 0x1b4   : > { %v3440_v20 = vunpack.i.l.bf16 %v4690_v13 }
 0x1b5   : > { %v801_v4 = vpop.permute.xlu1 %800  ;;  %v793_v45 = vpop.permute.xlu0 %792 }
 0x1b6   : > { %3247 = vmatpush.xpose.msk.msrb.mxu1 %vm261_vm0, %v4452_v34  ;;  %3229 = vmatpush.xpose.msk.msra.mxu2 %vm261_vm0, %v726_v60  ;;  %v4700_v34 = vld [vmem:[%s3911_s22 + $0x48] sm:$0xff] }
 0x1b7   : > { %v6125_v60 = vld [vmem:[#allocation18_spill] sm:$0xff] }
 0x1b8   : > { %v6126_v37 = vpack.i.bf16 %v6124_v15, %v6125_v60  ;;  %v6138_v15 = vld [vmem:[#allocation12_spill] sm:$0xff] }
 0x1b9   : > { %1199 = vrot.lane.b32.xlu2 %v4676_v62, %s3787_s8  ;;  %v6139_v60 = vld [vmem:[#allocation20_spill] sm:$0xff] }
 0x1ba   : > { %3248 = vmatpush.xpose.msk.msrb.mxu1 %vm261_vm0, %v6107_v32  ;;  %3230 = vmatpush.xpose.msk.msra.mxu2 %vm261_vm0, %v4593_v48  ;;  %v6128_v32 = vld [vmem:[#allocation22_spill] sm:$0xff] }
 0x1bb   : > { %v4708_v44 = vpop.permute.xlu2 %1091  ;;  %1153 = vrot.lane.b32.xlu1 %v4700_v34, %s3784_s27  ;;  %1151 = vrot.lane.b32.xlu0 %v4676_v62, %s3784_s27 }
 0x1bd   : > { %3231 = vmatmul.msk.f32.vlgmr.msra.gmra.mxu2 %vm261_vm0, %v6108_v9  ;;  %v797_v3 = vpop.permute.xlu1 %796  ;;  %v803_v52 = vpop.permute.xlu0 %802 }
 0x1be   : > { %3249 = vmatpush.xpose.msk.msrb.mxu1 %vm261_vm0, %v4450_v33  ;;  %3253 = vmatpush.xpose.msk.msrb.mxu2 %vm261_vm0, %v4463_v54  ;;  %v6110_v33 = vld [vmem:[#allocation8_spill] sm:$0xff] }
 0x1bf   : > { %3235 = vmatpush.xpose.msk.msra.mxu3 %vm261_vm0, %v803_v52  ;;  %v6130_v52 = vld [vmem:[#allocation46_spill] sm:$0xff] }
 0x1c1   : > { %1201 = vrot.lane.b32.xlu2 %v4700_v34, %s3787_s8 }
 0x1c2   : > { %3250 = vmatpush.xpose.msk.msrb.mxu1 %vm261_vm0, %v6109_v5  ;;  %3254 = vmatpush.xpose.msk.msrb.mxu2 %vm261_vm0, %v4430_v43  ;;  %v6112_v43 = vld [vmem:[#allocation37_spill] sm:$0xff] }
 0x1c3   : > { %3236 = vmatpush.xpose.msk.msra.mxu3 %vm261_vm0, %v801_v4  ;;  %v4726_v54 = vpop.permute.xlu2 %1187  ;;  %3518 = vrot.lane.b32.xlu1 %v6111_v18, %s3786_s7  ;;  %v6127_v4 = vld [vmem:[#allocation7_spill] sm:$0xff] }
 0x1c4   : > { %1105 = vrot.lane.b32.xlu0 %v4700_v34, %s3783_s23 }
 0x1c5   : > { %3251 = vmatmul.msk.f32.vlgmr.msrb.gmra.mxu1 %vm261_vm0, %v6110_v33  ;;  %3232 = vmatmul.msk.f32.gmra.mxu2 %vm261_vm0, %v6112_v43  ;;  %v4738_v51 = vpop.permute.xlu1 %1137  ;;  %v4740_v50 = vpop.permute.xlu0 %1089  ;;  %v3430_v33 = vunpack.i.l.bf16 %v4652_v10  ;;  %v6131_v43 = vld [vmem:[#allocation16_spill] sm:$0xff] }
 0x1c6   : > { %3255 = vmatpush.xpose.msk.msrb.mxu2 %vm261_vm0, %v4515_v42  ;;  %v4750_v42 = vld [vmem:[%s3911_s22 + $0x50] sm:$0xff] }
 0x1c7   : > { %3237 = vmatpush.xpose.msk.msra.mxu3 %vm261_vm0, %v799_v0 }
 0x1c8   : > { %v502_v17 = vpop.f32.mrf.mxu3 }
 0x1c9   : > { %3523 = vrot.lane.b32.xlu2 %v6113_v26, %s3786_s7  ;;  %v3263_v38 = vclamps-f32 %v502_v17, 5.0  ;;  %v1492_v26 = vsel %vm261_vm0, %v3425_v2, %v6131_v43  ;;  %v6137_v2 = vld [vmem:[#allocation23_spill] sm:$0xff] }
 0x1ca   : > { %3256 = vmatpush.xpose.msk.msrb.mxu2 %vm261_vm0, %v4486_v40 }
 0x1cb   : > { %3238 = vmatpush.xpose.msk.msra.mxu3 %vm261_vm0, %v797_v3  ;;  %v4755_v48 = vpop.permute.xlu2 %1141  ;;  %1107 = vrot.lane.b32.xlu1 %v4750_v42, %s3783_s23  ;;  %v1023_v41 = vmul.f32 1.442695, %v3263_v38  ;;  %v6129_v3 = vld [vmem:[#allocation11_spill] sm:$0xff]  ;;  %v1490_v38 = vsel %vm261_vm0, %v3430_v33, %v3968_v29 }
 0x1cc   : > { %3513 = vrot.lane.b32.xlu0 %v6115_v49, %s3786_s7  ;;  %v3532_v5 = vpack.i.bf16 %v6130_v52, %v6129_v3  ;;  %v3431_v49 = vunpack.i.h.bf16 %v4652_v10  ;;  %v3436_v10 = vunpack.i.h.bf16 %v4644_v1  ;;  %v1233_v52 = vsel %vm1231_vm1, %v4489_v30, %v4740_v50 }
 0x1cd   : > { %3252 = vmatmul.msk.f32.gmra.mxu1 %vm261_vm0, %v6114_v46  ;;  %v4765_v7 = vpop.permute.xlu1 %3443  ;;  %v795_v40 = vpop.permute.xlu0 %794  ;;  %3584 = vpow2.f32 %v1023_v41 }
 0x1ce   : > { %3257 = vmatpush.xpose.msk.msrb.mxu2 %vm261_vm0, %v4476_v6  ;;  %v3416_v6 = vunpack.i.h.bf16 %v4422_v21  ;;  %v3445_v3 = vunpack.i.l.bf16 %v4765_v7 }
 0x1cf   : > { %3239 = vmatpush.xpose.msk.msra.mxu3 %vm261_vm0, %v795_v40  ;;  %v6132_v40 = vld [vmem:[#allocation9_spill] sm:$0xff] }
 0x1d0   : > { %v505_v0 = vpop.f32.mrf.mxu3  ;;  %v1491_v17 = vsel %vm261_vm0, %v3426_v12, %v6132_v40  ;;  %v1503_v12 = vsel %vm261_vm0, %v3436_v10, %v6120_v24 }
 0x1d1   : > { %1155 = vrot.lane.b32.xlu2 %v4750_v42, %s3784_s27  ;;  %v3264_v18 = vclamps-f32 %v505_v0, 5.0 }
 0x1d2   : > { %3258 = vmatpush.xpose.msk.msrb.mxu2 %vm261_vm0, %v4484_v23  ;;  %v6118_v23 = vld [vmem:[#allocation21_spill] sm:$0xff] }
 0x1d3   : > { %3240 = vmatpush.xpose.msk.msra.mxu3 %vm261_vm0, %v793_v45  ;;  %v4775_v36 = vpop.permute.xlu2 %3463  ;;  %1203 = vrot.lane.b32.xlu1 %v4750_v42, %s3787_s8  ;;  %v1496_v57 = vsel %vm261_vm0, %v3415_v53, %v6118_v23  ;;  %v1493_v45 = vsel %vm261_vm0, %v3421_v28, %v6127_v4  ;;  %v1025_v14 = vmul.f32 1.442695, %v3264_v18 }
 0x1d4   : > { %3528 = vrot.lane.b32.xlu0 %v3527_v19, %s3786_s7  ;;  %v6134_v19 = vld [vmem:[#allocation5_spill] sm:$0xff] }
 0x1d5   : > { %v4787_v21 = vpop.permute.xlu1 %3448  ;;  %v4794_v56 = vpop.permute.xlu0 %1185  ;;  %v1232_v63 = vsel %vm1231_vm1, %v6134_v19, %v6133_v39  ;;  %3586 = vpow2.f32 %v1025_v14  ;;  %v6142_v14 = vld [vmem:[#allocation27_spill] sm:$0xff] }
 0x1d6   : > { %3259 = vmatpush.xpose.msk.msrb.mxu2 %vm261_vm0, %v4493_v55  ;;  %3241 = vmatmul.msk.f32.vlgmr.msra.gmra.mxu3 %vm261_vm0, %v6119_v22  ;;  %v1495_v55 = vsel %vm261_vm0, %v3416_v6, %v6120_v24  ;;  %v3435_v6 = vunpack.i.l.bf16 %v4644_v1  ;;  %v6136_v22 = vld [vmem:[#allocation34_spill] sm:$0xff]  ;;  %v3446_v24 = vunpack.i.h.bf16 %v4765_v7  ;;  %v3450_v18 = vunpack.i.l.bf16 %v4787_v21 }
 0x1d7   : > { %1568 = vmatpush.msrb.mxu3 %v1496_v57  ;;  %v6135_v57 = vld [vmem:[#allocation10_spill] sm:$0xff]  ;;  %v3451_v7 = vunpack.i.h.bf16 %v4787_v21 }
 0x1d8   : > { %v1489_v28 = vsel %vm261_vm0, %v3431_v49, %v6135_v57  ;;  %v1504_v1 = vsel %vm261_vm0, %v3435_v6, %v6118_v23  ;;  %v1500_v49 = vsel %vm261_vm0, %v3445_v3, %v6131_v43 }
 0x1d9   : > { %1569 = vmatpush.msrb.mxu3 %v1495_v55  ;;  %3538 = vrot.lane.b32.xlu2 %v6126_v37, %s3786_s7  ;;  %v1248_v55 = vsel %vm261_vm0, %v1232_v63, %v6136_v22  ;;  %v6140_v37 = vpack.i.bf16 %v6138_v15, %v6139_v60  ;;  %v1497_v21 = vsel %vm261_vm0, %v3451_v7, %v6135_v57  ;;  %v6141_v63 = vld [vmem:[#allocation31_spill] sm:$0xff]  ;;  %v4919_v57 = vld [vmem:[%s5993_s2 + $0xa0] sm:$0xff] }
 0x1da   : > { %3260 = vmatpush.xpose.msk.msrb.mxu2 %vm261_vm0, %v6122_v25  ;;  %v1265_v25 = vsel %vm1264_vm2, %v1248_v55, %v4654_v11  ;;  %v6144_v55 = vld [vmem:[#allocation13_spill] sm:$0xff] }
 0x1db   : > { %1570 = vmatpush.msrb.mxu3 %v1494_v47  ;;  %v4813_v9 = vpop.permute.xlu2 %3468  ;;  %1109 = vrot.lane.b32.xlu1 %v4806_v27, %s3783_s23  ;;  %v3441_v47 = vunpack.i.h.bf16 %v4690_v13  ;;  %v1502_v13 = vsel %vm261_vm0, %v3440_v20, %v6123_v8  ;;  %v6145_v20 = vld [vmem:[#allocation19_spill] sm:$0xff]  ;;  %v6151_v7 = vld [vmem:[#allocation29_spill] sm:$0xff] }
 0x1dc   : > { %3533 = vrot.lane.b32.xlu0 %v3532_v5, %s3786_s7 }
 0x1dd   : > { %1571 = vmatpush.msrb.mxu3 %v1493_v45  ;;  %3261 = vmatmul.msk.f32.vlgmr.msrb.gmra.mxu2 %vm261_vm0, %v6128_v32  ;;  %v4823_v46 = vpop.permute.xlu1 %1093  ;;  %v4830_v53 = vpop.permute.xlu0 %1139  ;;  %v4866_v32 = vld [vmem:[%s3911_s22 + $0x60] sm:$0xff]  ;;  %v1501_v5 = vsel %vm261_vm0, %v3441_v47, %v6127_v4 }
 0x1de   : > { %3242 = vmatmul.msk.f32.gmra.mxu3 %vm261_vm0, %v4372_v35  ;;  %v3585_v35 = vpop.eup %3584 }
 0x1df   : > { %1572 = vmatpush.msrb.mxu3 %v1492_v26  ;;  %v1281_v0 = vmul.f32 %v3585_v35, %v1265_v25  ;;  %v3587_v33 = vpop.eup %3586  ;;  %v1249_v26 = vsel %vm261_vm0, %v1233_v52, %v4738_v51  ;;  %v1499_v51 = vsel %vm261_vm0, %v3446_v24, %v6132_v40  ;;  %v4908_v40 = vld [vmem:[%s3911_s22 + $0x68] sm:$0xff]  ;;  %v3465_v25 = vunpack.i.l.bf16 %v4775_v36  ;;  %v6147_v24 = vld [vmem:[#allocation25_spill] sm:$0xff] }
 0x1e0   : > { %v1266_v50 = vsel %vm1264_vm2, %v1249_v26, %v4794_v56  ;;  %v1498_v56 = vsel %vm261_vm0, %v3450_v18, %v3968_v29 }
 0x1e1   : > { %1573 = vmatpush.msrb.mxu3 %v1491_v17  ;;  %1157 = vrot.lane.b32.xlu2 %v4806_v27, %s3784_s27  ;;  %v1282_v4 = vmul.f32 %v3587_v33, %v1266_v50  ;;  %v1508_v33 = vsel %vm261_vm0, %v3465_v25, %v6131_v43  ;;  %v6150_v50 = vld [vmem:[#allocation24_spill] sm:$0xff] }
 0x1e3   : > { %1574 = vmatpush.msrb.mxu3 %v1490_v38  ;;  %v4850_v41 = vpop.permute.xlu2 %1097  ;;  %1205 = vrot.lane.b32.xlu1 %v4806_v27, %s3787_s8  ;;  %v6143_v38 = vpack.i.bf16 %v6141_v63, %v6142_v14  ;;  %v1234_v63 = vsel %vm1231_vm1, %v4519_v59, %v4708_v44 }
 0x1e4   : > { %3543 = vrot.lane.b32.xlu0 %v6140_v37, %s3786_s7  ;;  %v3466_v37 = vunpack.i.h.bf16 %v4775_v36  ;;  %v6148_v36 = vld [vmem:[#allocation28_spill] sm:$0xff]  ;;  %v1250_v14 = vsel %vm261_vm0, %v1234_v63, %v4830_v53  ;;  %v4994_v53 = vld [vmem:[%s3911_s22 + $0x70] sm:$0xff] }
 0x1e5   : > { %1575 = vmatpush.msrb.mxu3 %v1489_v28  ;;  %3262 = vmatmul.msk.f32.gmra.mxu2 %vm261_vm0, %v6137_v2  ;;  %v4863_v45 = vpop.permute.xlu1 %1189  ;;  %v3454_v11 = vpop.permute.xlu0 %3453  ;;  %v6146_v2 = vpack.i.bf16 %v6144_v55, %v6145_v20 }
 0x1e6   : > { %3279 = vmatmul.msk.f32.vlgmr.msrb.gmra.mxu3 %vm1553_vm3, %v1281_v0  ;;  %v3455_v6 = vunpack.i.l.bf16 %v3454_v11  ;;  %v3456_v19 = vunpack.i.h.bf16 %v3454_v11 }
 0x1e7   : > { %1597 = vmatpush.msra.mxu3 %v1504_v1 }
 0x1e8   : > { %v1512_v35 = vsel %vm261_vm0, %v3455_v6, %v6118_v23  ;;  %v1511_v22 = vsel %vm261_vm0, %v3456_v19, %v4919_v57  ;;  %v4970_v19 = vld [vmem:[%s5993_s2 + $0x50] sm:$0xff] }
 0x1e9   : > { %1598 = vmatpush.msra.mxu3 %v1503_v12  ;;  %1159 = vrot.lane.b32.xlu2 %v4866_v32, %s3784_s27  ;;  %v4936_v12 = vld [vmem:[%s5993_s2 + $0x80] sm:$0xff] }
 0x1eb   : > { %1599 = vmatpush.msra.mxu3 %v1502_v13  ;;  %v4885_v30 = vpop.permute.xlu2 %1193  ;;  %1207 = vrot.lane.b32.xlu1 %v4866_v32, %s3787_s8 }
 0x1ec   : > { %1111 = vrot.lane.b32.xlu0 %v4866_v32, %s3783_s23 }
 0x1ed   : > { %1600 = vmatpush.msra.mxu3 %v1501_v5  ;;  %v4896_v17 = vpop.permute.xlu1 %1143  ;;  %v3459_v39 = vpop.permute.xlu0 %3458  ;;  %v6149_v5 = vpack.i.bf16 %v6147_v24, %v6148_v36  ;;  %v5019_v24 = vld [vmem:[%s5993_s2 + $0xb0] sm:$0xff] }
 0x1ee   : > { %3280 = vmatmul.msk.f32.gmra.mxu3 %vm1553_vm3, %v1282_v4  ;;  %v3460_v10 = vunpack.i.l.bf16 %v3459_v39  ;;  %v3461_v29 = vunpack.i.h.bf16 %v3459_v39  ;;  %v6152_v4 = vpack.i.bf16 %v6150_v50, %v6151_v7 }
 0x1ef   : > { %1601 = vmatpush.msra.mxu3 %v1500_v49  ;;  %v3471_v49 = vunpack.i.h.bf16 %v4813_v9 }
 0x1f0   : > { %v1510_v60 = vsel %vm261_vm0, %v3460_v10, %v6123_v8  ;;  %v1509_v11 = vsel %vm261_vm0, %v3461_v29, %v4936_v12  ;;  %v3470_v8 = vunpack.i.l.bf16 %v4813_v9  ;;  %v4989_v29 = vld [vmem:[%s5993_s2 + $0x90] sm:$0xff] }
 0x1f1   : > { %1602 = vmatpush.msra.mxu3 %v1499_v51  ;;  %3553 = vrot.lane.b32.xlu2 %v6143_v38, %s3786_s7  ;;  %v4959_v51 = vld [vmem:[%s5993_s2 + $0x60] sm:$0xff] }
 0x1f2   : > { %v1507_v43 = vsel %vm261_vm0, %v3466_v37, %v4959_v51  ;;  %v4982_v38 = vld [vmem:[%s5993_s2 + $0x40] sm:$0xff]  ;;  %v6154_v37 = vld [vmem:[#allocation30_spill] sm:$0xff] }
 0x1f3   : > { %1603 = vmatpush.msra.mxu3 %v1498_v56  ;;  %v4912_v28 = vpop.permute.xlu2 %1147  ;;  %1161 = vrot.lane.b32.xlu1 %v4908_v40, %s3784_s27  ;;  %v1505_v10 = vsel %vm261_vm0, %v3471_v49, %v4982_v38 }
 0x1f4   : > { %3548 = vrot.lane.b32.xlu0 %v6146_v2, %s3786_s7  ;;  %v1267_v2 = vsel %vm1264_vm2, %v1250_v14, %v4726_v54 }
 0x1f5   : > { %1604 = vmatpush.msra.mxu3 %v1497_v21  ;;  %v3474_v1 = vpop.permute.xlu1 %3473  ;;  %v4928_v15 = vpop.permute.xlu0 %1095  ;;  %v1506_v21 = vsel %vm261_vm0, %v3470_v8, %v4970_v19 }
 0x1f6   : > { %v3476_v47 = vunpack.i.h.bf16 %v3474_v1  ;;  %v3475_v0 = vunpack.i.l.bf16 %v3474_v1 }
 0x1f7   : > { %1626 = vmatpush.msrb.mxu3 %v1512_v35 }
 0x1f8   : > { %v571_v3 = vpop.f32.mrf.mxu3  ;;  %v1520_v13 = vsel %vm261_vm0, %v3475_v0, %v6118_v23  ;;  %v1519_v18 = vsel %vm261_vm0, %v3476_v47, %v4919_v57 }
 0x1f9   : > { %1627 = vmatpush.msrb.mxu3 %v1511_v22  ;;  %v3265_v52 = vclamps-f32 %v571_v3, 5.0  ;;  %1655 = vmatpush.msra.mxu2 %v1520_v13  ;;  %v6156_v3 = vld [vmem:[#allocation48_spill] sm:$0xff] }
 0x1fa   : > { %3558 = vrot.lane.b32.xlu2 %v6149_v5, %s3786_s7  ;;  %v1235_v13 = vsel %vm1231_vm1, %v6156_v3, %v4823_v46 }
 0x1fb   : > { %1628 = vmatpush.msrb.mxu3 %v1510_v60  ;;  %v1027_v26 = vmul.f32 1.442695, %v3265_v52  ;;  %1656 = vmatpush.msra.mxu2 %v1519_v18  ;;  %v3494_v23 = vpop.permute.xlu2 %3493  ;;  %v6153_v60 = vld [vmem:[#allocation26_spill] sm:$0xff]  ;;  %v1251_v46 = vsel %vm261_vm0, %v1235_v13, %v4755_v48  ;;  %v5028_v18 = vld [vmem:[%s3911_s22 + $0x78] sm:$0xff] }
 0x1fc   : > { %3563 = vrot.lane.b32.xlu1 %v6152_v4, %s3786_s7  ;;  %1113 = vrot.lane.b32.xlu0 %v4908_v40, %s3783_s23  ;;  %v3495_v22 = vunpack.i.l.bf16 %v3494_v23  ;;  %v3496_v0 = vunpack.i.h.bf16 %v3494_v23  ;;  %v1268_v49 = vsel %vm1264_vm2, %v1251_v46, %v4863_v45 }
 0x1fd   : > { %1629 = vmatpush.msrb.mxu3 %v1509_v11  ;;  %3588 = vpow2.f32 %v1027_v26  ;;  %v3479_v6 = vpop.permute.xlu1 %3478  ;;  %v4965_v56 = vpop.permute.xlu0 %1191  ;;  %v6155_v11 = vpack.i.bf16 %v6153_v60, %v6154_v37  ;;  %v1236_v37 = vsel %vm1231_vm1, %v4557_v31, %v4928_v15 }
 0x1fe   : > { %v3481_v9 = vunpack.i.h.bf16 %v3479_v6  ;;  %v3480_v39 = vunpack.i.l.bf16 %v3479_v6  ;;  %v1528_v36 = vsel %vm261_vm0, %v3495_v22, %v5019_v24 }
 0x1ff   : > { %1630 = vmatpush.msrb.mxu3 %v1508_v33  ;;  %v1527_v33 = vsel %vm261_vm0, %v3496_v0, %v4919_v57 }
 0x200   : > { %v574_v35 = vpop.f32.mrf.mxu3  ;;  %v1518_v59 = vsel %vm261_vm0, %v3480_v39, %v4989_v29  ;;  %v1517_v55 = vsel %vm261_vm0, %v3481_v9, %v4936_v12  ;;  %v5050_v9 = vld [vmem:[%s5993_s2 + $0x70] sm:$0xff] }
 0x201   : > { %1631 = vmatpush.msrb.mxu3 %v1507_v43  ;;  %v3266_v44 = vclamps-f32 %v574_v35, 5.0  ;;  %1657 = vmatpush.msra.mxu2 %v1518_v59 }
 0x202   : > { %1115 = vrot.lane.b32.xlu2 %v4994_v53, %s3783_s23 }
 0x203   : > { %1632 = vmatpush.msrb.mxu3 %v1506_v21  ;;  %v3589_v20 = vpop.eup %3588  ;;  %v1029_v1 = vmul.f32 1.442695, %v3266_v44  ;;  %1658 = vmatpush.msra.mxu2 %v1517_v55  ;;  %v3499_v25 = vpop.permute.xlu2 %3498 }
 0x204   : > { %v1283_v47 = vmul.f32 %v3589_v20, %v1267_v2  ;;  %3568 = vrot.lane.b32.xlu1 %v6155_v11, %s3786_s7  ;;  %1209 = vrot.lane.b32.xlu0 %v4908_v40, %s3787_s8  ;;  %v3500_v52 = vunpack.i.l.bf16 %v3499_v25  ;;  %v3501_v5 = vunpack.i.h.bf16 %v3499_v25 }
 0x205   : > { %1633 = vmatpush.msrb.mxu3 %v1505_v10  ;;  %3590 = vpow2.f32 %v1029_v1  ;;  %v5011_v54 = vpop.permute.xlu1 %1099  ;;  %v5013_v8 = vpop.permute.xlu0 %1145 }
 0x206   : > { %3281 = vmatmul.msk.f32.vlgmr.msra.gmra.mxu3 %vm1553_vm3, %v1283_v47  ;;  %v1526_v26 = vsel %vm261_vm0, %v3500_v52, %v4989_v29  ;;  %v1525_v48 = vsel %vm261_vm0, %v3501_v5, %v4936_v12  ;;  %v1252_v52 = vsel %vm261_vm0, %v1236_v37, %v4896_v17 }
 0x207   : > { %1684 = vmatpush.msra.mxu3 %v1528_v36 }
 0x209   : > { %1685 = vmatpush.msra.mxu3 %v1527_v33  ;;  %v1269_v33 = vsel %vm1264_vm2, %v1252_v52, %v4965_v56  ;;  %v1238_v56 = vsel %vm1231_vm1, %v4604_v61, %v5011_v54 }
 0x20a   : > { %1211 = vrot.lane.b32.xlu2 %v4994_v53, %s3787_s8 }
 0x20b   : > { %v3591_v23 = vpop.eup %3590  ;;  %1686 = vmatpush.msra.mxu3 %v1526_v26  ;;  %v5036_v50 = vpop.permute.xlu2 %1103 }
 0x20c   : > { %v1284_v7 = vmul.f32 %v3591_v23, %v1268_v49  ;;  %1165 = vrot.lane.b32.xlu1 %v5028_v18, %s3784_s27  ;;  %1163 = vrot.lane.b32.xlu0 %v4994_v53, %s3784_s27 }
 0x20d   : > { %1687 = vmatpush.msra.mxu3 %v1525_v48  ;;  %v5044_v4 = vpop.permute.xlu1 %1195  ;;  %v3484_v43 = vpop.permute.xlu0 %3483 }
 0x20e   : > { %3282 = vmatmul.msk.f32.gmra.mxu3 %vm1553_vm3, %v1284_v7  ;;  %v3486_v45 = vunpack.i.h.bf16 %v3484_v43  ;;  %v3485_v6 = vunpack.i.l.bf16 %v3484_v43 }
 0x210   : > { %v1516_v39 = vsel %vm261_vm0, %v3485_v6, %v5050_v9  ;;  %v1515_v63 = vsel %vm261_vm0, %v3486_v45, %v4959_v51  ;;  %v1237_v45 = vsel %vm1231_vm1, %v4587_v16, %v4850_v41 }
 0x211   : > { %1659 = vmatpush.msra.mxu2 %v1516_v39  ;;  %v1253_v6 = vsel %vm261_vm0, %v1237_v45, %v5013_v8 }
 0x212   : > { %1213 = vrot.lane.b32.xlu2 %v5028_v18, %s3787_s8  ;;  %v1270_v41 = vsel %vm1264_vm2, %v1253_v6, %v4885_v30 }
 0x213   : > { %v5056_v21 = vpop.permute.xlu2 %1199  ;;  %1660 = vmatpush.msra.mxu2 %v1515_v63  ;;  %v1254_v63 = vsel %vm261_vm0, %v1238_v56, %v4912_v28  ;;  %v3691_v28 = vld [vmem:[%s5993_s2 + $0x20] sm:$0xff] }
 0x214   : > { %1117 = vrot.lane.b32.xlu0 %v5028_v18, %s3783_s23 }
 0x215   : > { %v5062_v14 = vpop.permute.xlu1 %1149  ;;  %v3489_v10 = vpop.permute.xlu0 %3488 }
 0x216   : > { %v3491_v35 = vunpack.i.h.bf16 %v3489_v10  ;;  %v3490_v59 = vunpack.i.l.bf16 %v3489_v10 }
 0x218   : > { %v640_v44 = vpop.f32.mrf.mxu3  ;;  %v1514_v55 = vsel %vm261_vm0, %v3490_v59, %v4970_v19  ;;  %v1513_v1 = vsel %vm261_vm0, %v3491_v35, %v4982_v38  ;;  %v3690_v59 = vld [vmem:[%s5993_s2 + $0x30] sm:$0xff] }
 0x219   : > { %v3267_v22 = vclamps-f32 %v640_v44, 5.0  ;;  %1661 = vmatpush.msra.mxu2 %v1514_v55  ;;  %v3572_v44 = vpack.i.bf16 %v3691_v28, %v3690_v59  ;;  %v1271_v55 = vsel %vm1264_vm2, %v1254_v63, %v5044_v4  ;;  %v1240_v63 = vsel %vm1231_vm1, %v4676_v62, %v5036_v50 }
 0x21b   : > { %v1031_v20 = vmul.f32 1.442695, %v3267_v22  ;;  %v5066_v2 = vpop.permute.xlu2 %1201  ;;  %1662 = vmatpush.msra.mxu2 %v1513_v1 }
 0x21c   : > { %3573 = vrot.lane.b32.xlu0 %v3572_v44, %s3784_s27 }
 0x21d   : > { %3592 = vpow2.f32 %v1031_v20  ;;  %v3504_v25 = vpop.permute.xlu1 %3503  ;;  %v1102_v60 = vpop.permute.xlu0 %1101 }
 0x21e   : > { %v3506_v47 = vunpack.i.h.bf16 %v3504_v25  ;;  %v3505_v0 = vunpack.i.l.bf16 %v3504_v25 }
 0x220   : > { %v643_v11 = vpop.f32.mrf.mxu3  ;;  %v1524_v3 = vsel %vm261_vm0, %v3505_v0, %v5050_v9  ;;  %v1523_v46 = vsel %vm261_vm0, %v3506_v47, %v4959_v51  ;;  %v1239_v47 = vsel %vm1231_vm1, %v4632_v58, %v1102_v60  ;;  %v3692_v58 = vld [vmem:[%s5993_s2 + $0x10] sm:$0xff] }
 0x221   : > { %v3268_v13 = vclamps-f32 %v643_v11, 5.0  ;;  %1688 = vmatpush.msra.mxu3 %v1524_v3  ;;  %v1255_v4 = vsel %vm261_vm0, %v1239_v47, %v5062_v14  ;;  %v3693_v14 = vld [vmem:[%s5993_s2] sm:$0xff] }
 0x222   : > { %v709_v36 = vpop.f32.mrf.mxu1  ;;  %v3577_v60 = vpack.i.bf16 %v3693_v14, %v3692_v58 }
 0x223   : > { %v3593_v5 = vpop.eup %3592  ;;  %v1033_v26 = vmul.f32 1.442695, %v3268_v13  ;;  %v3269_v23 = vclamps-f32 %v709_v36, 5.0  ;;  %v5081_v31 = vpop.permute.xlu2 %3523  ;;  %1689 = vmatpush.msra.mxu3 %v1523_v46 }
 0x224   : > { %v1285_v15 = vmul.f32 %v3593_v5, %v1269_v33  ;;  %3578 = vrot.lane.b32.xlu1 %v3577_v60, %s3784_s27  ;;  %v3525_v56 = vunpack.i.l.bf16 %v5081_v31 }
 0x225   : > { %3594 = vpow2.f32 %v1033_v26  ;;  %v1035_v49 = vmul.f32 1.442695, %v3269_v23  ;;  %v3509_v48 = vpop.permute.xlu1 %3508  ;;  %v1198_v17 = vpop.permute.xlu0 %1197 }
 0x226   : > { %v3511_v7 = vunpack.i.h.bf16 %v3509_v48  ;;  %v3510_v43 = vunpack.i.l.bf16 %v3509_v48  ;;  %3283 = vmatmul.msk.f32.vlgmr.msrb.gmra.mxu3 %vm1553_vm3, %v1285_v15  ;;  %v1272_v11 = vsel %vm1264_vm2, %v1255_v4, %v1198_v17  ;;  %v1532_v44 = vsel %vm261_vm0, %v3525_v56, %v5050_v9 }
 0x227   : > { %3596 = vpow2.f32 %v1035_v49 }
 0x228   : > { %v1522_v39 = vsel %vm261_vm0, %v3510_v43, %v4970_v19  ;;  %v1521_v35 = vsel %vm261_vm0, %v3511_v7, %v4982_v38 }
 0x229   : > { %1690 = vmatpush.msra.mxu3 %v1522_v39 }
 0x22a   : > { %v712_v10 = vpop.f32.mrf.mxu1 }
 0x22b   : > { %v3595_v16 = vpop.eup %3594  ;;  %v3270_v61 = vclamps-f32 %v712_v10, 5.0  ;;  %v5100_v54 = vpop.permute.xlu2 %1155  ;;  %1691 = vmatpush.msra.mxu3 %v1521_v35  ;;  %v3526_v35 = vunpack.i.h.bf16 %v5081_v31 }
 0x22c   : > { %v1286_v8 = vmul.f32 %v3595_v16, %v1270_v41 }
 0x22d   : > { %v3597_v22 = vpop.eup %3596  ;;  %v1037_v20 = vmul.f32 1.442695, %v3270_v61  ;;  %v5110_v1 = vpop.permute.xlu1 %1153  ;;  %v1531_v47 = vsel %vm261_vm0, %v3526_v35, %v4959_v51 }
 0x22e   : > { %v1287_v30 = vmul.f32 %v3597_v22, %v1271_v55  ;;  %v1152_v25 = vpop.permute.xlu0 %1151  ;;  %3284 = vmatmul.msk.f32.gmra.mxu3 %vm1553_vm3, %v1286_v8 }
 0x22f   : > { %3598 = vpow2.f32 %v1037_v20  ;;  %v1256_v16 = vsel %vm261_vm0, %v1240_v63, %v1152_v25 }
 0x230   : > { %3285 = vmatmul.msk.f32.vlgmr.msra.gmra.mxu2 %vm1553_vm3, %v1287_v30  ;;  %v1273_v31 = vsel %vm1264_vm2, %v1256_v16, %v5056_v21 }
 0x233   : > { %v5117_v0 = vpop.permute.xlu2 %3538 }
 0x234   : > { %v3541_v60 = vunpack.i.h.bf16 %v5117_v0 }
 0x235   : > { %v3599_v37 = vpop.eup %3598  ;;  %v3519_v3 = vpop.permute.xlu1 %3518 }
 0x236   : > { %v1288_v13 = vmul.f32 %v3599_v37, %v1272_v11  ;;  %v1106_v52 = vpop.permute.xlu0 %1105  ;;  %v3520_v49 = vunpack.i.l.bf16 %v3519_v3  ;;  %v3521_v17 = vunpack.i.h.bf16 %v3519_v3  ;;  %v3540_v3 = vunpack.i.l.bf16 %v5117_v0 }
 0x237   : > { %v1241_v4 = vsel %vm1231_vm1, %v4700_v34, %v1106_v52 }
 0x238   : > { %3286 = vmatmul.msk.f32.gmra.mxu2 %vm1553_vm3, %v1288_v13  ;;  %v1534_v39 = vsel %vm261_vm0, %v3520_v49, %v4989_v29  ;;  %v1533_v61 = vsel %vm261_vm0, %v3521_v17, %v4936_v12  ;;  %v1257_v58 = vsel %vm261_vm0, %v1241_v4, %v5110_v1  ;;  %v1541_v17 = vsel %vm261_vm0, %v3541_v60, %v4936_v12 }
 0x239   : > { %v1274_v1 = vsel %vm1264_vm2, %v1257_v58, %v5066_v2 }
 0x23b   : > { %v5123_v36 = vpop.permute.xlu2 %1157 }
 0x23d   : > { %v5125_v46 = vpop.permute.xlu1 %1107 }
 0x23e   : > { %v3514_v5 = vpop.permute.xlu0 %3513 }
 0x23f   : > { %v3516_v33 = vunpack.i.h.bf16 %v3514_v5  ;;  %v3515_v26 = vunpack.i.l.bf16 %v3514_v5 }
 0x240   : > { %v778_v23 = vpop.f32.mrf.mxu2 }
 0x241   : > { %v3271_v15 = vclamps-f32 %v778_v23, 5.0  ;;  %v1536_v48 = vsel %vm261_vm0, %v3515_v26, %v5019_v24  ;;  %v1535_v45 = vsel %vm261_vm0, %v3516_v33, %v4919_v57 }
 0x242   : > { %1713 = vmatpush.msra.mxu1 %v1536_v48  ;;  %v916_v35 = vpop.f32.mrf.mxu1 }
 0x243   : > { %v1039_v7 = vmul.f32 1.442695, %v3271_v15  ;;  %v5136_v43 = vpop.permute.xlu2 %1159  ;;  %v1542_v15 = vsel %vm261_vm0, %v3540_v3, %v4989_v29 }
 0x244   : > { %1714 = vmatpush.msra.mxu1 %v1535_v45 }
 0x245   : > { %3600 = vpow2.f32 %v1039_v7  ;;  %v5141_v6 = vpop.permute.xlu1 %1203 }
 0x246   : > { %v3529_v10 = vpop.permute.xlu0 %3528  ;;  %1715 = vmatpush.msra.mxu1 %v1534_v39 }
 0x247   : > { %v3530_v41 = vunpack.i.l.bf16 %v3529_v10  ;;  %v3531_v28 = vunpack.i.h.bf16 %v3529_v10 }
 0x248   : > { %v781_v8 = vpop.f32.mrf.mxu2  ;;  %1716 = vmatpush.msra.mxu1 %v1533_v61 }
 0x249   : > { %v3272_v59 = vclamps-f32 %v781_v8, 5.0  ;;  %v1544_v62 = vsel %vm261_vm0, %v3530_v41, %v5019_v24  ;;  %v1530_v11 = vsel %vm261_vm0, %v3531_v28, %v4970_v19  ;;  %v1242_v28 = vsel %vm1231_vm1, %v4750_v42, %v5125_v46 }
 0x24a   : > { %1717 = vmatpush.msra.mxu1 %v1532_v44  ;;  %1742 = vmatpush.msrb.mxu2 %v1544_v62 }
 0x24b   : > { %v3601_v50 = vpop.eup %3600  ;;  %v1041_v22 = vmul.f32 1.442695, %v3272_v59  ;;  %v3554_v55 = vpop.permute.xlu2 %3553  ;;  %v3275_v59 = vclamps-f32 %v916_v35, 5.0 }
 0x24c   : > { %v1289_v20 = vmul.f32 %v3601_v50, %v1273_v31  ;;  %v3556_v30 = vunpack.i.h.bf16 %v3554_v55  ;;  %v3555_v25 = vunpack.i.l.bf16 %v3554_v55  ;;  %1718 = vmatpush.msra.mxu1 %v1531_v47  ;;  %v1258_v31 = vsel %vm261_vm0, %v1242_v28, %v5100_v54 }
 0x24d   : > { %3602 = vpow2.f32 %v1041_v22  ;;  %v1110_v37 = vpop.permute.xlu1 %1109  ;;  %v1047_v50 = vmul.f32 1.442695, %v3275_v59 }
 0x24e   : > { %3287 = vmatmul.msk.f32.vlgmr.msra.gmra.mxu3 %vm1553_vm3, %v1289_v20  ;;  %v1552_v21 = vsel %vm261_vm0, %v3555_v25, %v5019_v24  ;;  %v3534_v13 = vpop.permute.xlu0 %3533  ;;  %1719 = vmatpush.msra.mxu1 %v1530_v11  ;;  %v1551_v14 = vsel %vm261_vm0, %v3556_v30, %v4919_v57  ;;  %v1275_v25 = vsel %vm1264_vm2, %v1258_v31, %v5141_v6  ;;  %v919_v11 = vpop.f32.mrf.mxu1 }
 0x24f   : > { %1771 = vmatpush.msrb.mxu3 %v1552_v21  ;;  %v3536_v34 = vunpack.i.h.bf16 %v3534_v13  ;;  %v3535_v52 = vunpack.i.l.bf16 %v3534_v13  ;;  %v1243_v42 = vsel %vm1231_vm1, %v4806_v27, %v1110_v37  ;;  %v3276_v58 = vclamps-f32 %v919_v11, 5.0 }
 0x250   : > { %v1259_v6 = vsel %vm261_vm0, %v1243_v42, %v5123_v36 }
 0x251   : > { %1772 = vmatpush.msrb.mxu3 %v1551_v14  ;;  %v1529_v5 = vsel %vm261_vm0, %v3536_v34, %v4982_v38  ;;  %v1543_v33 = vsel %vm261_vm0, %v3535_v52, %v4919_v57 }
 0x252   : > { %1720 = vmatpush.msra.mxu1 %v1529_v5  ;;  %1743 = vmatpush.msrb.mxu2 %v1543_v33  ;;  %v1049_v33 = vmul.f32 1.442695, %v3276_v58 }
 0x253   : > { %v3603_v26 = vpop.eup %3602 }
 0x254   : > { %v3559_v23 = vpop.permute.xlu2 %3558  ;;  %v1290_v49 = vmul.f32 %v3603_v26, %v1274_v1  ;;  %1744 = vmatpush.msrb.mxu2 %v1542_v15 }
 0x255   : > { %v3561_v48 = vunpack.i.h.bf16 %v3559_v23  ;;  %v3560_v7 = vunpack.i.l.bf16 %v3559_v23  ;;  %v1206_v0 = vpop.permute.xlu1 %1205 }
 0x256   : > { %3288 = vmatmul.msk.f32.gmra.mxu3 %vm1553_vm3, %v1290_v49  ;;  %v3544_v45 = vpop.permute.xlu0 %3543  ;;  %1745 = vmatpush.msrb.mxu2 %v1541_v17  ;;  %v1276_v52 = vsel %vm1264_vm2, %v1259_v6, %v1206_v0 }
 0x257   : > { %v1550_v56 = vsel %vm261_vm0, %v3560_v7, %v4989_v29  ;;  %v3546_v2 = vunpack.i.h.bf16 %v3544_v45  ;;  %v3545_v39 = vunpack.i.l.bf16 %v3544_v45  ;;  %v1549_v10 = vsel %vm261_vm0, %v3561_v48, %v4936_v12 }
 0x258   : > { %1773 = vmatpush.msrb.mxu3 %v1550_v56 }
 0x259   : > { %v847_v63 = vpop.f32.mrf.mxu3  ;;  %v1540_v41 = vsel %vm261_vm0, %v3545_v39, %v5050_v9  ;;  %v1539_v8 = vsel %vm261_vm0, %v3546_v2, %v4959_v51 }
 0x25a   : > { %v3273_v16 = vclamps-f32 %v847_v63, 5.0  ;;  %1774 = vmatpush.msrb.mxu3 %v1549_v10  ;;  %1746 = vmatpush.msrb.mxu2 %v1540_v41 }
 0x25c   : > { %v1043_v61 = vmul.f32 1.442695, %v3273_v16  ;;  %1747 = vmatpush.msrb.mxu2 %v1539_v8  ;;  %v1116_v56 = vpop.permute.xlu2 %1115 }
 0x25d   : > { %v1208_v44 = vpop.permute.xlu1 %1207 }
 0x25e   : > { %3604 = vpow2.f32 %v1043_v61  ;;  %v1112_v62 = vpop.permute.xlu0 %1111 }
 0x25f   : > { %v1244_v20 = vsel %vm1231_vm1, %v4866_v32, %v1112_v62  ;;  %3606 = vpow2.f32 %v1047_v50 }
 0x260   : > { %v1260_v46 = vsel %vm261_vm0, %v1244_v20, %v5136_v43  ;;  %v985_v1 = vpop.f32.mrf.mxu2 }
 0x261   : > { %v850_v22 = vpop.f32.mrf.mxu3  ;;  %v1277_v13 = vsel %vm1264_vm2, %v1260_v46, %v1208_v44  ;;  %v3277_v17 = vclamps-f32 %v985_v1, 5.0 }
 0x262   : > { %v3274_v55 = vclamps-f32 %v850_v22, 5.0 }
 0x263   : > { %v1051_v10 = vmul.f32 1.442695, %v3277_v17 }
 0x264   : > { %v3605_v30 = vpop.eup %3604  ;;  %v1045_v47 = vmul.f32 1.442695, %v3274_v55  ;;  %v1212_v31 = vpop.permute.xlu2 %1211 }
 0x265   : > { %v1291_v4 = vmul.f32 %v3605_v30, %v1275_v25  ;;  %v1162_v54 = vpop.permute.xlu1 %1161  ;;  %v3607_v43 = vpop.eup %3606 }
 0x266   : > { %3608 = vpow2.f32 %v1045_v47  ;;  %v3549_v21 = vpop.permute.xlu0 %3548  ;;  %v1293_v14 = vmul.f32 %v3607_v43, %v1277_v13 }
 0x267   : > { %3289 = vmatmul.msk.f32.vlgmr.msra.gmra.mxu1 %vm1553_vm3, %v1291_v4  ;;  %v3551_v32 = vunpack.i.h.bf16 %v3549_v21  ;;  %v3550_v3 = vunpack.i.l.bf16 %v3549_v21 }
 0x268   : > { %v988_v59 = vpop.f32.mrf.mxu2 }
 0x269   : > { %v5209_v34 = vpop.f32.mrf.mxu3  ;;  %v1538_v27 = vsel %vm261_vm0, %v3550_v3, %v4970_v19  ;;  %v1537_v36 = vsel %vm261_vm0, %v3551_v32, %v4982_v38  ;;  %v3278_v62 = vclamps-f32 %v988_v59, 5.0 }
 0x26a   : > { %vm1786_vm4 = vcmp.gt.f32.partialorder %v5209_v34, 0.0  ;;  %1748 = vmatpush.msrb.mxu2 %v1538_v27 }
 0x26b   : > { %v1802_v60 = vsel %vm1786_vm4, %v5209_v34, 1.0  ;;  %v1053_v20 = vmul.f32 1.442695, %v3278_v62 }
 0x26c   : > { %v3609_v37 = vpop.eup %3608  ;;  %3610 = vrcp.f32 %v1802_v60  ;;  %1749 = vmatpush.msrb.mxu2 %v1537_v36 }
 0x26d   : > { %v1292_v5 = vmul.f32 %v3609_v37, %v1276_v52  ;;  %3291 = vmatmul.msk.f32.vlgmr.msrb.gmra.mxu2 %vm1553_vm3, %v1293_v14  ;;  %3612 = vpow2.f32 %v1049_v33 }
 0x26e   : > { %v3564_v26 = vpop.permute.xlu1 %3563  ;;  %v1114_v49 = vpop.permute.xlu0 %1113  ;;  %3357 = vmatpush.msra.mxu2 %v5019_v24 }
 0x26f   : > { %v3566_v23 = vunpack.i.h.bf16 %v3564_v26  ;;  %v3565_v15 = vunpack.i.l.bf16 %v3564_v26  ;;  %3290 = vmatmul.msk.f32.gmra.mxu1 %vm1553_vm3, %v1292_v5  ;;  %v1245_v2 = vsel %vm1231_vm1, %v4908_v40, %v1114_v49 }
 0x270   : > { %3358 = vmatpush.msra.mxu2 %v4919_v57  ;;  %v1261_v41 = vsel %vm261_vm0, %v1245_v2, %v1162_v54 }
 0x271   : > { %v1548_v48 = vsel %vm261_vm0, %v3565_v15, %v5050_v9  ;;  %v5224_v7 = vpop.f32.mrf.mxu3  ;;  %v1547_v45 = vsel %vm261_vm0, %v3566_v23, %v4959_v51 }
 0x272   : > { %1775 = vmatpush.msrb.mxu3 %v1548_v48  ;;  %v3611_v0 = vpop.eup %3610  ;;  %vm1787_vm5 = vcmp.gt.f32.partialorder %v5224_v7, 0.0  ;;  %3359 = vmatpush.msra.mxu2 %v4989_v29 }
 0x273   : > { %v1834_v24 = vmul.f32 %v3611_v0, %v1802_v60  ;;  %v1803_v57 = vsel %vm1787_vm5, %v5224_v7, 1.0  ;;  %v3613_v29 = vpop.eup %3612 }
 0x274   : > { %1776 = vmatpush.msrb.mxu3 %v1547_v45  ;;  %3614 = vrcp.f32 %v1803_v57  ;;  %3360 = vmatpush.msra.mxu2 %v4936_v12 }
 0x275   : > { %v1850_v39 = vsub.f32 2.0, %v1834_v24  ;;  %3616 = vpow2.f32 %v1051_v10 }
 0x276   : > { %v3569_v63 = vpop.permute.xlu1 %3568  ;;  %v1210_v61 = vpop.permute.xlu0 %1209  ;;  %3361 = vmatpush.msra.mxu2 %v5050_v9  ;;  %3618 = vpow2.f32 %v1053_v20 }
 0x277   : > { %v3571_v35 = vunpack.i.h.bf16 %v3569_v63  ;;  %v3570_v16 = vunpack.i.l.bf16 %v3569_v63  ;;  %v1278_v8 = vsel %vm1264_vm2, %v1261_v41, %v1210_v61  ;;  %v1866_v40 = vmul.f32 %v3611_v0, %v1850_v39 }
 0x278   : > { %v1294_v28 = vmul.f32 %v3613_v29, %v1278_v8  ;;  %3362 = vmatpush.msra.mxu2 %v4959_v51  ;;  %v1246_v51 = vsel %vm1231_vm1, %v4994_v53, %v1116_v56 }
 0x279   : > { %v1546_v44 = vsel %vm261_vm0, %v3570_v16, %v4970_v19  ;;  %1898 = vrot.lane.b32.xlu2 %v1866_v40, %s3785_s6  ;;  %v1545_v9 = vsel %vm261_vm0, %v3571_v35, %v4982_v38 }
 0x27a   : > { %1777 = vmatpush.msrb.mxu3 %v1546_v44  ;;  %v3615_v12 = vpop.eup %3614  ;;  %3292 = vmatmul.msk.f32.gmra.mxu2 %vm1553_vm3, %v1294_v28 }
 0x27b   : > { %v1835_v50 = vmul.f32 %v3615_v12, %v1803_v57  ;;  %3363 = vmatpush.msra.mxu2 %v4970_v19  ;;  %v3617_v47 = vpop.eup %3616 }
 0x27c   : > { %1778 = vmatpush.msrb.mxu3 %v1545_v9  ;;  %v3619_v21 = vpop.eup %3618 }
 0x27d   : > { %v1851_v22 = vsub.f32 2.0, %v1835_v50  ;;  %3364 = vmatpush.msra.mxu2 %v4982_v38  ;;  %v1214_v38 = vpop.permute.xlu2 %1213 }
 0x27e   : > { %v1164_v55 = vpop.permute.xlu0 %1163  ;;  %v1166_v19 = vpop.permute.xlu1 %1165 }
 0x27f   : > { %v1867_v30 = vmul.f32 %v3615_v12, %v1851_v22  ;;  %v1262_v25 = vsel %vm261_vm0, %v1246_v51, %v1164_v55 }
 0x280   : > { %v1279_v4 = vsel %vm1264_vm2, %v1262_v25, %v1212_v31 }
 0x281   : > { %v1295_v42 = vmul.f32 %v3617_v47, %v1279_v4  ;;  %1900 = vrot.lane.b32.xlu0 %v1867_v30, %s3785_s6 }
 0x283   : > { %3293 = vmatmul.msk.f32.vlgmr.msrb.gmra.mxu3 %vm1553_vm3, %v1295_v42 }
 0x286   : > { %v1118_v46 = vpop.permute.xlu0 %1117 }
 0x287   : > { %v1247_v53 = vsel %vm1231_vm1, %v5028_v18, %v1118_v46 }
 0x288   : > { %v1263_v54 = vsel %vm261_vm0, %v1247_v53, %v1166_v19 }
 0x289   : > { %v5255_v11 = vpop.f32.mrf.mxu3  ;;  %v1280_v32 = vsel %vm1264_vm2, %v1263_v54, %v1214_v38 }
 0x28a   : > { %vm1788_vm6 = vcmp.gt.f32.partialorder %v5255_v11, 0.0  ;;  %v1296_v3 = vmul.f32 %v3619_v21, %v1280_v32 }
 0x28b   : > { %v1804_v6 = vsel %vm1788_vm6, %v5255_v11, 1.0 }
 0x28c   : > { %3620 = vrcp.f32 %v1804_v6  ;;  %3294 = vmatmul.msk.f32.gmra.mxu3 %vm1553_vm3, %v1296_v3 }
 0x28e   : > { %v3574_v5 = vpop.permute.xlu0 %3573 }
 0x28f   : > { %v3575_v33 = vunpack.i.l.bf16 %v3574_v5  ;;  %v3576_v26 = vunpack.i.h.bf16 %v3574_v5 }
 0x291   : > { %v5261_v13 = vpop.f32.mrf.mxu3  ;;  %2041 = vmatpush.msrb.mxu0 %v3575_v33 }
 0x292   : > { %v3621_v58 = vpop.eup %3620  ;;  %vm1789_vm7 = vcmp.gt.f32.partialorder %v5261_v13, 0.0 }
 0x293   : > { %v1836_v18 = vmul.f32 %v3621_v58, %v1804_v6  ;;  %v1805_v27 = vsel %vm1789_vm7, %v5261_v13, 1.0  ;;  %2042 = vmatpush.msrb.mxu0 %v3576_v26 }
 0x294   : > { %3622 = vrcp.f32 %v1805_v27 }
 0x295   : > { %v1852_v43 = vsub.f32 2.0, %v1836_v18 }
 0x296   : > { %v3579_v48 = vpop.permute.xlu1 %3578 }
 0x297   : > { %v1868_v37 = vmul.f32 %v3621_v58, %v1852_v43  ;;  %v3580_v56 = vunpack.i.l.bf16 %v3579_v48  ;;  %v3581_v57 = vunpack.i.h.bf16 %v3579_v48 }
 0x299   : > { %1902 = vrot.lane.b32.xlu1 %v1868_v37, %s3785_s6  ;;  %2043 = vmatpush.msrb.mxu0 %v3580_v56 }
 0x29a   : > { %v3623_v52 = vpop.eup %3622 }
 0x29b   : > { %v1837_v14 = vmul.f32 %v3623_v52, %v1805_v27  ;;  %2044 = vmatpush.msrb.mxu0 %v3581_v57 }
 0x29d   : > { %v1853_v60 = vsub.f32 2.0, %v1837_v14 }
 0x29f   : > { %v1869_v36 = vmul.f32 %v3623_v52, %v1853_v60 }
 0x2a1   : > { %1904 = vrot.lane.b32.xlu2 %v1869_v36, %s3785_s6 }
 0x2a9   : > { %v5267_v1 = vpop.f32.mrf.mxu3 }
 0x2aa   : > { %vm1790_vm8 = vcmp.gt.f32.partialorder %v5267_v1, 0.0 }
 0x2ab   : > { %v1806_v23 = vsel %vm1790_vm8, %v5267_v1, 1.0 }
 0x2ac   : > { %3624 = vrcp.f32 %v1806_v23 }
 0x2b1   : > { %v5271_v15 = vpop.f32.mrf.mxu3 }
 0x2b2   : > { %v3625_v49 = vpop.eup %3624  ;;  %vm1791_vm9 = vcmp.gt.f32.partialorder %v5271_v15, 0.0 }
 0x2b3   : > { %v1838_v0 = vmul.f32 %v3625_v49, %v1806_v23  ;;  %v1807_v17 = vsel %vm1791_vm9, %v5271_v15, 1.0  ;;  %v5275_v45 = vpop.f32.mrf.mxu2 }
 0x2b4   : > { %3626 = vrcp.f32 %v1807_v17  ;;  %vm1792_vm10 = vcmp.gt.f32.partialorder %v5275_v45, 0.0 }
 0x2b5   : > { %v1854_v24 = vsub.f32 2.0, %v1838_v0  ;;  %v1808_v2 = vsel %vm1792_vm10, %v5275_v45, 1.0 }
 0x2b6   : > { %3628 = vrcp.f32 %v1808_v2 }
 0x2b7   : > { %v1870_v39 = vmul.f32 %v3625_v49, %v1854_v24 }
 0x2b9   : > { %1906 = vrot.lane.b32.xlu0 %v1870_v39, %s3785_s6 }
 0x2ba   : > { %v3627_v63 = vpop.eup %3626 }
 0x2bb   : > { %v1839_v10 = vmul.f32 %v3627_v63, %v1807_v17  ;;  %v5280_v35 = vpop.f32.mrf.mxu2 }
 0x2bc   : > { %v3629_v16 = vpop.eup %3628  ;;  %vm1793_vm11 = vcmp.gt.f32.partialorder %v5280_v35, 0.0 }
 0x2bd   : > { %v1855_v41 = vsub.f32 2.0, %v1839_v10  ;;  %v1840_v61 = vmul.f32 %v3629_v16, %v1808_v2  ;;  %v1809_v29 = vsel %vm1793_vm11, %v5280_v35, 1.0 }
 0x2be   : > { %3630 = vrcp.f32 %v1809_v29 }
 0x2bf   : > { %v1871_v8 = vmul.f32 %v3627_v63, %v1855_v41  ;;  %v1856_v40 = vsub.f32 2.0, %v1840_v61 }
 0x2c1   : > { %v1872_v59 = vmul.f32 %v3629_v16, %v1856_v40  ;;  %1908 = vrot.lane.b32.xlu1 %v1871_v8, %s3785_s6 }
 0x2c3   : > { %1910 = vrot.lane.b32.xlu2 %v1872_v59, %s3785_s6 }
 0x2c4   : > { %v3631_v28 = vpop.eup %3630 }
 0x2c5   : > { %v1841_v44 = vmul.f32 %v3631_v28, %v1809_v29 }
 0x2c7   : > { %v1857_v12 = vsub.f32 2.0, %v1841_v44  ;;  %v5337_v44 = vld [vmem:[%s5994_s3] ss:$0 sm:$0xff] }
 0x2c9   : > { %v1873_v9 = vmul.f32 %v3631_v28, %v1857_v12 }
 0x2cb   : > { %1912 = vrot.lane.b32.xlu0 %v1873_v9, %s3785_s6 }
 0x2d1   : > { %v5287_v62 = vpop.f32.mrf.mxu3 }
 0x2d2   : > { %vm1794_vm12 = vcmp.gt.f32.partialorder %v5287_v62, 0.0 }
 0x2d3   : > { %v1810_v50 = vsel %vm1794_vm12, %v5287_v62, 1.0  ;;  %v1899_v31 = vpop.permute.xlu2 %1898 }
 0x2d4   : > { %3632 = vrcp.f32 %v1810_v50  ;;  %v1946_v22 = vmul.f32 %v1899_v31, %v5209_v34 }
 0x2d6   : > { %3295 = vmatmul.msk.f32.vlgmr.msrb.gmra.mxu0 %vm261_vm0, %v1946_v22 }
 0x2d9   : > { %v5293_v51 = vpop.f32.mrf.mxu3 }
 0x2da   : > { %v3633_v55 = vpop.eup %3632  ;;  %vm1795_vm13 = vcmp.gt.f32.partialorder %v5293_v51, 0.0 }
 0x2db   : > { %v1842_v20 = vmul.f32 %v3633_v55, %v1810_v50  ;;  %v1811_v30 = vsel %vm1795_vm13, %v5293_v51, 1.0 }
 0x2dc   : > { %3634 = vrcp.f32 %v1811_v30 }
 0x2dd   : > { %v1858_v25 = vsub.f32 2.0, %v1842_v20 }
 0x2df   : > { %v1874_v47 = vmul.f32 %v3633_v55, %v1858_v25 }
 0x2e1   : > { %1914 = vrot.lane.b32.xlu1 %v1874_v47, %s3785_s6 }
 0x2e2   : > { %v3635_v4 = vpop.eup %3634 }
 0x2e3   : > { %v1843_v42 = vmul.f32 %v3635_v4, %v1811_v30 }
 0x2e4   : > { %v5298_v19 = vpop.f32.mrf.mxu1 }
 0x2e5   : > { %v1859_v34 = vsub.f32 2.0, %v1843_v42  ;;  %vm1796_vm14 = vcmp.gt.f32.partialorder %v5298_v19, 0.0 }
 0x2e6   : > { %v1812_v46 = vsel %vm1796_vm14, %v5298_v19, 1.0 }
 0x2e7   : > { %v1875_v38 = vmul.f32 %v3635_v4, %v1859_v34  ;;  %3636 = vrcp.f32 %v1812_v46  ;;  %v3788_v4 = vmov 16.0  }
 0x2e9   : > { %1916 = vrot.lane.b32.xlu2 %v1875_v38, %s3785_s6 }
 0x2ec   : > { %v5303_v53 = vpop.f32.mrf.mxu1 }
 0x2ed   : > { %v3637_v54 = vpop.eup %3636  ;;  %vm1797_vm15 = vcmp.gt.f32.partialorder %v5303_v53, 0.0 }
 0x2ee   : > { %v1844_v21 = vmul.f32 %v3637_v54, %v1812_v46  ;;  %v1813_v32 = vsel %vm1797_vm15, %v5303_v53, 1.0 }
 0x2ef   : > { %3638 = vrcp.f32 %v1813_v32 }
 0x2f0   : > { %v1860_v3 = vsub.f32 2.0, %v1844_v21  ;;  %v5307_v6 = vpop.f32.mrf.mxu2 }
 0x2f1   : > { %vm1798_vm1 = vcmp.gt.f32.partialorder %v5307_v6, 0.0 }
 0x2f2   : > { %v1876_v58 = vmul.f32 %v3637_v54, %v1860_v3  ;;  %v1814_v18 = vsel %vm1798_vm1, %v5307_v6, 1.0  ;;  %v3694_v54 = vld [vmem:[%s3883_s13] sm:$0xff] }
 0x2f3   : > { %3640 = vrcp.f32 %v1814_v18  ;;  %v1901_v27 = vpop.permute.xlu0 %1900 }
 0x2f4   : > { %1918 = vrot.lane.b32.xlu0 %v1876_v58, %s3785_s6  ;;  %v1947_v37 = vmul.f32 %v1901_v27, %v5224_v7  ;;  %v3695_v58 = vld [vmem:[%s3883_s13 + $0x8] sm:$0xff] }
 0x2f5   : > { %v3639_v43 = vpop.eup %3638 }
 0x2f6   : > { %v1845_v52 = vmul.f32 %v3639_v43, %v1813_v32  ;;  %3296 = vmatmul.msk.f32.gmra.mxu0 %vm261_vm0, %v1947_v37 }
 0x2f8   : > { %v1861_v14 = vsub.f32 2.0, %v1845_v52 }
 0x2f9   : > { %v3641_v60 = vpop.eup %3640 }
 0x2fa   : > { %v1877_v36 = vmul.f32 %v3639_v43, %v1861_v14  ;;  %v1846_v5 = vmul.f32 %v3641_v60, %v1814_v18 }
 0x2fb   : > { %v1905_v10 = vpop.permute.xlu2 %1904 }
 0x2fc   : > { %1920 = vrot.lane.b32.xlu1 %v1877_v36, %s3785_s6  ;;  %v1862_v33 = vsub.f32 2.0, %v1846_v5  ;;  %v1949_v29 = vmul.f32 %v1905_v10, %v5261_v13 }
 0x2fd   : > { %v5315_v26 = vpop.f32.mrf.mxu2 }
 0x2fe   : > { %v1878_v23 = vmul.f32 %v3641_v60, %v1862_v33  ;;  %vm1799_vm2 = vcmp.gt.f32.partialorder %v5315_v26, 0.0 }
 0x2ff   : > { %v1815_v49 = vsel %vm1799_vm2, %v5315_v26, 1.0 }
 0x300   : > { %3642 = vrcp.f32 %v1815_v49  ;;  %1922 = vrot.lane.b32.xlu2 %v1878_v23, %s3785_s6 }
 0x306   : > { %v3643_v7 = vpop.eup %3642  ;;  %v5320_v48 = vpop.f32.mrf.mxu3 }
 0x307   : > { %v1847_v0 = vmul.f32 %v3643_v7, %v1815_v49  ;;  %vm1800_vm4 = vcmp.gt.f32.partialorder %v5320_v48, 0.0 }
 0x308   : > { %v1816_v17 = vsel %vm1800_vm4, %v5320_v48, 1.0 }
 0x309   : > { %v1863_v56 = vsub.f32 2.0, %v1847_v0  ;;  %3644 = vrcp.f32 %v1816_v17 }
 0x30b   : > { %v1903_v24 = vpop.permute.xlu1 %1902  ;;  %v1879_v2 = vmul.f32 %v3643_v7, %v1863_v56 }
 0x30c   : > { %v1948_v57 = vmul.f32 %v1903_v24, %v5255_v11 }
 0x30d   : > { %1924 = vrot.lane.b32.xlu0 %v1879_v2, %s3785_s6 }
 0x30e   : > { %3297 = vmatmul.msk.f32.gmra.mxu0 %vm261_vm0, %v1948_v57 }
 0x30f   : > { %v3645_v39 = vpop.eup %3644  ;;  %v5327_v63 = vpop.f32.mrf.mxu3 }
 0x310   : > { %v1848_v16 = vmul.f32 %v3645_v39, %v1816_v17  ;;  %vm1801_vm5 = vcmp.gt.f32.partialorder %v5327_v63, 0.0 }
 0x311   : > { %v1817_v41 = vsel %vm1801_vm5, %v5327_v63, 1.0 }
 0x312   : > { %v1864_v61 = vsub.f32 2.0, %v1848_v16  ;;  %3646 = vrcp.f32 %v1817_v41 }
 0x313   : > { %3648 = vrcp.f32 %v3788_v4 }
 0x314   : > { %v1880_v8 = vmul.f32 %v3645_v39, %v1864_v61 }
 0x315   : > { %2413 = vrot.lane.b32.xlu0 %v5337_v44, %s3786_s7 }
 0x316   : > { %3298 = vmatmul.msk.f32.gmra.mxu0 %vm261_vm0, %v1949_v29  ;;  %1926 = vrot.lane.b32.xlu1 %v1880_v8, %s3785_s6 }
 0x318   : > { %v3647_v11 = vpop.eup %3646 }
 0x319   : > { %v1849_v40 = vmul.f32 %v3647_v11, %v1817_v41  ;;  %v3649_v46 = vpop.eup %3648 }
 0x31a   : > { %v2183_v32 = vmul.f32 16.0, %v3649_v46  ;;  %vm2187_vm6 = vweird.f32 %v3649_v46 }
 0x31b   : > { %v1865_v59 = vsub.f32 2.0, %v1849_v40  ;;  %v234_v40 = vld [vmem:[%s5993_s2 + $0x38] sm:$0xff] }
 0x31c   : > { %v2184_v43 = vsub.f32 1.0, %v2183_v32  ;;  %2516 = vmatpush.msrb.mxu1 %v234_v40 }
 0x31d   : > { %v1881_v28 = vmul.f32 %v3647_v11, %v1865_v59  ;;  %2585 = vrot.lane.b32.xlu0 %v5337_v44, %s3785_s6  ;;  %v1911_v31 = vpop.permute.xlu2 %1910 }
 0x31e   : > { %2432 = vrot.lane.b32.xlu1 %v5337_v44, %s3784_s27  ;;  %v1952_v22 = vmul.f32 %v1911_v31, %v5275_v45  ;;  %v2185_v14 = vmul.f32 %v3649_v46, %v2184_v43  ;;  %s3352_s27 = sshll.u32 %s3837_s19, 7 }
 0x31f   : > { %1928 = vrot.lane.b32.xlu2 %v1881_v28, %s3785_s6  ;;  %s3078_s14 = scalar_lea.hbm %s5995_s4, %s3352_s27 }
 0x320   : > { %v2186_v33 = vadd.f32 %v3649_v46, %v2185_v14  ;;  %s3081_s8 = sshll.u32 %s3078_s14, 4  ;;  %s3082_s8 = int_to_ptr.hbm [resolvable:$true] %s3081_s8 }
 0x321   : > { %s3733_s20 = sshra.s32 %s3082_s8, 4  ;;  %s3734_s20 = int_to_ptr.hbm [resolvable:$true] %s3733_s20 }
 0x322   : > { %v5372_v7 = vsel %vm2187_vm6, %v3649_v46, %v2186_v33  ;;  %v3700_v46 = vld [vmem:[%s5993_s2 + $0x90] sm:$0xff]  ;;  %s3735_s28 = scalar_lea.hbm %s3734_s20, 128  ;;  %p3740_p0 = scmp.lt.s32.totalorder %s3734_s20, %s5995_s4 }
 0x323   : > { %p3736_p11 = scmp.ne.s32.totalorder %s3734_s20, %s3735_s28  ;;  %p3741_p1 = scmp.lt.s32.totalorder %s3739_s5, %s3735_s28 }
 0x325   : > { %p3737_p12 = pnand %p3736_p11, %p3854_p5  ;;  %p3742_p2 = por %p3741_p1, %p3740_p0 }
 0x327   : > { %p3738_p13 = pneg %p3737_p12 }
 0x329   : > { %p3743_p3 = pnand %p3742_p2, %p3738_p13 }
 0x32b   : > { %v1907_v13 = vpop.permute.xlu0 %1906 }
 0x32c   : > { %v1950_v12 = vmul.f32 %v1907_v13, %v5267_v1  ;;  %v3696_v13 = vld [vmem:[%s3883_s13 + $0x10] sm:$0xff] }
 0x32e   : > { %3299 = vmatmul.msk.f32.gmra.mxu0 %vm261_vm0, %v1950_v12 }
 0x333   : > { %v1909_v9 = vpop.permute.xlu1 %1908 }
 0x334   : > { %v1951_v50 = vmul.f32 %v1909_v9, %v5271_v15 }
 0x336   : > { %3300 = vmatmul.msk.f32.gmra.mxu0 %vm261_vm0, %v1951_v50  ;;  %v233_v50 = vld [vmem:[%s5993_s2 + $0x28] sm:$0xff] }
 0x337   : > { %2517 = vmatpush.msrb.mxu1 %v233_v50 }
 0x33d   : > { %v1913_v55 = vpop.permute.xlu0 %1912 }
 0x33e   : > { %3301 = vmatmul.msk.f32.gmra.mxu0 %vm261_vm0, %v1952_v22  ;;  %v1953_v20 = vmul.f32 %v1913_v55, %v5280_v35  ;;  %v232_v55 = vld [vmem:[%s5993_s2 + $0x18] sm:$0xff] }
 0x33f   : > { %2518 = vmatpush.msrb.mxu1 %v232_v55 }
 0x343   : > { %v1917_v25 = vpop.permute.xlu2 %1916 }
 0x344   : > { %v1955_v15 = vmul.f32 %v1917_v25, %v5293_v51  ;;  %v231_v25 = vld [vmem:[%s5993_s2 + $0x8] sm:$0xff] }
 0x345   : > { %2519 = vmatpush.msrb.mxu1 %v231_v25 }
 0x346   : > { %3302 = vmatmul.msk.f32.gmra.mxu0 %vm261_vm0, %v1953_v20 }
 0x353   : > { %v1915_v30 = vpop.permute.xlu1 %1914  ;;  %v2046_v35 = vpop.f32.mrf.mxu0 }
 0x354   : > { %v1954_v1 = vmul.f32 %v1915_v30, %v5287_v62  ;;  %v2047_v34 = vadd.f32 %v5337_v44, %v2046_v35 }
 0x356   : > { %3303 = vmatmul.msk.f32.gmra.mxu0 %vm261_vm0, %v1954_v1  ;;  %v2094_v21 = vadd.f32 %v3694_v54, %v2047_v34  ;;  %v3701_v54 = vld [vmem:[%s5993_s2 + $0x80] sm:$0xff] }
 0x358   : > { %v2110_v27 = vsel %vm261_vm0, %v2094_v21, 0.0 }
 0x35a   : > { %v1923_v51 = vpop.permute.xlu2 %1922 }
 0x35b   : > { %v1958_v3 = vmul.f32 %v1923_v51, %v5307_v6 }
 0x35e   : > { %3304 = vmatmul.msk.f32.gmra.mxu0 %vm261_vm0, %v1955_v15 }
 0x366   : > { %v1919_v47 = vpop.permute.xlu0 %1918 }
 0x367   : > { %v1956_v45 = vmul.f32 %v1919_v47, %v5298_v19 }
 0x369   : > { %3305 = vmatmul.msk.f32.gmra.mxu0 %vm261_vm0, %v1956_v45  ;;  %v3698_v45 = vld [vmem:[%s5993_s2 + $0xb0] sm:$0xff] }
 0x36a   : > { %2644 = vmatpush.msra.mxu1 %v3698_v45 }
 0x36e   : > { %v1921_v42 = vpop.permute.xlu1 %1920 }
 0x36f   : > { %v1957_v62 = vmul.f32 %v1921_v42, %v5303_v53  ;;  %v3699_v42 = vld [vmem:[%s5993_s2 + $0xa0] sm:$0xff] }
 0x370   : > { %2645 = vmatpush.msra.mxu1 %v3699_v42 }
 0x371   : > { %3306 = vmatmul.msk.f32.gmra.mxu0 %vm261_vm0, %v1957_v62 }
 0x372   : > { %2646 = vmatpush.msra.mxu1 %v3700_v46  ;;  %v3708_v46 = vld [vmem:[%s3883_s13 + $0x30] sm:$0xff] }
 0x373   : > { %v2049_v38 = vpop.f32.mrf.mxu0 }
 0x374   : > { %v2050_v19 = vadd.f32 %v5337_v44, %v2049_v38  ;;  %2647 = vmatpush.msra.mxu1 %v3701_v54 }
 0x376   : > { %v2095_v18 = vadd.f32 %v3695_v58, %v2050_v19  ;;  %v3702_v19 = vld [vmem:[%s5993_s2 + $0x70] sm:$0xff] }
 0x377   : > { %2648 = vmatpush.msra.mxu1 %v3702_v19  ;;  %v3709_v19 = vld [vmem:[%s3883_s13 + $0x38] sm:$0xff] }
 0x378   : > { %v2111_v53 = vsel %vm261_vm0, %v2095_v18, 0.0 }
 0x379   : > { %3307 = vmatmul.msk.f32.gmra.mxu0 %vm261_vm0, %v1958_v3  ;;  %v2112_v37 = vadd.f32 %v2111_v53, %v2110_v27  ;;  %v1929_v29 = vpop.permute.xlu2 %1928  ;;  %v3703_v3 = vld [vmem:[%s5993_s2 + $0x60] sm:$0xff] }
 0x37a   : > { %v1961_v11 = vmul.f32 %v1929_v29, %v5327_v63  ;;  %v3697_v63 = vld [vmem:[%s3883_s13 + $0x18] sm:$0xff]  ;;  %2649 = vmatpush.msra.mxu1 %v3703_v3 }
 0x37b   : > { %v2113_v52 = vrot.slane %v2112_v37, 4 }
 0x37d   : > { %v2114_v60 = vadd.f32 %v2113_v52, %v2112_v37  ;;  %v3705_v37 = vld [vmem:[%s5993_s2 + $0x40] sm:$0xff] }
 0x37f   : > { %v2115_v36 = vrot.slane %v2114_v60, 2  ;;  %v1925_v5 = vpop.permute.xlu0 %1924 }
 0x380   : > { %v1959_v23 = vmul.f32 %v1925_v5, %v5315_v26 }
 0x381   : > { %v2116_v49 = vadd.f32 %v2115_v36, %v2114_v60 }
 0x382   : > { %3308 = vmatmul.msk.f32.gmra.mxu0 %vm261_vm0, %v1959_v23 }
 0x383   : > { %v2117_v6 = vrot.slane %v2116_v49, 1 }
 0x385   : > { %v2118_v0 = vadd.f32 %v2117_v6, %v2116_v49 }
 0x387   : > { %v2189_v17 = vmul.f32 %v5372_v7, %v2118_v0 }
 0x388   : > { %v1927_v56 = vpop.permute.xlu1 %1926 }
 0x389   : > { %v5375_v24 = vsub.f32 %v2094_v21, %v2189_v17  ;;  %v5377_v2 = vsub.f32 %v2095_v18, %v2189_v17  ;;  %v1960_v57 = vmul.f32 %v1927_v56, %v5320_v48  ;;  %v3704_v18 = vld [vmem:[%s5993_s2 + $0x50] sm:$0xff] }
 0x38a   : > { %2650 = vmatpush.msra.mxu1 %v3704_v18 }
 0x38b   : > { %v2052_v39 = vpop.f32.mrf.mxu0  ;;  %v2213_v26 = vmul.f32 %v5375_v24, %v5375_v24  ;;  %v2214_v10 = vmul.f32 %v5377_v2, %v5377_v2  ;;  %3309 = vmatmul.msk.f32.gmra.mxu0 %vm261_vm0, %v1960_v57 }
 0x38c   : > { %v2053_v8 = vadd.f32 %v5337_v44, %v2052_v39  ;;  %2651 = vmatpush.msra.mxu1 %v3705_v37 }
 0x38d   : > { %v2229_v16 = vsel %vm261_vm0, %v2213_v26, 0.0  ;;  %v2230_v41 = vsel %vm261_vm0, %v2214_v10, 0.0 }
 0x38e   : > { %v2231_v61 = vadd.f32 %v2230_v41, %v2229_v16  ;;  %v2096_v12 = vadd.f32 %v3696_v13, %v2053_v8  ;;  %v5444_v16 = vpop.permute.xlu0 %2413  ;;  %v3706_v8 = vld [vmem:[%s3883_s13 + $0x20] sm:$0xff]  ;;  %v3707_v13 = vld [vmem:[%s3883_s13 + $0x28] sm:$0xff] }
 0x390   : > { %v2232_v48 = vrot.slane %v2231_v61, 4  ;;  %v2119_v30 = vsel %vm261_vm0, %v2096_v12, 0.0  ;;  %v5449_v40 = vpop.permute.xlu1 %2432 }
 0x392   : > { %v2233_v59 = vadd.f32 %v2232_v48, %v2231_v61 }
 0x393   : > { %v2055_v28 = vpop.f32.mrf.mxu0  ;;  %3310 = vmatmul.msk.f32.gmra.mxu0 %vm261_vm0, %v1961_v11 }
 0x394   : > { %v2056_v9 = vadd.f32 %v5337_v44, %v2055_v28  ;;  %v2234_v31 = vrot.slane %v2233_v59, 2 }
 0x396   : > { %v2097_v22 = vadd.f32 %v3697_v63, %v2056_v9  ;;  %v2235_v20 = vadd.f32 %v2234_v31, %v2233_v59 }
 0x398   : > { %v2120_v1 = vsel %vm261_vm0, %v2097_v22, 0.0  ;;  %v2236_v15 = vrot.slane %v2235_v20, 1 }
 0x399   : > { %v2121_v47 = vadd.f32 %v2120_v1, %v2119_v30 }
 0x39a   : > { %v2237_v35 = vadd.f32 %v2236_v15, %v2235_v20 }
 0x39b   : > { %v2122_v4 = vrot.slane %v2121_v47, 4 }
 0x39c   : > { %v2301_v62 = vmul.f32 %v2237_v35, %v5372_v7 }
 0x39d   : > { %v2123_v34 = vadd.f32 %v2122_v4, %v2121_v47 }
 0x39e   : > { %v2309_v51 = vadd.f32 1e-05, %v2301_v62 }
 0x39f   : > { %v2124_v38 = vrot.slane %v2123_v34, 2 }
 0x3a0   : > { %3650 = vrsqrt.f32 %v2309_v51  ;;  %vm2323_vm8 = vweird.f32 %v2309_v51 }
 0x3a1   : > { %v2125_v21 = vadd.f32 %v2124_v38, %v2123_v34 }
 0x3a3   : > { %v2126_v32 = vrot.slane %v2125_v21, 1 }
 0x3a5   : > { %v2127_v58 = vadd.f32 %v2126_v32, %v2125_v21 }
 0x3a6   : > { %v3651_v27 = vpop.eup %3650 }
 0x3a7   : > { %v2190_v53 = vmul.f32 %v5372_v7, %v2127_v58  ;;  %v2318_v43 = vmul.f32 %v3651_v27, %v2309_v51  ;;  %vm2324_vm7 = vweird.f32 %v3651_v27 }
 0x3a8   : > { %vm2325_vm9 = vmor %vm2323_vm8, %vm2324_vm7 }
 0x3a9   : > { %v5433_v52 = vsub.f32 %v2096_v12, %v2190_v53  ;;  %v5435_v14 = vsub.f32 %v2097_v22, %v2190_v53  ;;  %v2319_v60 = vmul.f32 %v3651_v27, %v2318_v43 }
 0x3ab   : > { %v2215_v36 = vmul.f32 %v5433_v52, %v5433_v52  ;;  %v2216_v5 = vmul.f32 %v5435_v14, %v5435_v14  ;;  %v2058_v33 = vpop.f32.mrf.mxu0  ;;  %v2320_v23 = vmul.f32 0.5, %v2319_v60 }
 0x3ac   : > { %v2059_v39 = vadd.f32 %v5337_v44, %v2058_v33 }
 0x3ad   : > { %v2238_v49 = vsel %vm261_vm0, %v2215_v36, 0.0  ;;  %v2239_v6 = vsel %vm261_vm0, %v2216_v5, 0.0  ;;  %v2321_v0 = vsub.f32 1.5, %v2320_v23 }
 0x3ae   : > { %v2240_v17 = vadd.f32 %v2239_v6, %v2238_v49  ;;  %v2098_v48 = vadd.f32 %v3706_v8, %v2059_v39 }
 0x3af   : > { %v2322_v56 = vmul.f32 %v3651_v27, %v2321_v0 }
 0x3b0   : > { %v2241_v57 = vrot.slane %v2240_v17, 4 }
 0x3b1   : > { %v2326_v26 = vsel %vm2325_vm9, %v3651_v27, %v2322_v56 }
 0x3b2   : > { %v2242_v10 = vadd.f32 %v2241_v57, %v2240_v17  ;;  %v2397_v41 = vmul.f32 %v2326_v26, %v5375_v24  ;;  %v2398_v9 = vmul.f32 %v2326_v26, %v5377_v2  ;;  %v2128_v24 = vsel %vm261_vm0, %v2098_v48, 0.0  ;;  %v5465_v2 = vld [vmem:[%s5994_s3 + $0x1] ss:$0 sm:$0xff] }
 0x3b3   : > { %v2061_v61 = vpop.f32.mrf.mxu0  ;;  %2453 = vrot.lane.b32.xlu2 %v5465_v2, %s3786_s7  ;;  %3030 = vrot.lane.b32.xlu1 %v5465_v2, %s3785_s6 }
 0x3b4   : > { %v2243_v29 = vrot.slane %v2242_v10, 2  ;;  %v2062_v11 = vadd.f32 %v5337_v44, %v2061_v61  ;;  %v2416_v59 = vmul.f32 %v5444_v16, %v2397_v41  ;;  %v2417_v1 = vmul.f32 %v5444_v16, %v2398_v9 }
 0x3b6   : > { %v2244_v28 = vadd.f32 %v2243_v29, %v2242_v10  ;;  %v2099_v12 = vadd.f32 %v3707_v13, %v2062_v11  ;;  %v5455_v50 = vadd.f32 %v5449_v40, %v2416_v59  ;;  %v5473_v35 = vadd.f32 %v5449_v40, %v2417_v1 }
 0x3b8   : > { %v2245_v31 = vrot.slane %v2244_v28, 1  ;;  %v2129_v63 = vsel %vm261_vm0, %v2099_v12, 0.0  ;;  %3311 = vmatmul.msk.f32.vlgmr.msrb.gmra.mxu1 %vm261_vm0, %v5455_v50 }
 0x3b9   : > { %v2130_v22 = vadd.f32 %v2129_v63, %v2128_v24 }
 0x3ba   : > { %v2246_v55 = vadd.f32 %v2245_v31, %v2244_v28 }
 0x3bb   : > { %v2131_v20 = vrot.slane %v2130_v22, 4  ;;  %v2064_v30 = vpop.f32.mrf.mxu0 }
 0x3bc   : > { %v2302_v25 = vmul.f32 %v2246_v55, %v5372_v7  ;;  %v2065_v4 = vadd.f32 %v5337_v44, %v2064_v30 }
 0x3bd   : > { %v2132_v15 = vadd.f32 %v2131_v20, %v2130_v22 }
 0x3be   : > { %v2310_v47 = vadd.f32 1e-05, %v2302_v25  ;;  %v2100_v51 = vadd.f32 %v3708_v46, %v2065_v4  ;;  %v3711_v46 = vld [vmem:[%s3883_s13 + $0x48] sm:$0xff] }
 0x3bf   : > { %v2133_v45 = vrot.slane %v2132_v15, 2 }
 0x3c0   : > { %3652 = vrsqrt.f32 %v2310_v47  ;;  %3312 = vmatmul.msk.f32.gmra.mxu1 %vm261_vm0, %v5473_v35  ;;  %v2137_v18 = vsel %vm261_vm0, %v2100_v51, 0.0  ;;  %vm2333_vm11 = vweird.f32 %v2310_v47 }
 0x3c1   : > { %v2134_v42 = vadd.f32 %v2133_v45, %v2132_v15  ;;  %v3710_v15 = vld [vmem:[%s3883_s13 + $0x40] sm:$0xff] }
 0x3c3   : > { %v2135_v62 = vrot.slane %v2134_v42, 1  ;;  %v2067_v34 = vpop.f32.mrf.mxu0 }
 0x3c4   : > { %v2068_v38 = vadd.f32 %v5337_v44, %v2067_v34 }
 0x3c5   : > { %v2136_v54 = vadd.f32 %v2135_v62, %v2134_v42 }
 0x3c6   : > { %v3653_v21 = vpop.eup %3652  ;;  %v2101_v32 = vadd.f32 %v3709_v19, %v2068_v38 }
 0x3c7   : > { %v2328_v3 = vmul.f32 %v3653_v21, %v2310_v47  ;;  %v2191_v58 = vmul.f32 %v5372_v7, %v2136_v54  ;;  %vm2334_vm10 = vweird.f32 %v3653_v21 }
 0x3c8   : > { %v2138_v27 = vsel %vm261_vm0, %v2101_v32, 0.0  ;;  %vm2335_vm12 = vmor %vm2333_vm11, %vm2334_vm10 }
 0x3c9   : > { %v2329_v53 = vmul.f32 %v3653_v21, %v2328_v3  ;;  %v5484_v43 = vsub.f32 %v2098_v48, %v2191_v58  ;;  %v5486_v37 = vsub.f32 %v2099_v12, %v2191_v58  ;;  %v2139_v60 = vadd.f32 %v2138_v27, %v2137_v18 }
 0x3cb   : > { %v2330_v36 = vmul.f32 0.5, %v2329_v53  ;;  %v2217_v5 = vmul.f32 %v5484_v43, %v5484_v43  ;;  %v2218_v33 = vmul.f32 %v5486_v37, %v5486_v37  ;;  %v2140_v23 = vrot.slane %v2139_v60, 4 }
 0x3cd   : > { %v2331_v49 = vsub.f32 1.5, %v2330_v36  ;;  %v2247_v6 = vsel %vm261_vm0, %v2217_v5, 0.0  ;;  %v2248_v0 = vsel %vm261_vm0, %v2218_v33, 0.0  ;;  %v2141_v17 = vadd.f32 %v2140_v23, %v2139_v60 }
 0x3ce   : > { %v2249_v56 = vadd.f32 %v2248_v0, %v2247_v6 }
 0x3cf   : > { %v2332_v57 = vmul.f32 %v3653_v21, %v2331_v49  ;;  %v2142_v39 = vrot.slane %v2141_v17, 2 }
 0x3d0   : > { %v2250_v26 = vrot.slane %v2249_v56, 4 }
 0x3d1   : > { %v2336_v10 = vsel %vm2335_vm12, %v3653_v21, %v2332_v57  ;;  %v2143_v41 = vadd.f32 %v2142_v39, %v2141_v17 }
 0x3d2   : > { %v2251_v61 = vadd.f32 %v2250_v26, %v2249_v56  ;;  %v2399_v29 = vmul.f32 %v2336_v10, %v5433_v52  ;;  %v2400_v13 = vmul.f32 %v2336_v10, %v5435_v14 }
 0x3d3   : > { %v2144_v8 = vrot.slane %v2143_v41, 1  ;;  %v2070_v48 = vpop.f32.mrf.mxu0 }
 0x3d4   : > { %v2252_v11 = vrot.slane %v2251_v61, 2  ;;  %v2418_v59 = vmul.f32 %v5444_v16, %v2399_v29  ;;  %v2071_v63 = vadd.f32 %v5337_v44, %v2070_v48  ;;  %v2419_v14 = vmul.f32 %v5444_v16, %v2400_v13  ;;  %v3712_v48 = vld [vmem:[%s3883_s13 + $0x50] sm:$0xff] }
 0x3d5   : > { %v2145_v28 = vadd.f32 %v2144_v8, %v2143_v41 }
 0x3d6   : > { %v2253_v12 = vadd.f32 %v2252_v11, %v2251_v61  ;;  %v5498_v9 = vadd.f32 %v5449_v40, %v2418_v59  ;;  %v2102_v47 = vadd.f32 %v3710_v15, %v2071_v63  ;;  %v5520_v38 = vadd.f32 %v5449_v40, %v2419_v14 }
 0x3d7   : > { %v2192_v31 = vmul.f32 %v5372_v7, %v2145_v28 }
 0x3d8   : > { %v2254_v24 = vrot.slane %v2253_v12, 1  ;;  %3313 = vmatmul.msk.f32.gmra.mxu1 %vm261_vm0, %v5498_v9  ;;  %v2146_v21 = vsel %vm261_vm0, %v2102_v47, 0.0 }
 0x3d9   : > { %v5504_v52 = vsub.f32 %v2100_v51, %v2192_v31  ;;  %v5506_v22 = vsub.f32 %v2101_v32, %v2192_v31  ;;  %v3713_v31 = vld [vmem:[%s3883_s13 + $0x58] sm:$0xff] }
 0x3da   : > { %v2255_v55 = vadd.f32 %v2254_v24, %v2253_v12 }
 0x3db   : > { %v2219_v20 = vmul.f32 %v5504_v52, %v5504_v52  ;;  %v2220_v30 = vmul.f32 %v5506_v22, %v5506_v22  ;;  %v2073_v1 = vpop.f32.mrf.mxu0 }
 0x3dc   : > { %v2303_v25 = vmul.f32 %v2255_v55, %v5372_v7  ;;  %v2074_v45 = vadd.f32 %v5337_v44, %v2073_v1 }
 0x3dd   : > { %v2256_v4 = vsel %vm261_vm0, %v2219_v20, 0.0  ;;  %v2257_v42 = vsel %vm261_vm0, %v2220_v30, 0.0 }
 0x3de   : > { %v2311_v62 = vadd.f32 1e-05, %v2303_v25  ;;  %v2258_v34 = vadd.f32 %v2257_v42, %v2256_v4  ;;  %v2103_v51 = vadd.f32 %v3711_v46, %v2074_v45 }
 0x3e0   : > { %3654 = vrsqrt.f32 %v2311_v62  ;;  %v2259_v54 = vrot.slane %v2258_v34, 4  ;;  %v2147_v19 = vsel %vm261_vm0, %v2103_v51, 0.0  ;;  %3314 = vmatmul.msk.f32.gmra.mxu1 %vm261_vm0, %v5520_v38  ;;  %vm2343_vm14 = vweird.f32 %v2311_v62 }
 0x3e1   : > { %v2148_v32 = vadd.f32 %v2147_v19, %v2146_v21 }
 0x3e2   : > { %v2260_v3 = vadd.f32 %v2259_v54, %v2258_v34 }
 0x3e3   : > { %v2149_v58 = vrot.slane %v2148_v32, 4 }
 0x3e4   : > { %v2261_v18 = vrot.slane %v2260_v3, 2 }
 0x3e5   : > { %v2150_v27 = vadd.f32 %v2149_v58, %v2148_v32 }
 0x3e6   : > { %v3655_v53 = vpop.eup %3654  ;;  %v2262_v60 = vadd.f32 %v2261_v18, %v2260_v3  ;;  %v2076_v36 = vpop.f32.mrf.mxu0 }
 0x3e7   : > { %v2338_v5 = vmul.f32 %v3655_v53, %v2311_v62  ;;  %v2151_v33 = vrot.slane %v2150_v27, 2  ;;  %v2077_v57 = vadd.f32 %v5337_v44, %v2076_v36  ;;  %vm2344_vm13 = vweird.f32 %v3655_v53 }
 0x3e8   : > { %v2263_v23 = vrot.slane %v2262_v60, 1  ;;  %vm2345_vm15 = vmor %vm2343_vm14, %vm2344_vm13 }
 0x3e9   : > { %v2339_v49 = vmul.f32 %v3655_v53, %v2338_v5  ;;  %v2152_v6 = vadd.f32 %v2151_v33, %v2150_v27  ;;  %v2104_v11 = vadd.f32 %v3712_v48, %v2077_v57 }
 0x3ea   : > { %v2264_v0 = vadd.f32 %v2263_v23, %v2262_v60 }
 0x3eb   : > { %v2340_v17 = vmul.f32 0.5, %v2339_v49  ;;  %v2153_v56 = vrot.slane %v2152_v6, 1  ;;  %v2155_v20 = vsel %vm261_vm0, %v2104_v11, 0.0 }
 0x3ec   : > { %v2304_v39 = vmul.f32 %v2264_v0, %v5372_v7 }
 0x3ed   : > { %v2341_v26 = vsub.f32 1.5, %v2340_v17  ;;  %v2154_v10 = vadd.f32 %v2153_v56, %v2152_v6  ;;  %v3714_v17 = vld [vmem:[%s3883_s13 + $0x60] sm:$0xff] }
 0x3ee   : > { %v2312_v41 = vadd.f32 1e-05, %v2304_v39  ;;  %v2079_v61 = vpop.f32.mrf.mxu0 }
 0x3ef   : > { %v2342_v29 = vmul.f32 %v3655_v53, %v2341_v26  ;;  %v2193_v8 = vmul.f32 %v5372_v7, %v2154_v10  ;;  %v2080_v59 = vadd.f32 %v5337_v44, %v2079_v61  ;;  %v3715_v61 = vld [vmem:[%s3883_s13 + $0x68] sm:$0xff] }
 0x3f0   : > { %3656 = vrsqrt.f32 %v2312_v41  ;;  %vm2353_vm2 = vweird.f32 %v2312_v41 }
 0x3f1   : > { %v2346_v28 = vsel %vm2345_vm15, %v3655_v53, %v2342_v29  ;;  %v5531_v13 = vsub.f32 %v2102_v47, %v2193_v8  ;;  %v5533_v12 = vsub.f32 %v2103_v51, %v2193_v8  ;;  %v2105_v24 = vadd.f32 %v3713_v31, %v2080_v59 }
 0x3f2   : > { %v2401_v63 = vmul.f32 %v2346_v28, %v5484_v43  ;;  %v2402_v43 = vmul.f32 %v2346_v28, %v5486_v37 }
 0x3f3   : > { %v2221_v55 = vmul.f32 %v5531_v13, %v5531_v13  ;;  %v2222_v14 = vmul.f32 %v5533_v12, %v5533_v12  ;;  %v2156_v30 = vsel %vm261_vm0, %v2105_v24, 0.0 }
 0x3f4   : > { %v2157_v1 = vadd.f32 %v2156_v30, %v2155_v20  ;;  %v2420_v25 = vmul.f32 %v5444_v16, %v2401_v63  ;;  %v2421_v3 = vmul.f32 %v5444_v16, %v2402_v43 }
 0x3f5   : > { %v2265_v15 = vsel %vm261_vm0, %v2221_v55, 0.0  ;;  %v2266_v47 = vsel %vm261_vm0, %v2222_v14, 0.0 }
 0x3f6   : > { %v3657_v45 = vpop.eup %3656  ;;  %v2267_v4 = vadd.f32 %v2266_v47, %v2265_v15  ;;  %v2158_v42 = vrot.slane %v2157_v1, 4  ;;  %v2082_v62 = vpop.f32.mrf.mxu0  ;;  %v5548_v34 = vadd.f32 %v5449_v40, %v2420_v25  ;;  %v5555_v5 = vadd.f32 %v5449_v40, %v2421_v3 }
 0x3f7   : > { %v2348_v46 = vmul.f32 %v3657_v45, %v2312_v41  ;;  %vm2354_vm1 = vweird.f32 %v3657_v45  ;;  %v2083_v53 = vadd.f32 %v5337_v44, %v2082_v62 }
 0x3f8   : > { %v2268_v51 = vrot.slane %v2267_v4, 4  ;;  %v2159_v54 = vadd.f32 %v2158_v42, %v2157_v1  ;;  %3315 = vmatmul.msk.f32.gmra.mxu1 %vm261_vm0, %v5548_v34  ;;  %vm2355_vm4 = vmor %vm2353_vm2, %vm2354_vm1 }
 0x3f9   : > { %v2349_v21 = vmul.f32 %v3657_v45, %v2348_v46  ;;  %v2106_v56 = vadd.f32 %v3714_v17, %v2083_v53 }
 0x3fa   : > { %v2269_v19 = vadd.f32 %v2268_v51, %v2267_v4  ;;  %v2160_v32 = vrot.slane %v2159_v54, 2 }
 0x3fb   : > { %v2350_v58 = vmul.f32 0.5, %v2349_v21  ;;  %v2164_v28 = vsel %vm261_vm0, %v2106_v56, 0.0 }
 0x3fc   : > { %v2270_v18 = vrot.slane %v2269_v19, 2  ;;  %v2161_v37 = vadd.f32 %v2160_v32, %v2159_v54 }
 0x3fd   : > { %v2351_v27 = vsub.f32 1.5, %v2350_v58 }
 0x3fe   : > { %v2271_v60 = vadd.f32 %v2270_v18, %v2269_v19  ;;  %v2162_v36 = vrot.slane %v2161_v37, 1  ;;  %v3716_v18 = vld [vmem:[%s3883_s13 + $0x70] sm:$0xff] }
 0x3ff   : > { %v2352_v33 = vmul.f32 %v3657_v45, %v2351_v27  ;;  %v2085_v6 = vpop.f32.mrf.mxu0 }
 0x400   : > { %v2272_v23 = vrot.slane %v2271_v60, 1  ;;  %v2163_v49 = vadd.f32 %v2162_v36, %v2161_v37  ;;  %3316 = vmatmul.msk.f32.gmra.mxu1 %vm261_vm0, %v5555_v5  ;;  %v2086_v57 = vadd.f32 %v5337_v44, %v2085_v6 }
 0x401   : > { %v2356_v0 = vsel %vm2355_vm4, %v3657_v45, %v2352_v33  ;;  %v3717_v33 = vld [vmem:[%s3883_s13 + $0x78] sm:$0xff]  ;;  %s209_s13 = sand.u32 1, %s3773_s16  }
 0x402   : > { %v2273_v39 = vadd.f32 %v2272_v23, %v2271_v60  ;;  %v2194_v26 = vmul.f32 %v5372_v7, %v2163_v49  ;;  %v2403_v10 = vmul.f32 %v2356_v0, %v5504_v52  ;;  %v2107_v29 = vadd.f32 %v3715_v61, %v2086_v57  ;;  %s3160_s6 = sshll.u32 %s209_s13, 7  ;;  %s3066_s19 = scalar_lea.sflag [#allocation3], %s209_s13 }
 0x403   : > { %v2404_v20 = vmul.f32 %v2356_v0, %v5506_v22  ;;  %s5800_s11 = scalar_lea.vmem [#allocation2], %s3160_s6 }
 0x404   : > { %v2305_v41 = vmul.f32 %v2273_v39, %v5372_v7  ;;  %v5565_v8 = vsub.f32 %v2104_v11, %v2194_v26  ;;  %v5567_v48 = vsub.f32 %v2105_v24, %v2194_v26  ;;  %v2422_v59 = vmul.f32 %v5444_v16, %v2403_v10  ;;  %s3079_s23 = sshll.u32 %s5800_s11, 4  ;;  %s3080_s23 = int_to_ptr.vmem [resolvable:$true] %s3079_s23 }
 0x405   : > { %v2165_v31 = vsel %vm261_vm0, %v2107_v29, 0.0  ;;  %v2423_v43 = vmul.f32 %v5444_v16, %v2404_v20 }
 0x406   : > { %v2313_v63 = vadd.f32 1e-05, %v2305_v41  ;;  %v2223_v55 = vmul.f32 %v5565_v8, %v5565_v8  ;;  %v2224_v52 = vmul.f32 %v5567_v48, %v5567_v48  ;;  %v2166_v14 = vadd.f32 %v2165_v31, %v2164_v28 }
 0x407   : > { %v5578_v11 = vadd.f32 %v5449_v40, %v2422_v59  ;;  %v5587_v21 = vadd.f32 %v5449_v40, %v2423_v43 }
 0x408   : > { %3658 = vrsqrt.f32 %v2313_v63  ;;  %v2274_v24 = vsel %vm261_vm0, %v2223_v55, 0.0  ;;  %v2275_v30 = vsel %vm261_vm0, %v2224_v52, 0.0  ;;  %v2167_v25 = vrot.slane %v2166_v14, 4  ;;  %v2088_v15 = vpop.f32.mrf.mxu0 }
 0x409   : > { %v2276_v1 = vadd.f32 %v2275_v30, %v2274_v24  ;;  %3317 = vmatmul.msk.f32.gmra.mxu1 %vm261_vm0, %v5578_v11  ;;  %v2089_v62 = vadd.f32 %v5337_v44, %v2088_v15  ;;  %vm2363_vm6 = vweird.f32 %v2313_v63 }
 0x40a   : > { %v2168_v45 = vadd.f32 %v2167_v25, %v2166_v14 }
 0x40b   : > { %v2277_v47 = vrot.slane %v2276_v1, 4  ;;  %v2108_v37 = vadd.f32 %v3716_v18, %v2089_v62 }
 0x40c   : > { %v2169_v4 = vrot.slane %v2168_v45, 2 }
 0x40d   : > { %v2278_v22 = vadd.f32 %v2277_v47, %v2276_v1  ;;  %v2173_v17 = vsel %vm261_vm0, %v2108_v37, 0.0 }
 0x40e   : > { %v3659_v42 = vpop.eup %3658  ;;  %v2170_v54 = vadd.f32 %v2169_v4, %v2168_v45 }
 0x40f   : > { %v2358_v46 = vmul.f32 %v3659_v42, %v2313_v63  ;;  %v2279_v51 = vrot.slane %v2278_v22, 2  ;;  %vm2364_vm5 = vweird.f32 %v3659_v42 }
 0x410   : > { %v2171_v3 = vrot.slane %v2170_v54, 1  ;;  %v2091_v58 = vpop.f32.mrf.mxu0  ;;  %vm2365_vm7 = vmor %vm2363_vm6, %vm2364_vm5 }
 0x411   : > { %v2359_v19 = vmul.f32 %v3659_v42, %v2358_v46  ;;  %v2280_v32 = vadd.f32 %v2279_v51, %v2278_v22  ;;  %3318 = vmatmul.msk.f32.gmra.mxu1 %vm261_vm0, %v5587_v21  ;;  %v2092_v27 = vadd.f32 %v5337_v44, %v2091_v58 }
 0x412   : > { %v2172_v36 = vadd.f32 %v2171_v3, %v2170_v54 }
 0x413   : > { %v2360_v53 = vmul.f32 0.5, %v2359_v19  ;;  %v2281_v60 = vrot.slane %v2280_v32, 1  ;;  %v2109_v23 = vadd.f32 %v3717_v33, %v2092_v27 }
 0x414   : > { %v2195_v0 = vmul.f32 %v5372_v7, %v2172_v36 }
 0x415   : > { %v2361_v49 = vsub.f32 1.5, %v2360_v53  ;;  %v2282_v6 = vadd.f32 %v2281_v60, %v2280_v32  ;;  %v2174_v57 = vsel %vm261_vm0, %v2109_v23, 0.0 }
 0x416   : > { %v5598_v10 = vsub.f32 %v2106_v56, %v2195_v0  ;;  %v5600_v44 = vsub.f32 %v2107_v29, %v2195_v0  ;;  %v2175_v61 = vadd.f32 %v2174_v57, %v2173_v17 }
 0x417   : > { %v2362_v39 = vmul.f32 %v3659_v42, %v2361_v49  ;;  %v2306_v26 = vmul.f32 %v2282_v6, %v5372_v7 }
 0x418   : > { %v2225_v28 = vmul.f32 %v5598_v10, %v5598_v10  ;;  %v2226_v31 = vmul.f32 %v5600_v44, %v5600_v44  ;;  %v2176_v63 = vrot.slane %v2175_v61, 4 }
 0x419   : > { %v2366_v41 = vsel %vm2365_vm7, %v3659_v42, %v2362_v39  ;;  %v2314_v59 = vadd.f32 1e-05, %v2306_v26 }
 0x41a   : > { %v2405_v55 = vmul.f32 %v2366_v41, %v5531_v13  ;;  %v2283_v52 = vsel %vm261_vm0, %v2225_v28, 0.0  ;;  %v2284_v56 = vsel %vm261_vm0, %v2226_v31, 0.0  ;;  %v2177_v14 = vadd.f32 %v2176_v63, %v2175_v61 }
 0x41b   : > { %3660 = vrsqrt.f32 %v2314_v59  ;;  %v2285_v29 = vadd.f32 %v2284_v56, %v2283_v52  ;;  %v2406_v24 = vmul.f32 %v2366_v41, %v5533_v12  ;;  %vm2373_vm9 = vweird.f32 %v2314_v59 }
 0x41c   : > { %v2424_v20 = vmul.f32 %v5444_v16, %v2405_v55  ;;  %v2178_v1 = vrot.slane %v2177_v14, 2 }
 0x41d   : > { %v2286_v30 = vrot.slane %v2285_v29, 4  ;;  %v2425_v4 = vmul.f32 %v5444_v16, %v2406_v24 }
 0x41e   : > { %v5612_v25 = vadd.f32 %v5449_v40, %v2424_v20  ;;  %v2179_v47 = vadd.f32 %v2178_v1, %v2177_v14  ;;  %v5649_v1 = vpop.permute.xlu2 %2453 }
 0x41f   : > { %v2287_v15 = vadd.f32 %v2286_v30, %v2285_v29  ;;  %v5619_v19 = vadd.f32 %v5449_v40, %v2425_v4 }
 0x420   : > { %3319 = vmatmul.msk.f32.gmra.mxu1 %vm261_vm0, %v5612_v25  ;;  %v2180_v22 = vrot.slane %v2179_v47, 1 }
 0x421   : > { %v3661_v13 = vpop.eup %3660  ;;  %v2288_v43 = vrot.slane %v2287_v15, 2 }
 0x422   : > { %v2368_v45 = vmul.f32 %v3661_v13, %v2314_v59  ;;  %v2181_v46 = vadd.f32 %v2180_v22, %v2179_v47  ;;  %vm2374_vm8 = vweird.f32 %v3661_v13 }
 0x423   : > { %v2289_v62 = vadd.f32 %v2288_v43, %v2287_v15  ;;  %vm2375_vm10 = vmor %vm2373_vm9, %vm2374_vm8 }
 0x424   : > { %v2369_v42 = vmul.f32 %v3661_v13, %v2368_v45  ;;  %v2196_v54 = vmul.f32 %v5372_v7, %v2181_v46 }
 0x425   : > { %v2290_v51 = vrot.slane %v2289_v62, 1 }
 0x426   : > { %v2370_v12 = vmul.f32 0.5, %v2369_v42  ;;  %v5621_v58 = vsub.f32 %v2108_v37, %v2196_v54  ;;  %v5623_v18 = vsub.f32 %v2109_v23, %v2196_v54 }
 0x427   : > { %v2291_v3 = vadd.f32 %v2290_v51, %v2289_v62 }
 0x428   : > { %v2371_v32 = vsub.f32 1.5, %v2370_v12  ;;  %3320 = vmatmul.msk.f32.gmra.mxu1 %vm261_vm0, %v5619_v19  ;;  %v2227_v60 = vmul.f32 %v5621_v58, %v5621_v58  ;;  %v2228_v36 = vmul.f32 %v5623_v18, %v5623_v18 }
 0x429   : > { %v2307_v53 = vmul.f32 %v2291_v3, %v5372_v7 }
 0x42a   : > { %v2372_v27 = vmul.f32 %v3661_v13, %v2371_v32  ;;  %v2292_v37 = vsel %vm261_vm0, %v2227_v60, 0.0  ;;  %v2293_v23 = vsel %vm261_vm0, %v2228_v36, 0.0 }
 0x42b   : > { %v2315_v49 = vadd.f32 1e-05, %v2307_v53  ;;  %v2294_v6 = vadd.f32 %v2293_v23, %v2292_v37 }
 0x42c   : > { %v2376_v33 = vsel %vm2375_vm10, %v3661_v13, %v2372_v27 }
 0x42d   : > { %v2407_v0 = vmul.f32 %v2376_v33, %v5565_v8  ;;  %3662 = vrsqrt.f32 %v2315_v49  ;;  %v2295_v17 = vrot.slane %v2294_v6, 4  ;;  %v2408_v39 = vmul.f32 %v2376_v33, %v5567_v48 }
 0x42e   : > { %vm2383_vm12 = vweird.f32 %v2315_v49 }
 0x42f   : > { %v2426_v57 = vmul.f32 %v5444_v16, %v2407_v0  ;;  %v2296_v26 = vadd.f32 %v2295_v17, %v2294_v6  ;;  %v2427_v63 = vmul.f32 %v5444_v16, %v2408_v39 }
 0x431   : > { %v5638_v61 = vadd.f32 %v5449_v40, %v2426_v57  ;;  %v2297_v41 = vrot.slane %v2296_v26, 2  ;;  %v5644_v48 = vadd.f32 %v5449_v40, %v2427_v63 }
 0x433   : > { %3321 = vmatmul.msk.f32.gmra.mxu1 %vm261_vm0, %v5638_v61  ;;  %v3663_v59 = vpop.eup %3662  ;;  %v2298_v31 = vadd.f32 %v2297_v41, %v2296_v26 }
 0x434   : > { %v2378_v28 = vmul.f32 %v3663_v59, %v2315_v49  ;;  %vm2384_vm11 = vweird.f32 %v3663_v59 }
 0x435   : > { %v2521_v8 = vpop.f32.mrf.mxu1  ;;  %v2299_v52 = vrot.slane %v2298_v31, 1  ;;  %vm2385_vm13 = vmor %vm2383_vm12, %vm2384_vm11 }
 0x436   : > { %v2379_v55 = vmul.f32 %v3663_v59, %v2378_v28  ;;  %v2522_v17 = vadd.f32 %v2521_v8, %v5649_v1 }
 0x437   : > { %v2300_v29 = vadd.f32 %v2299_v52, %v2298_v31 }
 0x438   : > { %v2380_v56 = vmul.f32 0.5, %v2379_v55  ;;  %v2569_v57 = vmax.f32 %v2522_v17, 0.0 }
 0x439   : > { %v2308_v20 = vmul.f32 %v2300_v29, %v5372_v7 }
 0x43a   : > { %v2381_v14 = vsub.f32 1.5, %v2380_v56 }
 0x43b   : > { %3322 = vmatmul.msk.f32.gmra.mxu1 %vm261_vm0, %v5644_v48  ;;  %v2316_v30 = vadd.f32 1e-05, %v2308_v20 }
 0x43c   : > { %v2382_v24 = vmul.f32 %v3663_v59, %v2381_v14 }
 0x43d   : > { %v2524_v15 = vpop.f32.mrf.mxu1  ;;  %3664 = vrsqrt.f32 %v2316_v30  ;;  %vm2393_vm15 = vweird.f32 %v2316_v30 }
 0x43e   : > { %v2386_v47 = vsel %vm2385_vm13, %v3663_v59, %v2382_v24  ;;  %v2525_v13 = vadd.f32 %v2524_v15, %v5649_v1 }
 0x43f   : > { %v2409_v45 = vmul.f32 %v2386_v47, %v5598_v10  ;;  %v2410_v4 = vmul.f32 %v2386_v47, %v5600_v44 }
 0x440   : > { %v2570_v43 = vmax.f32 %v2525_v13, 0.0 }
 0x441   : > { %v2428_v22 = vmul.f32 %v5444_v16, %v2409_v45  ;;  %v2429_v51 = vmul.f32 %v5444_v16, %v2410_v4 }
 0x442   : > { %3328 = vmatmul.msk.f32.vlgmr.msra.gmra.mxu2 %vm1553_vm3, %v2570_v43 }
 0x443   : > { %v5657_v42 = vadd.f32 %v5449_v40, %v2428_v22  ;;  %v3665_v62 = vpop.eup %3664  ;;  %v5663_v32 = vadd.f32 %v5449_v40, %v2429_v51 }
 0x444   : > { %v2388_v46 = vmul.f32 %v3665_v62, %v2316_v30  ;;  %vm2394_vm14 = vweird.f32 %v3665_v62 }
 0x445   : > { %3323 = vmatmul.msk.f32.gmra.mxu1 %vm261_vm0, %v5657_v42  ;;  %vm2395_vm1 = vmor %vm2393_vm15, %vm2394_vm14 }
 0x446   : > { %v2389_v12 = vmul.f32 %v3665_v62, %v2388_v46 }
 0x448   : > { %v2390_v54 = vmul.f32 0.5, %v2389_v12 }
 0x44a   : > { %v2391_v10 = vsub.f32 1.5, %v2390_v54 }
 0x44c   : > { %v2392_v3 = vmul.f32 %v3665_v62, %v2391_v10 }
 0x44d   : > { %3324 = vmatmul.msk.f32.gmra.mxu1 %vm261_vm0, %v5663_v32 }
 0x44e   : > { %v2396_v44 = vsel %vm2395_vm1, %v3665_v62, %v2392_v3 }
 0x44f   : > { %v2411_v27 = vmul.f32 %v2396_v44, %v5621_v58  ;;  %v2412_v60 = vmul.f32 %v2396_v44, %v5623_v18 }
 0x451   : > { %v2430_v53 = vmul.f32 %v5444_v16, %v2411_v27  ;;  %v2431_v23 = vmul.f32 %v5444_v16, %v2412_v60 }
 0x453   : > { %v5671_v36 = vadd.f32 %v5449_v40, %v2430_v53  ;;  %v5679_v58 = vadd.f32 %v5449_v40, %v2431_v23 }
 0x455   : > { %v2527_v33 = vpop.f32.mrf.mxu1  ;;  %3325 = vmatmul.msk.f32.gmra.mxu1 %vm261_vm0, %v5671_v36 }
 0x456   : > { %v2528_v49 = vadd.f32 %v2527_v33, %v5649_v1 }
 0x458   : > { %v2571_v37 = vmax.f32 %v2528_v49, 0.0  ;;  %v5710_v49 = vpop.permute.xlu0 %2585 }
 0x45a   : > { %3329 = vmatmul.msk.f32.gmra.mxu2 %vm1553_vm3, %v2571_v37 }
 0x45d   : > { %v2530_v6 = vpop.f32.mrf.mxu1  ;;  %3326 = vmatmul.msk.f32.gmra.mxu1 %vm261_vm0, %v5679_v58 }
 0x45e   : > { %v2531_v18 = vadd.f32 %v2530_v6, %v5649_v1 }
 0x460   : > { %v2572_v0 = vmax.f32 %v2531_v18, 0.0 }
 0x462   : > { %3330 = vmatmul.msk.f32.gmra.mxu2 %vm1553_vm3, %v2572_v0 }
 0x465   : > { %3327 = vmatmul.msk.f32.vlgmr.msra.gmra.mxu1 %vm1553_vm3, %v2569_v57 }
 0x475   : > { %v2533_v16 = vpop.f32.mrf.mxu1 }
 0x476   : > { %v2534_v39 = vadd.f32 %v2533_v16, %v5649_v1 }
 0x478   : > { %v2573_v26 = vmax.f32 %v2534_v39, 0.0 }
 0x47a   : > { %3331 = vmatmul.msk.f32.gmra.mxu2 %vm1553_vm3, %v2573_v26 }
 0x47d   : > { %v2536_v40 = vpop.f32.mrf.mxu1 }
 0x47e   : > { %v2537_v41 = vadd.f32 %v2536_v40, %v5649_v1 }
 0x480   : > { %v2574_v59 = vmax.f32 %v2537_v41, 0.0 }
 0x482   : > { %3332 = vmatmul.msk.f32.gmra.mxu2 %vm1553_vm3, %v2574_v59 }
 0x486   : > { %v2539_v28 = vpop.f32.mrf.mxu1 }
 0x487   : > { %v2540_v31 = vadd.f32 %v2539_v28, %v5649_v1 }
 0x489   : > { %v2575_v63 = vmax.f32 %v2540_v31, 0.0 }
 0x48b   : > { %3333 = vmatmul.msk.f32.gmra.mxu2 %vm1553_vm3, %v2575_v63 }
 0x48e   : > { %v2542_v8 = vpop.f32.mrf.mxu1 }
 0x48f   : > { %v2543_v55 = vadd.f32 %v2542_v8, %v5649_v1 }
 0x491   : > { %v2576_v52 = vmax.f32 %v2543_v55, 0.0 }
 0x493   : > { %3334 = vmatmul.msk.f32.gmra.mxu2 %vm1553_vm3, %v2576_v52 }
 0x49d   : > { %v2545_v56 = vpop.f32.mrf.mxu1 }
 0x49e   : > { %v2546_v29 = vadd.f32 %v2545_v56, %v5649_v1 }
 0x4a0   : > { %v2577_v14 = vmax.f32 %v2546_v29, 0.0 }
 0x4a2   : > { %3335 = vmatmul.msk.f32.gmra.mxu2 %vm1553_vm3, %v2577_v14 }
 0x4a5   : > { %v2548_v20 = vpop.f32.mrf.mxu1 }
 0x4a6   : > { %v2549_v24 = vadd.f32 %v2548_v20, %v5649_v1 }
 0x4a8   : > { %v2578_v30 = vmax.f32 %v2549_v24, 0.0 }
 0x4aa   : > { %3336 = vmatmul.msk.f32.gmra.mxu2 %vm1553_vm3, %v2578_v30 }
 0x4b0   : > { %v2551_v15 = vpop.f32.mrf.mxu1 }
 0x4b1   : > { %v2552_v47 = vadd.f32 %v2551_v15, %v5649_v1 }
 0x4b3   : > { %v2579_v13 = vmax.f32 %v2552_v47, 0.0 }
 0x4b5   : > { %3337 = vmatmul.msk.f32.gmra.mxu2 %vm1553_vm3, %v2579_v13 }
 0x4b8   : > { %v2554_v45 = vpop.f32.mrf.mxu1 }
 0x4b9   : > { %v2555_v43 = vadd.f32 %v2554_v45, %v5649_v1 }
 0x4bb   : > { %v2580_v22 = vmax.f32 %v2555_v43, 0.0 }
 0x4bd   : > { %3338 = vmatmul.msk.f32.gmra.mxu2 %vm1553_vm3, %v2580_v22 }
 0x4c2   : > { %v2557_v4 = vpop.f32.mrf.mxu1 }
 0x4c3   : > { %v2558_v62 = vadd.f32 %v2557_v4, %v5649_v1 }
 0x4c5   : > { %v2581_v46 = vmax.f32 %v2558_v62, 0.0  ;;  %v2656_v3 = vpop.f32.mrf.mxu2 }
 0x4c6   : > { %v2657_v23 = vadd.f32 %v2656_v3, %v5710_v49 }
 0x4c7   : > { %3339 = vmatmul.msk.f32.gmra.mxu2 %vm1553_vm3, %v2581_v46 }
 0x4c8   : > { %v2702_v0 = vadd.f32 %v2657_v23, %v5473_v35 }
 0x4ca   : > { %v2560_v12 = vpop.f32.mrf.mxu1  ;;  %v2718_v40 = vsel %vm261_vm0, %v2702_v0, 0.0 }
 0x4cb   : > { %v2561_v51 = vadd.f32 %v2560_v12, %v5649_v1 }
 0x4cd   : > { %v2582_v54 = vmax.f32 %v2561_v51, 0.0 }
 0x4cf   : > { %3340 = vmatmul.msk.f32.gmra.mxu2 %vm1553_vm3, %v2582_v54 }
 0x4d2   : > { %v2563_v10 = vpop.f32.mrf.mxu1 }
 0x4d3   : > { %v2564_v44 = vadd.f32 %v2563_v10, %v5649_v1 }
 0x4d5   : > { %v2583_v27 = vmax.f32 %v2564_v44, 0.0 }
 0x4d7   : > { %3341 = vmatmul.msk.f32.gmra.mxu2 %vm1553_vm3, %v2583_v27 }
 0x4da   : > { %v2566_v53 = vpop.f32.mrf.mxu1 }
 0x4db   : > { %v2567_v60 = vadd.f32 %v2566_v53, %v5649_v1 }
 0x4dd   : > { %v2659_v33 = vpop.f32.mrf.mxu2  ;;  %v2584_v37 = vmax.f32 %v2567_v60, 0.0 }
 0x4de   : > { %v2660_v6 = vadd.f32 %v2659_v33, %v5710_v49 }
 0x4df   : > { %3342 = vmatmul.msk.f32.gmra.mxu2 %vm1553_vm3, %v2584_v37 }
 0x4e0   : > { %v2703_v16 = vadd.f32 %v2660_v6, %v5498_v9 }
 0x4e2   : > { %v2653_v18 = vpop.f32.mrf.mxu1  ;;  %v2726_v59 = vsel %vm261_vm0, %v2703_v16, 0.0 }
 0x4e3   : > { %v2654_v17 = vadd.f32 %v2653_v18, %v5710_v49 }
 0x4e5   : > { %v2662_v57 = vpop.f32.mrf.mxu2  ;;  %v2701_v39 = vadd.f32 %v2654_v17, %v5455_v50 }
 0x4e6   : > { %v2663_v1 = vadd.f32 %v2662_v57, %v5710_v49 }
 0x4e7   : > { %v2717_v41 = vsel %vm261_vm0, %v2701_v39, 0.0 }
 0x4e8   : > { %v2704_v26 = vadd.f32 %v2663_v1, %v5520_v38  ;;  %v2719_v28 = vadd.f32 %v2718_v40, %v2717_v41 }
 0x4ea   : > { %v2727_v35 = vsel %vm261_vm0, %v2704_v26, 0.0  ;;  %v2720_v63 = vrot.slane %v2719_v28, 4 }
 0x4eb   : > { %v2728_v31 = vadd.f32 %v2727_v35, %v2726_v59 }
 0x4ec   : > { %v2721_v55 = vadd.f32 %v2720_v63, %v2719_v28 }
 0x4ed   : > { %v2729_v8 = vrot.slane %v2728_v31, 4 }
 0x4ee   : > { %v2722_v52 = vrot.slane %v2721_v55, 2 }
 0x4ef   : > { %v2730_v9 = vadd.f32 %v2729_v8, %v2728_v31 }
 0x4f0   : > { %v2723_v29 = vadd.f32 %v2722_v52, %v2721_v55 }
 0x4f1   : > { %v2731_v56 = vrot.slane %v2730_v9, 2 }
 0x4f2   : > { %v2724_v14 = vrot.slane %v2723_v29, 1 }
 0x4f3   : > { %v2732_v50 = vadd.f32 %v2731_v56, %v2730_v9 }
 0x4f4   : > { %v2725_v20 = vadd.f32 %v2724_v14, %v2723_v29 }
 0x4f5   : > { %v2733_v38 = vrot.slane %v2732_v50, 1 }
 0x4f6   : > { %v2789_v30 = vmul.f32 %v2725_v20, %v5372_v7 }
 0x4f7   : > { %v2734_v24 = vadd.f32 %v2733_v38, %v2732_v50 }
 0x4f8   : > { %v5727_v47 = vsub.f32 %v2701_v39, %v2789_v30  ;;  %v5729_v13 = vsub.f32 %v2702_v0, %v2789_v30 }
 0x4f9   : > { %v2790_v15 = vmul.f32 %v2734_v24, %v5372_v7 }
 0x4fa   : > { %v2813_v22 = vmul.f32 %v5727_v47, %v5727_v47  ;;  %v2814_v4 = vmul.f32 %v5729_v13, %v5729_v13 }
 0x4fb   : > { %v5731_v45 = vsub.f32 %v2703_v16, %v2790_v15  ;;  %v5733_v43 = vsub.f32 %v2704_v26, %v2790_v15 }
 0x4fc   : > { %v2829_v51 = vsel %vm261_vm0, %v2813_v22, 0.0  ;;  %v2830_v54 = vsel %vm261_vm0, %v2814_v4, 0.0 }
 0x4fd   : > { %v2815_v62 = vmul.f32 %v5731_v45, %v5731_v45  ;;  %v2816_v46 = vmul.f32 %v5733_v43, %v5733_v43  ;;  %v2665_v12 = vpop.f32.mrf.mxu2  ;;  %v2831_v10 = vadd.f32 %v2830_v54, %v2829_v51 }
 0x4fe   : > { %v2666_v33 = vadd.f32 %v2665_v12, %v5710_v49 }
 0x4ff   : > { %v2838_v3 = vsel %vm261_vm0, %v2815_v62, 0.0  ;;  %v2839_v44 = vsel %vm261_vm0, %v2816_v46, 0.0  ;;  %v2832_v53 = vrot.slane %v2831_v10, 4 }
 0x500   : > { %v2840_v27 = vadd.f32 %v2839_v44, %v2838_v3  ;;  %v2705_v17 = vadd.f32 %v2666_v33, %v5548_v34 }
 0x501   : > { %v2833_v37 = vadd.f32 %v2832_v53, %v2831_v10 }
 0x502   : > { %v2841_v60 = vrot.slane %v2840_v27, 4  ;;  %v2735_v41 = vsel %vm261_vm0, %v2705_v17, 0.0 }
 0x503   : > { %v2834_v6 = vrot.slane %v2833_v37, 2 }
 0x504   : > { %v2842_v23 = vadd.f32 %v2841_v60, %v2840_v27 }
 0x505   : > { %v2668_v18 = vpop.f32.mrf.mxu2  ;;  %v2835_v16 = vadd.f32 %v2834_v6, %v2833_v37 }
 0x506   : > { %v2843_v0 = vrot.slane %v2842_v23, 2  ;;  %v2669_v57 = vadd.f32 %v2668_v18, %v5710_v49 }
 0x507   : > { %v2836_v26 = vrot.slane %v2835_v16, 1 }
 0x508   : > { %v2844_v1 = vadd.f32 %v2843_v0, %v2842_v23  ;;  %v2706_v39 = vadd.f32 %v2669_v57, %v5555_v5 }
 0x509   : > { %v2837_v28 = vadd.f32 %v2836_v26, %v2835_v16 }
 0x50a   : > { %v2845_v40 = vrot.slane %v2844_v1, 1  ;;  %v2736_v59 = vsel %vm261_vm0, %v2706_v39, 0.0 }
 0x50b   : > { %v2737_v35 = vadd.f32 %v2736_v59, %v2735_v41  ;;  %v2901_v63 = vmul.f32 %v2837_v28, %v5372_v7 }
 0x50c   : > { %v2846_v31 = vadd.f32 %v2845_v40, %v2844_v1 }
 0x50d   : > { %v2738_v8 = vrot.slane %v2737_v35, 4  ;;  %v2909_v9 = vadd.f32 1e-05, %v2901_v63 }
 0x50e   : > { %v2902_v34 = vmul.f32 %v2846_v31, %v5372_v7  ;;  %v2671_v55 = vpop.f32.mrf.mxu2 }
 0x50f   : > { %v2739_v52 = vadd.f32 %v2738_v8, %v2737_v35  ;;  %3666 = vrsqrt.f32 %v2909_v9  ;;  %v2672_v29 = vadd.f32 %v2671_v55, %v5710_v49  ;;  %vm2923_vm4 = vweird.f32 %v2909_v9 }
 0x510   : > { %v2910_v56 = vadd.f32 1e-05, %v2902_v34  ;;  %v5785_v34 = vpop.permute.xlu1 %3030 }
 0x511   : > { %v2740_v5 = vrot.slane %v2739_v52, 2  ;;  %v5757_v38 = vadd.f32 %v2672_v29, %v5578_v11 }
 0x512   : > { %3668 = vrsqrt.f32 %v2910_v56  ;;  %vm2933_vm6 = vweird.f32 %v2910_v56 }
 0x513   : > { %v2741_v50 = vadd.f32 %v2740_v5, %v2739_v52  ;;  %v2744_v54 = vsel %vm261_vm0, %v5757_v38, 0.0 }
 0x515   : > { %v2742_v14 = vrot.slane %v2741_v50, 1  ;;  %v3667_v24 = vpop.eup %3666 }
 0x516   : > { %v2674_v20 = vpop.f32.mrf.mxu2  ;;  %v2918_v4 = vmul.f32 %v3667_v24, %v2909_v9  ;;  %vm2924_vm3 = vweird.f32 %v3667_v24 }
 0x517   : > { %v2743_v30 = vadd.f32 %v2742_v14, %v2741_v50  ;;  %v2675_v15 = vadd.f32 %v2674_v20, %v5710_v49  ;;  %vm2925_vm5 = vmor %vm2923_vm4, %vm2924_vm3 }
 0x518   : > { %v3669_v22 = vpop.eup %3668  ;;  %v2919_v51 = vmul.f32 %v3667_v24, %v2918_v4 }
 0x519   : > { %v2928_v62 = vmul.f32 %v3669_v22, %v2910_v56  ;;  %v2791_v46 = vmul.f32 %v2743_v30, %v5372_v7  ;;  %v5762_v12 = vadd.f32 %v2675_v15, %v5587_v21  ;;  %vm2934_vm2 = vweird.f32 %v3669_v22 }
 0x51a   : > { %v2920_v27 = vmul.f32 0.5, %v2919_v51  ;;  %vm2935_vm7 = vmor %vm2933_vm6, %vm2934_vm2 }
 0x51b   : > { %v2929_v10 = vmul.f32 %v3669_v22, %v2928_v62  ;;  %v5766_v11 = vsub.f32 %v2705_v17, %v2791_v46  ;;  %v5768_v3 = vsub.f32 %v2706_v39, %v2791_v46  ;;  %v2745_v44 = vsel %vm261_vm0, %v5762_v12, 0.0 }
 0x51c   : > { %v2746_v53 = vadd.f32 %v2745_v44, %v2744_v54  ;;  %v2921_v37 = vsub.f32 1.5, %v2920_v27 }
 0x51d   : > { %v2930_v60 = vmul.f32 0.5, %v2929_v10  ;;  %v2817_v21 = vmul.f32 %v5766_v11, %v5766_v11  ;;  %v2818_v33 = vmul.f32 %v5768_v3, %v5768_v3 }
 0x51e   : > { %v2747_v23 = vrot.slane %v2746_v53, 4  ;;  %v2922_v17 = vmul.f32 %v3667_v24, %v2921_v37 }
 0x51f   : > { %v2931_v6 = vsub.f32 1.5, %v2930_v60  ;;  %v2847_v18 = vsel %vm261_vm0, %v2817_v21, 0.0  ;;  %v2848_v0 = vsel %vm261_vm0, %v2818_v33, 0.0 }
 0x520   : > { %v2849_v57 = vadd.f32 %v2848_v0, %v2847_v18  ;;  %v2748_v16 = vadd.f32 %v2747_v23, %v2746_v53  ;;  %v2926_v39 = vsel %vm2925_vm5, %v3667_v24, %v2922_v17 }
 0x521   : > { %v2932_v1 = vmul.f32 %v3669_v22, %v2931_v6  ;;  %v2997_v41 = vmul.f32 %v2926_v39, %v5727_v47  ;;  %v2998_v59 = vmul.f32 %v2926_v39, %v5729_v13  ;;  %v5792_v47 = vld [vmem:[%s5994_s3 + $0x1] ss:$0 sm:$0xff] }
 0x522   : > { %v2850_v26 = vrot.slane %v2849_v57, 4  ;;  %v2749_v40 = vrot.slane %v2748_v16, 2 }
 0x523   : > { %v2936_v28 = vsel %vm2935_vm7, %v3669_v22, %v2932_v1  ;;  %v3014_v55 = vmul.f32 %v5465_v2, %v2997_v41  ;;  %v3015_v9 = vmul.f32 %v5465_v2, %v2998_v59 }
 0x524   : > { %v2999_v35 = vmul.f32 %v2936_v28, %v5731_v45  ;;  %v3000_v31 = vmul.f32 %v2936_v28, %v5733_v43  ;;  %v2851_v63 = vadd.f32 %v2850_v26, %v2849_v57  ;;  %v2750_v8 = vadd.f32 %v2749_v40, %v2748_v16 }
 0x525   : > { %v2677_v52 = vpop.f32.mrf.mxu2  ;;  %v3033_v5 = vadd.f32 %v5785_v34, %v3014_v55  ;;  %v3034_v29 = vadd.f32 %v5785_v34, %v3015_v9 }
 0x526   : > { %v3016_v13 = vmul.f32 %v5792_v47, %v2999_v35  ;;  %v3017_v45 = vmul.f32 %v5792_v47, %v3000_v31  ;;  %v2852_v56 = vrot.slane %v2851_v63, 2  ;;  %v2751_v43 = vrot.slane %v2750_v8, 1 }
 0x527   : > { %3049 = vst.msk [vmem:[%s5800_s11] sm:$0xff] %vm261_vm0, %v3033_v5  ;;  %v2678_v24 = vadd.f32 %v2677_v52, %v5710_v49 }
 0x528   : > { %v2853_v50 = vadd.f32 %v2852_v56, %v2851_v63  ;;  %v2752_v14 = vadd.f32 %v2751_v43, %v2750_v8  ;;  %v3035_v2 = vadd.f32 %v5785_v34, %v3016_v13  ;;  %v3036_v20 = vadd.f32 %v5785_v34, %v3017_v45  ;;  %3050 = vst.msk [vmem:[%s5800_s11 + $0x8] sm:$0xff] %vm261_vm0, %v3034_v29 }
 0x529   : > { %v2709_v46 = vadd.f32 %v2678_v24, %v5612_v25 }
 0x52a   : > { %v2854_v30 = vrot.slane %v2853_v50, 1  ;;  %v2792_v15 = vmul.f32 %v2752_v14, %v5372_v7  ;;  %3051 = vst.msk [vmem:[%s5800_s11 + $0x10] sm:$0xff] %vm261_vm0, %v3035_v2 }
 0x52b   : > { %3052 = vst.msk [vmem:[%s5800_s11 + $0x18] sm:$0xff] %vm261_vm0, %v3036_v20  ;;  %v2753_v25 = vsel %vm261_vm0, %v2709_v46, 0.0 }
 0x52c   : > { %v2855_v22 = vadd.f32 %v2854_v30, %v2853_v50  ;;  %v5811_v4 = vsub.f32 %v5757_v38, %v2792_v15  ;;  %v5814_v62 = vsub.f32 %v5762_v12, %v2792_v15 }
 0x52d   : > { %v2680_v51 = vpop.f32.mrf.mxu2 }
 0x52e   : > { %v2903_v54 = vmul.f32 %v2855_v22, %v5372_v7  ;;  %v2819_v10 = vmul.f32 %v5811_v4, %v5811_v4  ;;  %v2820_v44 = vmul.f32 %v5814_v62, %v5814_v62  ;;  %v2681_v27 = vadd.f32 %v2680_v51, %v5710_v49 }
 0x530   : > { %v2911_v38 = vadd.f32 1e-05, %v2903_v54  ;;  %v2856_v53 = vsel %vm261_vm0, %v2819_v10, 0.0  ;;  %v2857_v12 = vsel %vm261_vm0, %v2820_v44, 0.0  ;;  %v2710_v60 = vadd.f32 %v2681_v27, %v5619_v19 }
 0x531   : > { %v2858_v21 = vadd.f32 %v2857_v12, %v2856_v53 }
 0x532   : > { %3670 = vrsqrt.f32 %v2911_v38  ;;  %v2754_v33 = vsel %vm261_vm0, %v2710_v60, 0.0  ;;  %vm2943_vm9 = vweird.f32 %v2911_v38 }
 0x533   : > { %v2859_v37 = vrot.slane %v2858_v21, 4  ;;  %v2755_v23 = vadd.f32 %v2754_v33, %v2753_v25 }
 0x535   : > { %v2860_v6 = vadd.f32 %v2859_v37, %v2858_v21  ;;  %v2756_v18 = vrot.slane %v2755_v23, 4 }
 0x537   : > { %v2861_v0 = vrot.slane %v2860_v6, 2  ;;  %v2757_v17 = vadd.f32 %v2756_v18, %v2755_v23 }
 0x538   : > { %v3671_v57 = vpop.eup %3670  ;;  %v2683_v16 = vpop.f32.mrf.mxu2 }
 0x539   : > { %v2938_v1 = vmul.f32 %v3671_v57, %v2911_v38  ;;  %v2862_v39 = vadd.f32 %v2861_v0, %v2860_v6  ;;  %v2758_v26 = vrot.slane %v2757_v17, 2  ;;  %v2684_v59 = vadd.f32 %v2683_v16, %v5710_v49 }
 0x53a   : > { %vm2944_vm8 = vweird.f32 %v3671_v57 }
 0x53b   : > { %v2939_v40 = vmul.f32 %v3671_v57, %v2938_v1  ;;  %v2863_v41 = vrot.slane %v2862_v39, 1  ;;  %v2759_v19 = vadd.f32 %v2758_v26, %v2757_v17  ;;  %v2711_v9 = vadd.f32 %v2684_v59, %v5638_v61  ;;  %vm2945_vm10 = vmor %vm2943_vm9, %vm2944_vm8 }
 0x53d   : > { %v2940_v28 = vmul.f32 0.5, %v2939_v40  ;;  %v2864_v35 = vadd.f32 %v2863_v41, %v2862_v39  ;;  %v2760_v31 = vrot.slane %v2759_v19, 1  ;;  %v2762_v24 = vsel %vm261_vm0, %v2711_v9, 0.0 }
 0x53f   : > { %v2941_v63 = vsub.f32 1.5, %v2940_v28  ;;  %v2904_v8 = vmul.f32 %v2864_v35, %v5372_v7  ;;  %v2761_v55 = vadd.f32 %v2760_v31, %v2759_v19 }
 0x540   : > { %v2686_v52 = vpop.f32.mrf.mxu2 }
 0x541   : > { %v2942_v13 = vmul.f32 %v3671_v57, %v2941_v63  ;;  %v2912_v45 = vadd.f32 1e-05, %v2904_v8  ;;  %v2793_v56 = vmul.f32 %v2761_v55, %v5372_v7  ;;  %v2687_v43 = vadd.f32 %v2686_v52, %v5710_v49 }
 0x543   : > { %v2946_v5 = vsel %vm2945_vm10, %v3671_v57, %v2942_v13  ;;  %3672 = vrsqrt.f32 %v2912_v45  ;;  %v5835_v29 = vsub.f32 %v2709_v46, %v2793_v56  ;;  %v5839_v2 = vsub.f32 %v2710_v60, %v2793_v56 }
 0x544   : > { %v3001_v50 = vmul.f32 %v2946_v5, %v5766_v11  ;;  %v3002_v14 = vmul.f32 %v2946_v5, %v5768_v3  ;;  %v2712_v61 = vadd.f32 %v2687_v43, %v5644_v48  ;;  %vm2953_vm12 = vweird.f32 %v2912_v45 }
 0x545   : > { %v2821_v20 = vmul.f32 %v5835_v29, %v5835_v29  ;;  %v2822_v11 = vmul.f32 %v5839_v2, %v5839_v2 }
 0x546   : > { %v3018_v30 = vmul.f32 %v5792_v47, %v3001_v50  ;;  %v3019_v15 = vmul.f32 %v5792_v47, %v3002_v14  ;;  %v2763_v3 = vsel %vm261_vm0, %v2712_v61, 0.0 }
 0x547   : > { %v2865_v22 = vsel %vm261_vm0, %v2821_v20, 0.0  ;;  %v2764_v46 = vadd.f32 %v2763_v3, %v2762_v24  ;;  %v2866_v54 = vsel %vm261_vm0, %v2822_v11, 0.0 }
 0x548   : > { %v3037_v48 = vadd.f32 %v5785_v34, %v3018_v30  ;;  %v3038_v51 = vadd.f32 %v5785_v34, %v3019_v15  ;;  %v2867_v44 = vadd.f32 %v2866_v54, %v2865_v22 }
 0x549   : > { %v3673_v10 = vpop.eup %3672  ;;  %v2765_v27 = vrot.slane %v2764_v46, 4 }
 0x54a   : > { %v2948_v38 = vmul.f32 %v3673_v10, %v2912_v45  ;;  %3053 = vst.msk [vmem:[%s5800_s11 + $0x20] sm:$0xff] %vm261_vm0, %v3037_v48  ;;  %v2868_v53 = vrot.slane %v2867_v44, 4  ;;  %v2689_v60 = vpop.f32.mrf.mxu2  ;;  %vm2954_vm11 = vweird.f32 %v3673_v10 }
 0x54b   : > { %3054 = vst.msk [vmem:[%s5800_s11 + $0x28] sm:$0xff] %vm261_vm0, %v3038_v51  ;;  %v2766_v12 = vadd.f32 %v2765_v27, %v2764_v46  ;;  %v2690_v0 = vadd.f32 %v2689_v60, %v5710_v49  ;;  %vm2955_vm13 = vmor %vm2953_vm12, %vm2954_vm11 }
 0x54c   : > { %v2949_v21 = vmul.f32 %v3673_v10, %v2948_v38  ;;  %v2869_v25 = vadd.f32 %v2868_v53, %v2867_v44 }
 0x54d   : > { %v2767_v33 = vrot.slane %v2766_v12, 2  ;;  %v2713_v41 = vadd.f32 %v2690_v0, %v5657_v42 }
 0x54e   : > { %v2950_v37 = vmul.f32 0.5, %v2949_v21  ;;  %v2870_v23 = vrot.slane %v2869_v25, 2 }
 0x54f   : > { %v2768_v6 = vadd.f32 %v2767_v33, %v2766_v12 }
 0x550   : > { %v2951_v18 = vsub.f32 1.5, %v2950_v37  ;;  %v2871_v17 = vadd.f32 %v2870_v23, %v2869_v25 }
 0x551   : > { %v2769_v57 = vrot.slane %v2768_v6, 1 }
 0x552   : > { %v2952_v16 = vmul.f32 %v3673_v10, %v2951_v18  ;;  %v2872_v1 = vrot.slane %v2871_v17, 1  ;;  %v2692_v26 = vpop.f32.mrf.mxu2 }
 0x553   : > { %v2770_v39 = vadd.f32 %v2769_v57, %v2768_v6  ;;  %v2693_v19 = vadd.f32 %v2692_v26, %v5710_v49 }
 0x554   : > { %v2956_v40 = vsel %vm2955_vm13, %v3673_v10, %v2952_v16  ;;  %v2873_v35 = vadd.f32 %v2872_v1, %v2871_v17 }
 0x555   : > { %v3003_v59 = vmul.f32 %v2956_v40, %v5811_v4  ;;  %v3004_v28 = vmul.f32 %v2956_v40, %v5814_v62  ;;  %v2794_v31 = vmul.f32 %v2770_v39, %v5372_v7  ;;  %v2714_v63 = vadd.f32 %v2693_v19, %v5663_v32 }
 0x556   : > { %v2905_v52 = vmul.f32 %v2873_v35, %v5372_v7  ;;  %v2771_v4 = vsel %vm261_vm0, %v2713_v41, 0.0 }
 0x557   : > { %v3020_v8 = vmul.f32 %v5792_v47, %v3003_v59  ;;  %v3021_v55 = vmul.f32 %v5792_v47, %v3004_v28  ;;  %v5868_v42 = vsub.f32 %v2711_v9, %v2794_v31  ;;  %v5870_v13 = vsub.f32 %v2712_v61, %v2794_v31 }
 0x558   : > { %v2772_v62 = vsel %vm261_vm0, %v2714_v63, 0.0  ;;  %v2913_v32 = vadd.f32 1e-05, %v2905_v52 }
 0x559   : > { %v3039_v45 = vadd.f32 %v5785_v34, %v3020_v8  ;;  %v3040_v56 = vadd.f32 %v5785_v34, %v3021_v55  ;;  %v2823_v43 = vmul.f32 %v5868_v42, %v5868_v42  ;;  %v2824_v5 = vmul.f32 %v5870_v13, %v5870_v13 }
 0x55a   : > { %v2773_v50 = vadd.f32 %v2772_v62, %v2771_v4  ;;  %3674 = vrsqrt.f32 %v2913_v32  ;;  %v2695_v20 = vpop.f32.mrf.mxu2  ;;  %vm2963_vm15 = vweird.f32 %v2913_v32 }
 0x55b   : > { %3055 = vst.msk [vmem:[%s5800_s11 + $0x30] sm:$0xff] %vm261_vm0, %v3039_v45  ;;  %v2874_v9 = vsel %vm261_vm0, %v2823_v43, 0.0  ;;  %v2875_v14 = vsel %vm261_vm0, %v2824_v5, 0.0  ;;  %v2696_v46 = vadd.f32 %v2695_v20, %v5710_v49 }
 0x55c   : > { %3056 = vst.msk [vmem:[%s5800_s11 + $0x38] sm:$0xff] %vm261_vm0, %v3040_v56  ;;  %v2774_v61 = vrot.slane %v2773_v50, 4  ;;  %v2876_v24 = vadd.f32 %v2875_v14, %v2874_v9 }
 0x55d   : > { %v2715_v53 = vadd.f32 %v2696_v46, %v5671_v36 }
 0x55e   : > { %v2775_v30 = vadd.f32 %v2774_v61, %v2773_v50  ;;  %v2877_v15 = vrot.slane %v2876_v24, 4 }
 0x55f   : > { %v2780_v18 = vsel %vm261_vm0, %v2715_v53, 0.0 }
 0x560   : > { %v2776_v11 = vrot.slane %v2775_v30, 2  ;;  %v3675_v3 = vpop.eup %3674  ;;  %v2878_v22 = vadd.f32 %v2877_v15, %v2876_v24 }
 0x561   : > { %v2958_v48 = vmul.f32 %v3675_v3, %v2913_v32  ;;  %vm2964_vm14 = vweird.f32 %v3675_v3 }
 0x562   : > { %v2777_v51 = vadd.f32 %v2776_v11, %v2775_v30  ;;  %v2879_v54 = vrot.slane %v2878_v22, 2  ;;  %v2698_v27 = vpop.f32.mrf.mxu2  ;;  %vm2965_vm1 = vmor %vm2963_vm15, %vm2964_vm14 }
 0x563   : > { %v2959_v10 = vmul.f32 %v3675_v3, %v2958_v48  ;;  %v2699_v12 = vadd.f32 %v2698_v27, %v5710_v49 }
 0x564   : > { %v2778_v44 = vrot.slane %v2777_v51, 1  ;;  %v2880_v38 = vadd.f32 %v2879_v54, %v2878_v22 }
 0x565   : > { %v2960_v60 = vmul.f32 0.5, %v2959_v10  ;;  %v2716_v33 = vadd.f32 %v2699_v12, %v5679_v58 }
 0x566   : > { %v2779_v21 = vadd.f32 %v2778_v44, %v2777_v51  ;;  %v2881_v25 = vrot.slane %v2880_v38, 1 }
 0x567   : > { %v2961_v37 = vsub.f32 1.5, %v2960_v60  ;;  %v2781_v0 = vsel %vm261_vm0, %v2716_v33, 0.0 }
 0x568   : > { %v2795_v23 = vmul.f32 %v2779_v21, %v5372_v7  ;;  %v2882_v6 = vadd.f32 %v2881_v25, %v2880_v38  ;;  %v2782_v49 = vadd.f32 %v2781_v0, %v2780_v18 }
 0x569   : > { %v2962_v17 = vmul.f32 %v3675_v3, %v2961_v37 }
 0x56a   : > { %v5893_v57 = vsub.f32 %v2713_v41, %v2795_v23  ;;  %v5895_v36 = vsub.f32 %v2714_v63, %v2795_v23  ;;  %v2906_v16 = vmul.f32 %v2882_v6, %v5372_v7  ;;  %v2783_v26 = vrot.slane %v2782_v49, 4 }
 0x56b   : > { %v2966_v58 = vsel %vm2965_vm1, %v3675_v3, %v2962_v17 }
 0x56c   : > { %v2825_v1 = vmul.f32 %v5893_v57, %v5893_v57  ;;  %v2826_v39 = vmul.f32 %v5895_v36, %v5895_v36  ;;  %v3005_v40 = vmul.f32 %v2966_v58, %v5835_v29  ;;  %v3006_v41 = vmul.f32 %v2966_v58, %v5839_v2 }
 0x56d   : > { %v2914_v19 = vadd.f32 1e-05, %v2906_v16  ;;  %v2784_v35 = vadd.f32 %v2783_v26, %v2782_v49 }
 0x56e   : > { %v2883_v59 = vsel %vm261_vm0, %v2825_v1, 0.0  ;;  %v2884_v28 = vsel %vm261_vm0, %v2826_v39, 0.0  ;;  %v3022_v31 = vmul.f32 %v5792_v47, %v3005_v40  ;;  %v3023_v63 = vmul.f32 %v5792_v47, %v3006_v41 }
 0x56f   : > { %3676 = vrsqrt.f32 %v2914_v19  ;;  %v2885_v8 = vadd.f32 %v2884_v28, %v2883_v59  ;;  %v2785_v55 = vrot.slane %v2784_v35, 2  ;;  %vm2973_vm2 = vweird.f32 %v2914_v19 }
 0x570   : > { %v3041_v52 = vadd.f32 %v5785_v34, %v3022_v31  ;;  %v3042_v29 = vadd.f32 %v5785_v34, %v3023_v63 }
 0x571   : > { %v2886_v4 = vrot.slane %v2885_v8, 4  ;;  %v2786_v62 = vadd.f32 %v2785_v55, %v2784_v35 }
 0x572   : > { %3057 = vst.msk [vmem:[%s5800_s11 + $0x40] sm:$0xff] %vm261_vm0, %v3041_v52 }
 0x573   : > { %3058 = vst.msk [vmem:[%s5800_s11 + $0x48] sm:$0xff] %vm261_vm0, %v3042_v29  ;;  %v2887_v2 = vadd.f32 %v2886_v4, %v2885_v8  ;;  %v2787_v45 = vrot.slane %v2786_v62, 1 }
 0x575   : > { %v3677_v56 = vpop.eup %3676  ;;  %v2888_v43 = vrot.slane %v2887_v2, 2  ;;  %v2788_v5 = vadd.f32 %v2787_v45, %v2786_v62 }
 0x576   : > { %v2968_v32 = vmul.f32 %v3677_v56, %v2914_v19  ;;  %vm2974_vm3 = vweird.f32 %v3677_v56 }
 0x577   : > { %v2889_v9 = vadd.f32 %v2888_v43, %v2887_v2  ;;  %v2796_v14 = vmul.f32 %v2788_v5, %v5372_v7  ;;  %vm2975_vm4 = vmor %vm2973_vm2, %vm2974_vm3 }
 0x578   : > { %v2969_v50 = vmul.f32 %v3677_v56, %v2968_v32 }
 0x579   : > { %v2890_v20 = vrot.slane %v2889_v9, 1  ;;  %v5915_v24 = vsub.f32 %v2715_v53, %v2796_v14  ;;  %v5917_v30 = vsub.f32 %v2716_v33, %v2796_v14 }
 0x57a   : > { %v2970_v61 = vmul.f32 0.5, %v2969_v50 }
 0x57b   : > { %v2891_v11 = vadd.f32 %v2890_v20, %v2889_v9  ;;  %v2827_v3 = vmul.f32 %v5915_v24, %v5915_v24  ;;  %v2828_v22 = vmul.f32 %v5917_v30, %v5917_v30 }
 0x57c   : > { %v2971_v15 = vsub.f32 1.5, %v2970_v61 }
 0x57d   : > { %v2907_v48 = vmul.f32 %v2891_v11, %v5372_v7  ;;  %v2892_v51 = vsel %vm261_vm0, %v2827_v3, 0.0  ;;  %v2893_v54 = vsel %vm261_vm0, %v2828_v22, 0.0 }
 0x57e   : > { %v2972_v46 = vmul.f32 %v3677_v56, %v2971_v15  ;;  %v2894_v10 = vadd.f32 %v2893_v54, %v2892_v51 }
 0x57f   : > { %v2915_v27 = vadd.f32 1e-05, %v2907_v48 }
 0x580   : > { %v2976_v44 = vsel %vm2975_vm4, %v3677_v56, %v2972_v46  ;;  %v2895_v12 = vrot.slane %v2894_v10, 4 }
 0x581   : > { %v3007_v38 = vmul.f32 %v2976_v44, %v5868_v42  ;;  %v3008_v53 = vmul.f32 %v2976_v44, %v5870_v13  ;;  %3678 = vrsqrt.f32 %v2915_v27  ;;  %vm2983_vm6 = vweird.f32 %v2915_v27 }
 0x582   : > { %v2896_v25 = vadd.f32 %v2895_v12, %v2894_v10 }
 0x583   : > { %v3024_v60 = vmul.f32 %v5792_v47, %v3007_v38  ;;  %v3025_v21 = vmul.f32 %v5792_v47, %v3008_v53 }
 0x584   : > { %v2897_v23 = vrot.slane %v2896_v25, 2 }
 0x585   : > { %v3043_v33 = vadd.f32 %v5785_v34, %v3024_v60  ;;  %v3044_v37 = vadd.f32 %v5785_v34, %v3025_v21 }
 0x586   : > { %v2898_v6 = vadd.f32 %v2897_v23, %v2896_v25 }
 0x587   : > { %3059 = vst.msk [vmem:[%s5800_s11 + $0x50] sm:$0xff] %vm261_vm0, %v3043_v33  ;;  %v3679_v18 = vpop.eup %3678 }
 0x588   : > { %3060 = vst.msk [vmem:[%s5800_s11 + $0x58] sm:$0xff] %vm261_vm0, %v3044_v37  ;;  %v2978_v42 = vmul.f32 %v3679_v18, %v2915_v27  ;;  %v2899_v13 = vrot.slane %v2898_v6, 1  ;;  %vm2984_vm5 = vweird.f32 %v3679_v18 }
 0x589   : > { %vm2985_vm7 = vmor %vm2983_vm6, %vm2984_vm5 }
 0x58a   : > { %v2979_v0 = vmul.f32 %v3679_v18, %v2978_v42  ;;  %v2900_v17 = vadd.f32 %v2899_v13, %v2898_v6 }
 0x58c   : > { %v2980_v49 = vmul.f32 0.5, %v2979_v0  ;;  %v2908_v16 = vmul.f32 %v2900_v17, %v5372_v7 }
 0x58e   : > { %v2981_v58 = vsub.f32 1.5, %v2980_v49  ;;  %v2916_v1 = vadd.f32 1e-05, %v2908_v16 }
 0x590   : > { %v2982_v39 = vmul.f32 %v3679_v18, %v2981_v58  ;;  %3680 = vrsqrt.f32 %v2916_v1  ;;  %vm2993_vm9 = vweird.f32 %v2916_v1 }
 0x592   : > { %v2986_v26 = vsel %vm2985_vm7, %v3679_v18, %v2982_v39 }
 0x593   : > { %v3009_v40 = vmul.f32 %v2986_v26, %v5893_v57  ;;  %v3010_v41 = vmul.f32 %v2986_v26, %v5895_v36 }
 0x595   : > { %v3026_v19 = vmul.f32 %v5792_v47, %v3009_v40  ;;  %v3027_v59 = vmul.f32 %v5792_v47, %v3010_v41 }
 0x596   : > { %v3681_v7 = vpop.eup %3680 }
 0x597   : > { %v3045_v28 = vadd.f32 %v5785_v34, %v3026_v19  ;;  %v3046_v35 = vadd.f32 %v5785_v34, %v3027_v59  ;;  %v2988_v31 = vmul.f32 %v3681_v7, %v2916_v1  ;;  %vm2994_vm8 = vweird.f32 %v3681_v7 }
 0x598   : > { %vm2995_vm10 = vmor %vm2993_vm9, %vm2994_vm8 }
 0x599   : > { %3061 = vst.msk [vmem:[%s5800_s11 + $0x60] sm:$0xff] %vm261_vm0, %v3045_v28  ;;  %v2989_v63 = vmul.f32 %v3681_v7, %v2988_v31 }
 0x59a   : > { %3062 = vst.msk [vmem:[%s5800_s11 + $0x68] sm:$0xff] %vm261_vm0, %v3046_v35 }
 0x59b   : > { %v2990_v8 = vmul.f32 0.5, %v2989_v63 }
 0x59d   : > { %v2991_v57 = vsub.f32 1.5, %v2990_v8 }
 0x59f   : > { %v2992_v36 = vmul.f32 %v3681_v7, %v2991_v57 }
 0x5a1   : > { %v2996_v55 = vsel %vm2995_vm10, %v3681_v7, %v2992_v36 }
 0x5a2   : > { %v3011_v52 = vmul.f32 %v2996_v55, %v5915_v24  ;;  %v3012_v29 = vmul.f32 %v2996_v55, %v5917_v30 }
 0x5a4   : > { %v3028_v4 = vmul.f32 %v5792_v47, %v3011_v52  ;;  %v3029_v62 = vmul.f32 %v5792_v47, %v3012_v29 }
 0x5a6   : > { %v3047_v2 = vadd.f32 %v5785_v34, %v3028_v4  ;;  %v3048_v45 = vadd.f32 %v5785_v34, %v3029_v62 }
 0x5a8   : > { %3063 = vst.msk [vmem:[%s5800_s11 + $0x70] sm:$0xff] %vm261_vm0, %v3047_v2 }
 0x5a9   : > { %3064 = vst.msk [vmem:[%s5800_s11 + $0x78] sm:$0xff] %vm261_vm0, %v3048_v45 }
 0x5aa   : > { %3746 = shalt.err (!%p3743_p3)
}
 0x5ab   : > { %s3789_s13 = smov 128   ;;  %s3790_s7 = smov 8  }
 0x5ac   : > { %3365 = dma.vmem_to_hbm [thread:$0]  (%p3854_p5), %s3080_s23, 2048, %s3082_s8, %s3066_s19, %s3789_s13, %s3789_s13, %s3790_s7  }
 0x5ad PF: > { %p3371_p4 = scmp.ge.s32.totalorder %s3781_s18, 2  ;;  %s3096_s10 = sand.u32 1, %s3769_s15  }
 0x5ae   : > { %s3097_s11 = scalar_lea.sflag [#allocation3], %s3096_s10 }
 0x5af   : > { %p3368_p7 = pnand %p3371_p4, %p3858_p6 }
 0x5b1   : > { %p3369_p8 = pneg %p3368_p7 }
 0x5b3   : > { %3764 = dma.done.wait (%p3369_p8), %s3097_s11, 2048  }
 0x5b4   : > { %3766 = vsyncadd (%p3369_p8), %s3097_s11, 4294965248  ;;  %p14_p9 = scmp.ge.s32.totalorder %s3841_s21, 6   ;;  %s6157_s15 = smov %s3773_s16 }
 0x5b5   : > { %s6158_s16 = smov %s3777_s17  ;;  %s6159_s17 = smov %s3852_s24 }
 0x5b6   : > { %s6160_s18 = smov %s3841_s21  ;;  %16 = sbr.rel (!%p14_p9) target bundleno = 3 (0x3), region = 74 }
 0x5bb   :  { %3103 = vsyncpa [#allocation3], 1 }
 0x5bc   :  { %3105 = vsyncpa [#allocation3 + $0x1], 1 }

</bundles_post_ra>
